<compile_context>
chip_gen: v7x
topology: tpu7x:2x2x1
jax: 0.10.0
libtpu: 0.0.40
codegen_flags: <defaults>
</compile_context>

<pallas_src>
import numpy as np
import jax
import jax.numpy as jnp
from jax import lax
from jax.experimental import pallas as pl
from jax.experimental.pallas import tpu as pltpu


# ----------------------------------------------------------------------------------
# Fused kernel: BiGRU recurrence + Linear -> emissions, then CRF Viterbi decode
# ----------------------------------------------------------------------------------
def bigru_crf_kernel(
        x_ref,                                            # (T, Bt, E)  f32
        wih_fr_ref, wih_fz_ref, wih_fn_ref,               # (E, H) bf16
        whh_fr_ref, whh_fz_ref, whh_fn_ref,               # (H, H) bf16
        b_fr_ref, b_fz_ref, b_fni_ref, b_fnh_ref,         # (1, H) f32
        wih_br_ref, wih_bz_ref, wih_bn_ref,
        whh_br_ref, whh_bz_ref, whh_bn_ref,
        b_br_ref, b_bz_ref, b_bni_ref, b_bnh_ref,
        wfc_f_ref, wfc_b_ref, bfc_ref,                    # (H, O) bf16, (1, O) f32
        start_ref, end_ref, trans_t_ref,                  # (1,O), (1,O), (O,O) f32
        em_ref, tags_ref,                                 # out: (T,Bt,O) f32, (Bt,T) i32
        gi_fr, gi_fz, gi_fn, gi_br, gi_bz, gi_bn,         # scratch (T,Bt,H) f32
        hf_seq, hb_seq,                                   # scratch (T,Bt,H) f32
        hist_ref):                                        # scratch (T,Bt,O) i32
    T, B, E = x_ref.shape
    H = whh_fr_ref.shape[0]
    O = trans_t_ref.shape[0]

    # ---- 1. Hoisted input projections: one big matmul per gate / direction ----
    x_flat = x_ref[...].reshape(T * B, E).astype(jnp.bfloat16)

    def in_proj(w_ref, b_ref, dst_ref):
        g = jnp.dot(x_flat, w_ref[...], preferred_element_type=jnp.float32) + b_ref[...]
        dst_ref[...] = g.reshape(T, B, H)

    in_proj(wih_fr_ref, b_fr_ref, gi_fr)      # r-gate bias = b_ir + b_hr (folded)
    in_proj(wih_fz_ref, b_fz_ref, gi_fz)      # z-gate bias = b_iz + b_hz (folded)
    in_proj(wih_fn_ref, b_fni_ref, gi_fn)     # n-gate: only b_in here (b_hn stays in r*(...))
    in_proj(wih_br_ref, b_br_ref, gi_br)
    in_proj(wih_bz_ref, b_bz_ref, gi_bz)
    in_proj(wih_bn_ref, b_bni_ref, gi_bn)

    # ---- 2. GRU recurrences: only h @ W_hh stays inside the time loop ----
    def gru_scan(whh_r, whh_z, whh_n, b_nh, gi_r_ref, gi_z_ref, gi_n_ref,
                 hseq_ref, reverse):
        def body(i, h):
            t = (T - 1 - i) if reverse else i
            h16 = h.astype(jnp.bfloat16)
            gh_r = jnp.dot(h16, whh_r, preferred_element_type=jnp.float32)
            gh_z = jnp.dot(h16, whh_z, preferred_element_type=jnp.float32)
            gh_n = jnp.dot(h16, whh_n, preferred_element_type=jnp.float32)
            r = jax.nn.sigmoid(gi_r_ref[t] + gh_r)
            z = jax.nn.sigmoid(gi_z_ref[t] + gh_z)
            n = jnp.tanh(gi_n_ref[t] + r * (gh_n + b_nh))
            h_new = (1.0 - z) * n + z * h
            hseq_ref[t] = h_new
            return h_new

        lax.fori_loop(0, T, body, jnp.zeros((B, H), jnp.float32))

    gru_scan(whh_fr_ref[...], whh_fz_ref[...], whh_fn_ref[...], b_fnh_ref[...],
             gi_fr, gi_fz, gi_fn, hf_seq, reverse=False)
    gru_scan(whh_br_ref[...], whh_bz_ref[...], whh_bn_ref[...], b_bnh_ref[...],
             gi_br, gi_bz, gi_bn, hb_seq, reverse=True)

    # ---- 3. Dropout(0.3) is identity in eval; FC as one batched matmul,
    #         followed by a single dense store of the emissions block. ----
    hf = hf_seq[...].reshape(T * B, H).astype(jnp.bfloat16)
    hb = hb_seq[...].reshape(T * B, H).astype(jnp.bfloat16)
    em = (jnp.dot(hf, wfc_f_ref[...], preferred_element_type=jnp.float32)
          + jnp.dot(hb, wfc_b_ref[...], preferred_element_type=jnp.float32)
          + bfc_ref[...])
    em_ref[...] = em.reshape(T, B, O)

    # ---- 4. CRF Viterbi decode (mask=None -> full-length sequences) ----
    trans_t = trans_t_ref[...]                      # trans_t[j, i] = transitions[i, j]
    lane_o = lax.broadcasted_iota(jnp.int32, (B, O), 1)
    iota3 = lax.broadcasted_iota(jnp.int32, (B, O, O), 2)

    score0 = start_ref[...] + em_ref[0]             # (B, O)

    def dp_body(t, score):
        em_t = em_ref[t]                            # (B, O)
        # nxt[b, j, i] = score of tag j at t coming from tag i at t-1
        nxt = score[:, None, :] + trans_t[None, :, :] + em_t[:, :, None]
        mx = jnp.max(nxt, axis=-1)
        # first-index argmax (matches np.argmax tie-breaking)
        idx = jnp.min(jnp.where(nxt == mx[:, :, None], iota3, O),
                      axis=-1).astype(jnp.int32)
        hist_ref[t] = idx                           # backpointers into VMEM scratch
        return mx

    score = lax.fori_loop(1, T, dp_body, score0)
    score = score + end_ref[...]

    mx = jnp.max(score, axis=-1, keepdims=True)
    last = jnp.min(jnp.where(score == mx, lane_o, O),
                   axis=-1, keepdims=True).astype(jnp.int32)          # (B, 1)

    # Backtrace: accumulate tags in registers, single dense store at the end.
    lane_t = lax.broadcasted_iota(jnp.int32, (B, T), 1)
    tags0 = jnp.where(lane_t == (T - 1), jnp.broadcast_to(last, (B, T)), 0)

    def bt_body(s, carry):
        prev, tags = carry
        t = T - 2 - s
        hist_t = hist_ref[t + 1]                                       # (B, O)
        nxt_tag = jnp.sum(jnp.where(lane_o == prev, hist_t, 0),
                          axis=-1, keepdims=True).astype(jnp.int32)    # (B, 1)
        tags = jnp.where(lane_t == t, jnp.broadcast_to(nxt_tag, (B, T)), tags)
        return nxt_tag, tags

    _, tags = lax.fori_loop(0, T - 1, bt_body, (last, tags0))
    tags_ref[...] = tags


# ----------------------------------------------------------------------------------
# Wrapper: embedding gather (XLA), batch-tiled grid, one fused pallas_call
# ----------------------------------------------------------------------------------
WEIGHT_KEYS = (
    "wih_fr", "wih_fz", "wih_fn", "whh_fr", "whh_fz", "whh_fn",
    "b_fr", "b_fz", "b_fni", "b_fnh",
    "wih_br", "wih_bz", "wih_bn", "whh_br", "whh_bz", "whh_bn",
    "b_br", "b_bz", "b_bni", "b_bnh",
    "wfc_f", "wfc_b", "bfc",
    "crf_start", "crf_end", "crf_trans_t",
)


def bigru_crf_decode(x_tokens, prep, *, b_tile=8):
    """Returns (emissions (B,T,O) f32, tags (B,T) int32)."""
    x_tb = jnp.transpose(x_tokens, (1, 0))               # (T, B)
    x_emb = prep["emb"][x_tb]                            # (T, B, E) embedding lookup (XLA gather)
    T, B, E = x_emb.shape
    H = prep["whh_fr"].shape[0]
    O = prep["crf_trans_t"].shape[0]

    if B % b_tile != 0:
        b_tile = B                                       # fall back to a single batch tile

    weights = [prep[k] for k in WEIGHT_KEYS]
    # Weights use full-extent BlockSpecs (constant block index -> stay resident).
    w_specs = [pl.BlockSpec(w.shape, lambda b: (0, 0)) for w in weights]

    grid_spec = pltpu.PrefetchScalarGridSpec(
        num_scalar_prefetch=0,
        grid=(B // b_tile,),
        in_specs=[pl.BlockSpec((T, b_tile, E), lambda b: (0, b, 0))] + w_specs,
        out_specs=[pl.BlockSpec((T, b_tile, O), lambda b: (0, b, 0)),
                   pl.BlockSpec((b_tile, T), lambda b: (b, 0))],
        scratch_shapes=[pltpu.VMEM((T, b_tile, H), jnp.float32)] * 8     # 6x gi + hf_seq + hb_seq
                       + [pltpu.VMEM((T, b_tile, O), jnp.int32)],        # Viterbi backpointers
    )

    em_tbo, tags = pl.pallas_call(
        bigru_crf_kernel,
        out_shape=(jax.ShapeDtypeStruct((T, B, O), jnp.float32),
                   jax.ShapeDtypeStruct((B, T), jnp.int32)),
        grid_spec=grid_spec,
        compiler_params=pltpu.CompilerParams(
            dimension_semantics=("parallel",)),          # batch tiles -> both TCs on v7x
    )(x_emb, *weights)

    emissions = jnp.transpose(em_tbo, (1, 0, 2))         # (B, T, O), module layout
    return emissions, tags


# ----------------------------------------------------------------------------------
# One-time parameter prep (outside the jitted path): per-gate splits, transposes,
# bias folding, bf16 casts of matmul weights.
# ----------------------------------------------------------------------------------
def prepare_inference_params(p):
    H = p["whh_f"].shape[1]
    bf16 = jnp.bfloat16

    def split_gates(w):                  # (3H, in) -> 3 x (in, H), bf16 ; gate order [r, z, n]
        return tuple(jnp.asarray(w[g * H:(g + 1) * H, :].T, dtype=bf16) for g in range(3))

    wih_fr, wih_fz, wih_fn = split_gates(p["wih_f"])
    whh_fr, whh_fz, whh_fn = split_gates(p["whh_f"])
    wih_br, wih_bz, wih_bn = split_gates(p["wih_b"])
    whh_br, whh_bz, whh_bn = split_gates(p["whh_b"])

    def rz_bias(bih, bhh, g):            # b_ih and b_hh are purely additive for r/z gates
        return (bih[g * H:(g + 1) * H] + bhh[g * H:(g + 1) * H]).reshape(1, H)

    return dict(
        emb=p["emb"].astype(jnp.float32),
        wih_fr=wih_fr, wih_fz=wih_fz, wih_fn=wih_fn,
        whh_fr=whh_fr, whh_fz=whh_fz, whh_fn=whh_fn,
        b_fr=rz_bias(p["bih_f"], p["bhh_f"], 0),
        b_fz=rz_bias(p["bih_f"], p["bhh_f"], 1),
        b_fni=p["bih_f"][2 * H:].reshape(1, H),
        b_fnh=p["bhh_f"][2 * H:].reshape(1, H),
        wih_br=wih_br, wih_bz=wih_bz, wih_bn=wih_bn,
        whh_br=whh_br, whh_bz=whh_bz, whh_bn=whh_bn,
        b_br=rz_bias(p["bih_b"], p["bhh_b"], 0),
        b_bz=rz_bias(p["bih_b"], p["bhh_b"], 1),
        b_bni=p["bih_b"][2 * H:].reshape(1, H),
        b_bnh=p["bhh_b"][2 * H:].reshape(1, H),
        wfc_f=jnp.asarray(p["wfc"][:, :H].T, dtype=bf16),
        wfc_b=jnp.asarray(p["wfc"][:, H:].T, dtype=bf16),
        bfc=p["bfc"].reshape(1, -1),
        crf_start=p["crf_start"].reshape(1, -1),
        crf_end=p["crf_end"].reshape(1, -1),
        crf_trans_t=p["crf_trans"].T,
    )


# ----------------------------------------------------------------------------------
# Deterministic parameter construction (shapes follow the PyTorch module __init__)
# ----------------------------------------------------------------------------------
def make_params(key, vocab, E, H, O):
    ks = jax.random.split(key, 14)
    u = lambda k, shape, s=0.1: jax.random.uniform(k, shape, jnp.float32, -s, s)
    return dict(
        emb=u(ks[0], (vocab, E), 0.5),
        wih_f=u(ks[1], (3 * H, E)), whh_f=u(ks[2], (3 * H, H)),
        bih_f=u(ks[3], (3 * H,)), bhh_f=u(ks[4], (3 * H,)),
        wih_b=u(ks[5], (3 * H, E)), whh_b=u(ks[6], (3 * H, H)),
        bih_b=u(ks[7], (3 * H,)), bhh_b=u(ks[8], (3 * H,)),
        wfc=u(ks[9], (O, 2 * H)), bfc=u(ks[10], (O,)),
        crf_start=u(ks[11], (O,)), crf_end=u(ks[12], (O,)),
        crf_trans=u(ks[13], (O, O)),
    )


# ----------------------------------------------------------------------------------
# Pure JAX / numpy references (mirror nn.GRU / nn.Linear / torchcrf.decode semantics)
# ----------------------------------------------------------------------------------
def reference_emissions(x_tokens, p):
    emb = p["emb"][x_tokens].astype(jnp.float32)
    B, T, E = emb.shape
    H = p["whh_f"].shape[1]

    def run_dir(wih, whh, bih, bhh, reverse):
        h = jnp.zeros((B, H), jnp.float32)
        hs = [None] * T
        order = range(T - 1, -1, -1) if reverse else range(T)
        for t in order:
            x_t = emb[:, t, :]
            gi = x_t @ wih.T + bih
            gh = h @ whh.T + bhh
            r = jax.nn.sigmoid(gi[:, :H] + gh[:, :H])
            z = jax.nn.sigmoid(gi[:, H:2 * H] + gh[:, H:2 * H])
            n = jnp.tanh(gi[:, 2 * H:] + r * gh[:, 2 * H:])
            h = (1.0 - z) * n + z * h
            hs[t] = h
        return jnp.stack(hs, axis=1)

    hf = run_dir(p["wih_f"], p["whh_f"], p["bih_f"], p["bhh_f"], False)
    hb = run_dir(p["wih_b"], p["whh_b"], p["bih_b"], p["bhh_b"], True)
    hcat = jnp.concatenate([hf, hb], axis=-1)
    return hcat @ p["wfc"].T + p["bfc"]


def reference_viterbi(em, start, end, trans):
    B, T, O = em.shape
    tags = np.zeros((B, T), dtype=np.int32)
    for b in range(B):
        score = start + em[b, 0]
        hist = []
        for t in range(1, T):
            nxt = score[:, None] + trans + em[b, t][None, :]   # (prev, curr)
            hist.append(np.argmax(nxt, axis=0))
            score = np.max(nxt, axis=0)
        score = score + end
        best = int(np.argmax(score))
        tags[b, T - 1] = best
        for t in range(T - 2, -1, -1):
            best = int(hist[t][best])
            tags[b, t] = best
    return tags


if __name__ == "__main__":
    B, T = 16, 16
    vocab, E, H, O = 50, 32, 32, 5

    key = jax.random.PRNGKey(0)
    k_tok, k_par = jax.random.split(key)
    x_tokens = jax.random.randint(k_tok, (B, T), 0, vocab, dtype=jnp.int32)
    params = make_params(k_par, vocab, E, H, O)
    prep = prepare_inference_params(params)            # one-time weight prep, outside jit

    decode = jax.jit(bigru_crf_decode)
    emissions, tags = decode(x_tokens, prep)
    jax.block_until_ready((emissions, tags))

    # correctness: emissions vs pure-f32 JAX reference (kernel matmuls are bf16)
    em_ref = np.asarray(reference_emissions(x_tokens, params))
    em_ker = np.asarray(emissions)
    assert np.allclose(em_ker, em_ref, atol=3e-2, rtol=3e-2), "emissions mismatch"

    # correctness: Viterbi tags vs numpy reference run on the kernel's own emissions
    tags_ref = reference_viterbi(em_ker,
                                 np.asarray(params["crf_start"]),
                                 np.asarray(params["crf_end"]),
                                 np.asarray(params["crf_trans"]))
    assert np.array_equal(np.asarray(tags), tags_ref), "viterbi tags mismatch"

    print("KERNEL_OK")
</pallas_src>

<mosaic_0001>
module attributes {stable_mosaic.version = 11 : i64} {
  func.func @bigru_crf_kernel(%arg0: i32, %arg1: memref<16x8x32xf32, #tpu.memory_space<vmem>>, %arg2: memref<32x32xbf16, #tpu.memory_space<vmem>>, %arg3: memref<32x32xbf16, #tpu.memory_space<vmem>>, %arg4: memref<32x32xbf16, #tpu.memory_space<vmem>>, %arg5: memref<32x32xbf16, #tpu.memory_space<vmem>>, %arg6: memref<32x32xbf16, #tpu.memory_space<vmem>>, %arg7: memref<32x32xbf16, #tpu.memory_space<vmem>>, %arg8: memref<1x32xf32, #tpu.memory_space<vmem>>, %arg9: memref<1x32xf32, #tpu.memory_space<vmem>>, %arg10: memref<1x32xf32, #tpu.memory_space<vmem>>, %arg11: memref<1x32xf32, #tpu.memory_space<vmem>>, %arg12: memref<32x32xbf16, #tpu.memory_space<vmem>>, %arg13: memref<32x32xbf16, #tpu.memory_space<vmem>>, %arg14: memref<32x32xbf16, #tpu.memory_space<vmem>>, %arg15: memref<32x32xbf16, #tpu.memory_space<vmem>>, %arg16: memref<32x32xbf16, #tpu.memory_space<vmem>>, %arg17: memref<32x32xbf16, #tpu.memory_space<vmem>>, %arg18: memref<1x32xf32, #tpu.memory_space<vmem>>, %arg19: memref<1x32xf32, #tpu.memory_space<vmem>>, %arg20: memref<1x32xf32, #tpu.memory_space<vmem>>, %arg21: memref<1x32xf32, #tpu.memory_space<vmem>>, %arg22: memref<32x5xbf16, #tpu.memory_space<vmem>>, %arg23: memref<32x5xbf16, #tpu.memory_space<vmem>>, %arg24: memref<1x5xf32, #tpu.memory_space<vmem>>, %arg25: memref<1x5xf32, #tpu.memory_space<vmem>>, %arg26: memref<1x5xf32, #tpu.memory_space<vmem>>, %arg27: memref<5x5xf32, #tpu.memory_space<vmem>>, %arg28: memref<16x8x5xf32, #tpu.memory_space<vmem>>, %arg29: memref<8x16xi32, #tpu.memory_space<vmem>>, %arg30: memref<16x8x32xf32, #tpu.memory_space<vmem>>, %arg31: memref<16x8x32xf32, #tpu.memory_space<vmem>>, %arg32: memref<16x8x32xf32, #tpu.memory_space<vmem>>, %arg33: memref<16x8x32xf32, #tpu.memory_space<vmem>>, %arg34: memref<16x8x32xf32, #tpu.memory_space<vmem>>, %arg35: memref<16x8x32xf32, #tpu.memory_space<vmem>>, %arg36: memref<16x8x32xf32, #tpu.memory_space<vmem>>, %arg37: memref<16x8x32xf32, #tpu.memory_space<vmem>>, %arg38: memref<16x8x5xi32, #tpu.memory_space<vmem>>) attributes {dimension_semantics = [#tpu.dimension_semantics<parallel>], iteration_bounds = array<i64: 2>, scalar_prefetch = 0 : i64, scratch_operands = 9 : i64, tpu.core_type = #tpu.core_type<tc>, window_params = [{transform_indices = @transform_0, window_bounds = array<i64: 16, 8, 32>}, {pipeline_mode = #tpu.pipeline_mode<synchronous>, transform_indices = @transform_1, window_bounds = array<i64: 32, 32>}, {pipeline_mode = #tpu.pipeline_mode<synchronous>, transform_indices = @transform_2, window_bounds = array<i64: 32, 32>}, {pipeline_mode = #tpu.pipeline_mode<synchronous>, transform_indices = @transform_3, window_bounds = array<i64: 32, 32>}, {pipeline_mode = #tpu.pipeline_mode<synchronous>, transform_indices = @transform_4, window_bounds = array<i64: 32, 32>}, {pipeline_mode = #tpu.pipeline_mode<synchronous>, transform_indices = @transform_5, window_bounds = array<i64: 32, 32>}, {pipeline_mode = #tpu.pipeline_mode<synchronous>, transform_indices = @transform_6, window_bounds = array<i64: 32, 32>}, {pipeline_mode = #tpu.pipeline_mode<synchronous>, transform_indices = @transform_7, window_bounds = array<i64: 1, 32>}, {pipeline_mode = #tpu.pipeline_mode<synchronous>, transform_indices = @transform_8, window_bounds = array<i64: 1, 32>}, {pipeline_mode = #tpu.pipeline_mode<synchronous>, transform_indices = @transform_9, window_bounds = array<i64: 1, 32>}, {pipeline_mode = #tpu.pipeline_mode<synchronous>, transform_indices = @transform_10, window_bounds = array<i64: 1, 32>}, {pipeline_mode = #tpu.pipeline_mode<synchronous>, transform_indices = @transform_11, window_bounds = array<i64: 32, 32>}, {pipeline_mode = #tpu.pipeline_mode<synchronous>, transform_indices = @transform_12, window_bounds = array<i64: 32, 32>}, {pipeline_mode = #tpu.pipeline_mode<synchronous>, transform_indices = @transform_13, window_bounds = array<i64: 32, 32>}, {pipeline_mode = #tpu.pipeline_mode<synchronous>, transform_indices = @transform_14, window_bounds = array<i64: 32, 32>}, {pipeline_mode = #tpu.pipeline_mode<synchronous>, transform_indices = @transform_15, window_bounds = array<i64: 32, 32>}, {pipeline_mode = #tpu.pipeline_mode<synchronous>, transform_indices = @transform_16, window_bounds = array<i64: 32, 32>}, {pipeline_mode = #tpu.pipeline_mode<synchronous>, transform_indices = @transform_17, window_bounds = array<i64: 1, 32>}, {pipeline_mode = #tpu.pipeline_mode<synchronous>, transform_indices = @transform_18, window_bounds = array<i64: 1, 32>}, {pipeline_mode = #tpu.pipeline_mode<synchronous>, transform_indices = @transform_19, window_bounds = array<i64: 1, 32>}, {pipeline_mode = #tpu.pipeline_mode<synchronous>, transform_indices = @transform_20, window_bounds = array<i64: 1, 32>}, {pipeline_mode = #tpu.pipeline_mode<synchronous>, transform_indices = @transform_21, window_bounds = array<i64: 32, 5>}, {pipeline_mode = #tpu.pipeline_mode<synchronous>, transform_indices = @transform_22, window_bounds = array<i64: 32, 5>}, {pipeline_mode = #tpu.pipeline_mode<synchronous>, transform_indices = @transform_23, window_bounds = array<i64: 1, 5>}, {pipeline_mode = #tpu.pipeline_mode<synchronous>, transform_indices = @transform_24, window_bounds = array<i64: 1, 5>}, {pipeline_mode = #tpu.pipeline_mode<synchronous>, transform_indices = @transform_25, window_bounds = array<i64: 1, 5>}, {pipeline_mode = #tpu.pipeline_mode<synchronous>, transform_indices = @transform_26, window_bounds = array<i64: 5, 5>}, {transform_indices = @transform_27, window_bounds = array<i64: 16, 8, 5>}, {transform_indices = @transform_28, window_bounds = array<i64: 8, 16>}]} {
    %c0 = arith.constant 0 : index
    %c0_0 = arith.constant 0 : index
    %c0_1 = arith.constant 0 : index
    %0 = vector.load %arg1[%c0, %c0_0, %c0_1] : memref<16x8x32xf32, #tpu.memory_space<vmem>>, vector<16x8x32xf32>
    %1 = vector.shape_cast %0 : vector<16x8x32xf32> to vector<128x32xf32>
    %2 = arith.truncf %1 : vector<128x32xf32> to vector<128x32xbf16>
    %c0_2 = arith.constant 0 : index
    %c0_3 = arith.constant 0 : index
    %3 = vector.load %arg2[%c0_2, %c0_3] : memref<32x32xbf16, #tpu.memory_space<vmem>>, vector<32x32xbf16>
    %cst = arith.constant dense<0.000000e+00> : vector<128x32xf32>
    %4 = tpu.matmul %2, %3, %cst {dimension_numbers = #tpu.dot_dimension_numbers<[1], [0], [0], [1], [0, 0, 1, 1], [], []>} : vector<128x32xbf16>, vector<32x32xbf16>, vector<128x32xf32> -> vector<128x32xf32>
    %c0_4 = arith.constant 0 : index
    %c0_5 = arith.constant 0 : index
    %5 = vector.load %arg8[%c0_4, %c0_5] : memref<1x32xf32, #tpu.memory_space<vmem>>, vector<1x32xf32>
    %6 = vector.broadcast %5 : vector<1x32xf32> to vector<128x32xf32>
    %7 = arith.addf %4, %6 : vector<128x32xf32>
    %8 = vector.shape_cast %7 : vector<128x32xf32> to vector<16x8x32xf32>
    %c0_6 = arith.constant 0 : index
    %c0_7 = arith.constant 0 : index
    %c0_8 = arith.constant 0 : index
    %9 = vector.load %arg30[%c0_6, %c0_7, %c0_8] : memref<16x8x32xf32, #tpu.memory_space<vmem>>, vector<16x8x32xf32>
    tpu.vector_store %arg30[%c0_6, %c0_7, %c0_8], %8 {strides = array<i32>} : memref<16x8x32xf32, #tpu.memory_space<vmem>>, vector<16x8x32xf32>,
    %c0_9 = arith.constant 0 : index
    %c0_10 = arith.constant 0 : index
    %10 = vector.load %arg3[%c0_9, %c0_10] : memref<32x32xbf16, #tpu.memory_space<vmem>>, vector<32x32xbf16>
    %cst_11 = arith.constant dense<0.000000e+00> : vector<128x32xf32>
    %11 = tpu.matmul %2, %10, %cst_11 {dimension_numbers = #tpu.dot_dimension_numbers<[1], [0], [0], [1], [0, 0, 1, 1], [], []>} : vector<128x32xbf16>, vector<32x32xbf16>, vector<128x32xf32> -> vector<128x32xf32>
    %c0_12 = arith.constant 0 : index
    %c0_13 = arith.constant 0 : index
    %12 = vector.load %arg9[%c0_12, %c0_13] : memref<1x32xf32, #tpu.memory_space<vmem>>, vector<1x32xf32>
    %13 = vector.broadcast %12 : vector<1x32xf32> to vector<128x32xf32>
    %14 = arith.addf %11, %13 : vector<128x32xf32>
    %15 = vector.shape_cast %14 : vector<128x32xf32> to vector<16x8x32xf32>
    %c0_14 = arith.constant 0 : index
    %c0_15 = arith.constant 0 : index
    %c0_16 = arith.constant 0 : index
    %16 = vector.load %arg31[%c0_14, %c0_15, %c0_16] : memref<16x8x32xf32, #tpu.memory_space<vmem>>, vector<16x8x32xf32>
    tpu.vector_store %arg31[%c0_14, %c0_15, %c0_16], %15 {strides = array<i32>} : memref<16x8x32xf32, #tpu.memory_space<vmem>>, vector<16x8x32xf32>,
    %c0_17 = arith.constant 0 : index
    %c0_18 = arith.constant 0 : index
    %17 = vector.load %arg4[%c0_17, %c0_18] : memref<32x32xbf16, #tpu.memory_space<vmem>>, vector<32x32xbf16>
    %cst_19 = arith.constant dense<0.000000e+00> : vector<128x32xf32>
    %18 = tpu.matmul %2, %17, %cst_19 {dimension_numbers = #tpu.dot_dimension_numbers<[1], [0], [0], [1], [0, 0, 1, 1], [], []>} : vector<128x32xbf16>, vector<32x32xbf16>, vector<128x32xf32> -> vector<128x32xf32>
    %c0_20 = arith.constant 0 : index
    %c0_21 = arith.constant 0 : index
    %19 = vector.load %arg10[%c0_20, %c0_21] : memref<1x32xf32, #tpu.memory_space<vmem>>, vector<1x32xf32>
    %20 = vector.broadcast %19 : vector<1x32xf32> to vector<128x32xf32>
    %21 = arith.addf %18, %20 : vector<128x32xf32>
    %22 = vector.shape_cast %21 : vector<128x32xf32> to vector<16x8x32xf32>
    %c0_22 = arith.constant 0 : index
    %c0_23 = arith.constant 0 : index
    %c0_24 = arith.constant 0 : index
    %23 = vector.load %arg32[%c0_22, %c0_23, %c0_24] : memref<16x8x32xf32, #tpu.memory_space<vmem>>, vector<16x8x32xf32>
    tpu.vector_store %arg32[%c0_22, %c0_23, %c0_24], %22 {strides = array<i32>} : memref<16x8x32xf32, #tpu.memory_space<vmem>>, vector<16x8x32xf32>,
    %c0_25 = arith.constant 0 : index
    %c0_26 = arith.constant 0 : index
    %24 = vector.load %arg12[%c0_25, %c0_26] : memref<32x32xbf16, #tpu.memory_space<vmem>>, vector<32x32xbf16>
    %cst_27 = arith.constant dense<0.000000e+00> : vector<128x32xf32>
    %25 = tpu.matmul %2, %24, %cst_27 {dimension_numbers = #tpu.dot_dimension_numbers<[1], [0], [0], [1], [0, 0, 1, 1], [], []>} : vector<128x32xbf16>, vector<32x32xbf16>, vector<128x32xf32> -> vector<128x32xf32>
    %c0_28 = arith.constant 0 : index
    %c0_29 = arith.constant 0 : index
    %26 = vector.load %arg18[%c0_28, %c0_29] : memref<1x32xf32, #tpu.memory_space<vmem>>, vector<1x32xf32>
    %27 = vector.broadcast %26 : vector<1x32xf32> to vector<128x32xf32>
    %28 = arith.addf %25, %27 : vector<128x32xf32>
    %29 = vector.shape_cast %28 : vector<128x32xf32> to vector<16x8x32xf32>
    %c0_30 = arith.constant 0 : index
    %c0_31 = arith.constant 0 : index
    %c0_32 = arith.constant 0 : index
    %30 = vector.load %arg33[%c0_30, %c0_31, %c0_32] : memref<16x8x32xf32, #tpu.memory_space<vmem>>, vector<16x8x32xf32>
    tpu.vector_store %arg33[%c0_30, %c0_31, %c0_32], %29 {strides = array<i32>} : memref<16x8x32xf32, #tpu.memory_space<vmem>>, vector<16x8x32xf32>,
    %c0_33 = arith.constant 0 : index
    %c0_34 = arith.constant 0 : index
    %31 = vector.load %arg13[%c0_33, %c0_34] : memref<32x32xbf16, #tpu.memory_space<vmem>>, vector<32x32xbf16>
    %cst_35 = arith.constant dense<0.000000e+00> : vector<128x32xf32>
    %32 = tpu.matmul %2, %31, %cst_35 {dimension_numbers = #tpu.dot_dimension_numbers<[1], [0], [0], [1], [0, 0, 1, 1], [], []>} : vector<128x32xbf16>, vector<32x32xbf16>, vector<128x32xf32> -> vector<128x32xf32>
    %c0_36 = arith.constant 0 : index
    %c0_37 = arith.constant 0 : index
    %33 = vector.load %arg19[%c0_36, %c0_37] : memref<1x32xf32, #tpu.memory_space<vmem>>, vector<1x32xf32>
    %34 = vector.broadcast %33 : vector<1x32xf32> to vector<128x32xf32>
    %35 = arith.addf %32, %34 : vector<128x32xf32>
    %36 = vector.shape_cast %35 : vector<128x32xf32> to vector<16x8x32xf32>
    %c0_38 = arith.constant 0 : index
    %c0_39 = arith.constant 0 : index
    %c0_40 = arith.constant 0 : index
    %37 = vector.load %arg34[%c0_38, %c0_39, %c0_40] : memref<16x8x32xf32, #tpu.memory_space<vmem>>, vector<16x8x32xf32>
    tpu.vector_store %arg34[%c0_38, %c0_39, %c0_40], %36 {strides = array<i32>} : memref<16x8x32xf32, #tpu.memory_space<vmem>>, vector<16x8x32xf32>,
    %c0_41 = arith.constant 0 : index
    %c0_42 = arith.constant 0 : index
    %38 = vector.load %arg14[%c0_41, %c0_42] : memref<32x32xbf16, #tpu.memory_space<vmem>>, vector<32x32xbf16>
    %cst_43 = arith.constant dense<0.000000e+00> : vector<128x32xf32>
    %39 = tpu.matmul %2, %38, %cst_43 {dimension_numbers = #tpu.dot_dimension_numbers<[1], [0], [0], [1], [0, 0, 1, 1], [], []>} : vector<128x32xbf16>, vector<32x32xbf16>, vector<128x32xf32> -> vector<128x32xf32>
    %c0_44 = arith.constant 0 : index
    %c0_45 = arith.constant 0 : index
    %40 = vector.load %arg20[%c0_44, %c0_45] : memref<1x32xf32, #tpu.memory_space<vmem>>, vector<1x32xf32>
    %41 = vector.broadcast %40 : vector<1x32xf32> to vector<128x32xf32>
    %42 = arith.addf %39, %41 : vector<128x32xf32>
    %43 = vector.shape_cast %42 : vector<128x32xf32> to vector<16x8x32xf32>
    %c0_46 = arith.constant 0 : index
    %c0_47 = arith.constant 0 : index
    %c0_48 = arith.constant 0 : index
    %44 = vector.load %arg35[%c0_46, %c0_47, %c0_48] : memref<16x8x32xf32, #tpu.memory_space<vmem>>, vector<16x8x32xf32>
    tpu.vector_store %arg35[%c0_46, %c0_47, %c0_48], %43 {strides = array<i32>} : memref<16x8x32xf32, #tpu.memory_space<vmem>>, vector<16x8x32xf32>,
    %c0_49 = arith.constant 0 : index
    %c0_50 = arith.constant 0 : index
    %45 = vector.load %arg5[%c0_49, %c0_50] : memref<32x32xbf16, #tpu.memory_space<vmem>>, vector<32x32xbf16>
    %c0_51 = arith.constant 0 : index
    %c0_52 = arith.constant 0 : index
    %46 = vector.load %arg6[%c0_51, %c0_52] : memref<32x32xbf16, #tpu.memory_space<vmem>>, vector<32x32xbf16>
    %c0_53 = arith.constant 0 : index
    %c0_54 = arith.constant 0 : index
    %47 = vector.load %arg7[%c0_53, %c0_54] : memref<32x32xbf16, #tpu.memory_space<vmem>>, vector<32x32xbf16>
    %c0_55 = arith.constant 0 : index
    %c0_56 = arith.constant 0 : index
    %48 = vector.load %arg11[%c0_55, %c0_56] : memref<1x32xf32, #tpu.memory_space<vmem>>, vector<1x32xf32>
    %cst_57 = arith.constant 0.000000e+00 : f32
    %49 = vector.broadcast %cst_57 : f32 to vector<8x32xf32>
    %c0_i32 = arith.constant 0 : i32
    %c16_i32 = arith.constant 16 : i32
    %50 = arith.addi %c0_i32, %c16_i32 : i32
    %c1_i32 = arith.constant 1 : i32
    %51 = scf.for %arg39 = %c0_i32 to %50 step %c1_i32 iter_args(%arg40 = %49) -> (vector<8x32xf32>)  : i32 {
      %106 = arith.truncf %arg40 : vector<8x32xf32> to vector<8x32xbf16>
      %cst_111 = arith.constant dense<0.000000e+00> : vector<8x32xf32>
      %107 = tpu.matmul %106, %45, %cst_111 {dimension_numbers = #tpu.dot_dimension_numbers<[1], [0], [0], [1], [0, 0, 1, 1], [], []>} : vector<8x32xbf16>, vector<32x32xbf16>, vector<8x32xf32> -> vector<8x32xf32>
      %cst_112 = arith.constant dense<0.000000e+00> : vector<8x32xf32>
      %108 = tpu.matmul %106, %46, %cst_112 {dimension_numbers = #tpu.dot_dimension_numbers<[1], [0], [0], [1], [0, 0, 1, 1], [], []>} : vector<8x32xbf16>, vector<32x32xbf16>, vector<8x32xf32> -> vector<8x32xf32>
      %cst_113 = arith.constant dense<0.000000e+00> : vector<8x32xf32>
      %109 = tpu.matmul %106, %47, %cst_113 {dimension_numbers = #tpu.dot_dimension_numbers<[1], [0], [0], [1], [0, 0, 1, 1], [], []>} : vector<8x32xbf16>, vector<32x32xbf16>, vector<8x32xf32> -> vector<8x32xf32>
      %110 = arith.index_cast %arg39 : i32 to index
      %c0_114 = arith.constant 0 : index
      %c0_115 = arith.constant 0 : index
      %111 = vector.load %arg30[%110, %c0_114, %c0_115] : memref<16x8x32xf32, #tpu.memory_space<vmem>>, vector<1x8x32xf32>
      %112 = vector.shape_cast %111 : vector<1x8x32xf32> to vector<8x32xf32>
      %113 = arith.addf %112, %107 : vector<8x32xf32>
      %114 = arith.negf %113 : vector<8x32xf32>
      %115 = math.exp %114 : vector<8x32xf32>
      %cst_116 = arith.constant 1.000000e+00 : f32
      %116 = vector.broadcast %cst_116 : f32 to vector<8x32xf32>
      %117 = arith.addf %116, %115 : vector<8x32xf32>
      %118 = arith.divf %116, %117 : vector<8x32xf32>
      %119 = arith.index_cast %arg39 : i32 to index
      %c0_117 = arith.constant 0 : index
      %c0_118 = arith.constant 0 : index
      %120 = vector.load %arg31[%119, %c0_117, %c0_118] : memref<16x8x32xf32, #tpu.memory_space<vmem>>, vector<1x8x32xf32>
      %121 = vector.shape_cast %120 : vector<1x8x32xf32> to vector<8x32xf32>
      %122 = arith.addf %121, %108 : vector<8x32xf32>
      %123 = arith.negf %122 : vector<8x32xf32>
      %124 = math.exp %123 : vector<8x32xf32>
      %cst_119 = arith.constant 1.000000e+00 : f32
      %125 = vector.broadcast %cst_119 : f32 to vector<8x32xf32>
      %126 = arith.addf %125, %124 : vector<8x32xf32>
      %127 = arith.divf %125, %126 : vector<8x32xf32>
      %128 = arith.index_cast %arg39 : i32 to index
      %c0_120 = arith.constant 0 : index
      %c0_121 = arith.constant 0 : index
      %129 = vector.load %arg32[%128, %c0_120, %c0_121] : memref<16x8x32xf32, #tpu.memory_space<vmem>>, vector<1x8x32xf32>
      %130 = vector.shape_cast %129 : vector<1x8x32xf32> to vector<8x32xf32>
      %131 = vector.broadcast %48 : vector<1x32xf32> to vector<8x32xf32>
      %132 = arith.addf %109, %131 : vector<8x32xf32>
      %133 = arith.mulf %118, %132 : vector<8x32xf32>
      %134 = arith.addf %130, %133 : vector<8x32xf32>
      %135 = math.tanh %134 : vector<8x32xf32>
      %cst_122 = arith.constant 1.000000e+00 : f32
      %136 = vector.broadcast %cst_122 : f32 to vector<8x32xf32>
      %137 = arith.subf %136, %127 : vector<8x32xf32>
      %138 = arith.mulf %137, %135 : vector<8x32xf32>
      %139 = arith.mulf %127, %arg40 : vector<8x32xf32>
      %140 = arith.addf %138, %139 : vector<8x32xf32>
      %141 = arith.index_cast %arg39 : i32 to index
      %c0_123 = arith.constant 0 : index
      %c0_124 = arith.constant 0 : index
      %142 = vector.load %arg36[%141, %c0_123, %c0_124] : memref<16x8x32xf32, #tpu.memory_space<vmem>>, vector<1x8x32xf32>
      %143 = vector.shape_cast %142 : vector<1x8x32xf32> to vector<8x32xf32>
      %144 = vector.shape_cast %140 : vector<8x32xf32> to vector<1x8x32xf32>
      tpu.vector_store %arg36[%141, %c0_123, %c0_124], %144 {strides = array<i32>} : memref<16x8x32xf32, #tpu.memory_space<vmem>>, vector<1x8x32xf32>,
      scf.yield %140 : vector<8x32xf32>
    }
    %c16_i32_58 = arith.constant 16 : i32
    %c0_59 = arith.constant 0 : index
    %c0_60 = arith.constant 0 : index
    %52 = vector.load %arg15[%c0_59, %c0_60] : memref<32x32xbf16, #tpu.memory_space<vmem>>, vector<32x32xbf16>
    %c0_61 = arith.constant 0 : index
    %c0_62 = arith.constant 0 : index
    %53 = vector.load %arg16[%c0_61, %c0_62] : memref<32x32xbf16, #tpu.memory_space<vmem>>, vector<32x32xbf16>
    %c0_63 = arith.constant 0 : index
    %c0_64 = arith.constant 0 : index
    %54 = vector.load %arg17[%c0_63, %c0_64] : memref<32x32xbf16, #tpu.memory_space<vmem>>, vector<32x32xbf16>
    %c0_65 = arith.constant 0 : index
    %c0_66 = arith.constant 0 : index
    %55 = vector.load %arg21[%c0_65, %c0_66] : memref<1x32xf32, #tpu.memory_space<vmem>>, vector<1x32xf32>
    %cst_67 = arith.constant 0.000000e+00 : f32
    %56 = vector.broadcast %cst_67 : f32 to vector<8x32xf32>
    %c0_i32_68 = arith.constant 0 : i32
    %c16_i32_69 = arith.constant 16 : i32
    %57 = arith.addi %c0_i32_68, %c16_i32_69 : i32
    %c1_i32_70 = arith.constant 1 : i32
    %58 = scf.for %arg39 = %c0_i32_68 to %57 step %c1_i32_70 iter_args(%arg40 = %56) -> (vector<8x32xf32>)  : i32 {
      %c15_i32_111 = arith.constant 15 : i32
      %106 = arith.subi %c15_i32_111, %arg39 : i32
      %107 = arith.truncf %arg40 : vector<8x32xf32> to vector<8x32xbf16>
      %cst_112 = arith.constant dense<0.000000e+00> : vector<8x32xf32>
      %108 = tpu.matmul %107, %52, %cst_112 {dimension_numbers = #tpu.dot_dimension_numbers<[1], [0], [0], [1], [0, 0, 1, 1], [], []>} : vector<8x32xbf16>, vector<32x32xbf16>, vector<8x32xf32> -> vector<8x32xf32>
      %cst_113 = arith.constant dense<0.000000e+00> : vector<8x32xf32>
      %109 = tpu.matmul %107, %53, %cst_113 {dimension_numbers = #tpu.dot_dimension_numbers<[1], [0], [0], [1], [0, 0, 1, 1], [], []>} : vector<8x32xbf16>, vector<32x32xbf16>, vector<8x32xf32> -> vector<8x32xf32>
      %cst_114 = arith.constant dense<0.000000e+00> : vector<8x32xf32>
      %110 = tpu.matmul %107, %54, %cst_114 {dimension_numbers = #tpu.dot_dimension_numbers<[1], [0], [0], [1], [0, 0, 1, 1], [], []>} : vector<8x32xbf16>, vector<32x32xbf16>, vector<8x32xf32> -> vector<8x32xf32>
      %111 = arith.index_cast %106 : i32 to index
      %c0_115 = arith.constant 0 : index
      %c0_116 = arith.constant 0 : index
      %112 = vector.load %arg33[%111, %c0_115, %c0_116] : memref<16x8x32xf32, #tpu.memory_space<vmem>>, vector<1x8x32xf32>
      %113 = vector.shape_cast %112 : vector<1x8x32xf32> to vector<8x32xf32>
      %114 = arith.addf %113, %108 : vector<8x32xf32>
      %115 = arith.negf %114 : vector<8x32xf32>
      %116 = math.exp %115 : vector<8x32xf32>
      %cst_117 = arith.constant 1.000000e+00 : f32
      %117 = vector.broadcast %cst_117 : f32 to vector<8x32xf32>
      %118 = arith.addf %117, %116 : vector<8x32xf32>
      %119 = arith.divf %117, %118 : vector<8x32xf32>
      %120 = arith.index_cast %106 : i32 to index
      %c0_118 = arith.constant 0 : index
      %c0_119 = arith.constant 0 : index
      %121 = vector.load %arg34[%120, %c0_118, %c0_119] : memref<16x8x32xf32, #tpu.memory_space<vmem>>, vector<1x8x32xf32>
      %122 = vector.shape_cast %121 : vector<1x8x32xf32> to vector<8x32xf32>
      %123 = arith.addf %122, %109 : vector<8x32xf32>
      %124 = arith.negf %123 : vector<8x32xf32>
      %125 = math.exp %124 : vector<8x32xf32>
      %cst_120 = arith.constant 1.000000e+00 : f32
      %126 = vector.broadcast %cst_120 : f32 to vector<8x32xf32>
      %127 = arith.addf %126, %125 : vector<8x32xf32>
      %128 = arith.divf %126, %127 : vector<8x32xf32>
      %129 = arith.index_cast %106 : i32 to index
      %c0_121 = arith.constant 0 : index
      %c0_122 = arith.constant 0 : index
      %130 = vector.load %arg35[%129, %c0_121, %c0_122] : memref<16x8x32xf32, #tpu.memory_space<vmem>>, vector<1x8x32xf32>
      %131 = vector.shape_cast %130 : vector<1x8x32xf32> to vector<8x32xf32>
      %132 = vector.broadcast %55 : vector<1x32xf32> to vector<8x32xf32>
      %133 = arith.addf %110, %132 : vector<8x32xf32>
      %134 = arith.mulf %119, %133 : vector<8x32xf32>
      %135 = arith.addf %131, %134 : vector<8x32xf32>
      %136 = math.tanh %135 : vector<8x32xf32>
      %cst_123 = arith.constant 1.000000e+00 : f32
      %137 = vector.broadcast %cst_123 : f32 to vector<8x32xf32>
      %138 = arith.subf %137, %128 : vector<8x32xf32>
      %139 = arith.mulf %138, %136 : vector<8x32xf32>
      %140 = arith.mulf %128, %arg40 : vector<8x32xf32>
      %141 = arith.addf %139, %140 : vector<8x32xf32>
      %142 = arith.index_cast %106 : i32 to index
      %c0_124 = arith.constant 0 : index
      %c0_125 = arith.constant 0 : index
      %143 = vector.load %arg37[%142, %c0_124, %c0_125] : memref<16x8x32xf32, #tpu.memory_space<vmem>>, vector<1x8x32xf32>
      %144 = vector.shape_cast %143 : vector<1x8x32xf32> to vector<8x32xf32>
      %145 = vector.shape_cast %141 : vector<8x32xf32> to vector<1x8x32xf32>
      tpu.vector_store %arg37[%142, %c0_124, %c0_125], %145 {strides = array<i32>} : memref<16x8x32xf32, #tpu.memory_space<vmem>>, vector<1x8x32xf32>,
      scf.yield %141 : vector<8x32xf32>
    }
    %c16_i32_71 = arith.constant 16 : i32
    %c0_72 = arith.constant 0 : index
    %c0_73 = arith.constant 0 : index
    %c0_74 = arith.constant 0 : index
    %59 = vector.load %arg36[%c0_72, %c0_73, %c0_74] : memref<16x8x32xf32, #tpu.memory_space<vmem>>, vector<16x8x32xf32>
    %60 = vector.shape_cast %59 : vector<16x8x32xf32> to vector<128x32xf32>
    %61 = arith.truncf %60 : vector<128x32xf32> to vector<128x32xbf16>
    %c0_75 = arith.constant 0 : index
    %c0_76 = arith.constant 0 : index
    %c0_77 = arith.constant 0 : index
    %62 = vector.load %arg37[%c0_75, %c0_76, %c0_77] : memref<16x8x32xf32, #tpu.memory_space<vmem>>, vector<16x8x32xf32>
    %63 = vector.shape_cast %62 : vector<16x8x32xf32> to vector<128x32xf32>
    %64 = arith.truncf %63 : vector<128x32xf32> to vector<128x32xbf16>
    %c0_78 = arith.constant 0 : index
    %c0_79 = arith.constant 0 : index
    %65 = vector.load %arg22[%c0_78, %c0_79] : memref<32x5xbf16, #tpu.memory_space<vmem>>, vector<32x5xbf16>
    %cst_80 = arith.constant dense<0.000000e+00> : vector<128x5xf32>
    %66 = tpu.matmul %61, %65, %cst_80 {dimension_numbers = #tpu.dot_dimension_numbers<[1], [0], [0], [1], [0, 0, 1, 1], [], []>} : vector<128x32xbf16>, vector<32x5xbf16>, vector<128x5xf32> -> vector<128x5xf32>
    %c0_81 = arith.constant 0 : index
    %c0_82 = arith.constant 0 : index
    %67 = vector.load %arg23[%c0_81, %c0_82] : memref<32x5xbf16, #tpu.memory_space<vmem>>, vector<32x5xbf16>
    %cst_83 = arith.constant dense<0.000000e+00> : vector<128x5xf32>
    %68 = tpu.matmul %64, %67, %cst_83 {dimension_numbers = #tpu.dot_dimension_numbers<[1], [0], [0], [1], [0, 0, 1, 1], [], []>} : vector<128x32xbf16>, vector<32x5xbf16>, vector<128x5xf32> -> vector<128x5xf32>
    %69 = arith.addf %66, %68 : vector<128x5xf32>
    %c0_84 = arith.constant 0 : index
    %c0_85 = arith.constant 0 : index
    %70 = vector.load %arg24[%c0_84, %c0_85] : memref<1x5xf32, #tpu.memory_space<vmem>>, vector<1x5xf32>
    %71 = vector.broadcast %70 : vector<1x5xf32> to vector<128x5xf32>
    %72 = arith.addf %69, %71 : vector<128x5xf32>
    %73 = vector.shape_cast %72 : vector<128x5xf32> to vector<16x8x5xf32>
    %c0_86 = arith.constant 0 : index
    %c0_87 = arith.constant 0 : index
    %c0_88 = arith.constant 0 : index
    %74 = vector.load %arg28[%c0_86, %c0_87, %c0_88] : memref<16x8x5xf32, #tpu.memory_space<vmem>>, vector<16x8x5xf32>
    tpu.vector_store %arg28[%c0_86, %c0_87, %c0_88], %73 {strides = array<i32>} : memref<16x8x5xf32, #tpu.memory_space<vmem>>, vector<16x8x5xf32>,
    %c0_89 = arith.constant 0 : index
    %c0_90 = arith.constant 0 : index
    %75 = vector.load %arg27[%c0_89, %c0_90] : memref<5x5xf32, #tpu.memory_space<vmem>>, vector<5x5xf32>
    %76 = tpu.iota {dimensions = array<i32: 1>} : vector<8x5xi32>
    %77 = tpu.iota {dimensions = array<i32: 2>} : vector<8x5x5xi32>
    %c0_91 = arith.constant 0 : index
    %c0_92 = arith.constant 0 : index
    %78 = vector.load %arg25[%c0_91, %c0_92] : memref<1x5xf32, #tpu.memory_space<vmem>>, vector<1x5xf32>
    %c0_93 = arith.constant 0 : index
    %c0_94 = arith.constant 0 : index
    %c0_95 = arith.constant 0 : index
    %79 = vector.load %arg28[%c0_93, %c0_94, %c0_95] : memref<16x8x5xf32, #tpu.memory_space<vmem>>, vector<1x8x5xf32>
    %80 = vector.shape_cast %79 : vector<1x8x5xf32> to vector<8x5xf32>
    %81 = vector.broadcast %78 : vector<1x5xf32> to vector<8x5xf32>
    %82 = arith.addf %81, %80 : vector<8x5xf32>
    %c1_i32_96 = arith.constant 1 : i32
    %c15_i32 = arith.constant 15 : i32
    %83 = arith.addi %c1_i32_96, %c15_i32 : i32
    %c1_i32_97 = arith.constant 1 : i32
    %84 = scf.for %arg39 = %c1_i32_96 to %83 step %c1_i32_97 iter_args(%arg40 = %82) -> (vector<8x5xf32>)  : i32 {
      %106 = arith.index_cast %arg39 : i32 to index
      %c0_111 = arith.constant 0 : index
      %c0_112 = arith.constant 0 : index
      %107 = vector.load %arg28[%106, %c0_111, %c0_112] : memref<16x8x5xf32, #tpu.memory_space<vmem>>, vector<1x8x5xf32>
      %108 = vector.shape_cast %107 : vector<1x8x5xf32> to vector<8x5xf32>
      %109 = vector.shape_cast %arg40 : vector<8x5xf32> to vector<8x1x5xf32>
      %110 = vector.shape_cast %75 : vector<5x5xf32> to vector<1x5x5xf32>
      %111 = vector.broadcast %109 : vector<8x1x5xf32> to vector<8x5x5xf32>
      %112 = vector.broadcast %110 : vector<1x5x5xf32> to vector<8x5x5xf32>
      %113 = arith.addf %111, %112 : vector<8x5x5xf32>
      %114 = vector.shape_cast %108 : vector<8x5xf32> to vector<8x5x1xf32>
      %115 = vector.broadcast %114 : vector<8x5x1xf32> to vector<8x5x5xf32>
      %116 = arith.addf %113, %115 : vector<8x5x5xf32>
      %cst_113 = arith.constant dense<0xFF800000> : vector<8x5xf32>
      %117 = vector.multi_reduction <maximumf>, %116, %cst_113 [2] : vector<8x5x5xf32> to vector<8x5xf32>
      %118 = vector.shape_cast %117 : vector<8x5xf32> to vector<8x5x1xf32>
      %119 = vector.broadcast %118 : vector<8x5x1xf32> to vector<8x5x5xf32>
      %120 = arith.cmpf oeq, %116, %119 : vector<8x5x5xf32>
      %c5_i32_114 = arith.constant 5 : i32
      %121 = vector.broadcast %c5_i32_114 : i32 to vector<8x5x5xi32>
      %122 = arith.select %120, %77, %121 : vector<8x5x5xi1>, vector<8x5x5xi32>
      %cst_115 = arith.constant dense<2147483647> : vector<8x5xi32>
      %123 = vector.multi_reduction <minsi>, %122, %cst_115 [2] : vector<8x5x5xi32> to vector<8x5xi32>
      %124 = arith.index_cast %arg39 : i32 to index
      %c0_116 = arith.constant 0 : index
      %c0_117 = arith.constant 0 : index
      %125 = vector.load %arg38[%124, %c0_116, %c0_117] : memref<16x8x5xi32, #tpu.memory_space<vmem>>, vector<1x8x5xi32>
      %126 = vector.shape_cast %125 : vector<1x8x5xi32> to vector<8x5xi32>
      %127 = vector.shape_cast %123 : vector<8x5xi32> to vector<1x8x5xi32>
      tpu.vector_store %arg38[%124, %c0_116, %c0_117], %127 {strides = array<i32>} : memref<16x8x5xi32, #tpu.memory_space<vmem>>, vector<1x8x5xi32>,
      scf.yield %117 : vector<8x5xf32>
    }
    %c15_i32_98 = arith.constant 15 : i32
    %c0_99 = arith.constant 0 : index
    %c0_100 = arith.constant 0 : index
    %85 = vector.load %arg26[%c0_99, %c0_100] : memref<1x5xf32, #tpu.memory_space<vmem>>, vector<1x5xf32>
    %86 = vector.broadcast %85 : vector<1x5xf32> to vector<8x5xf32>
    %87 = arith.addf %84, %86 : vector<8x5xf32>
    %cst_101 = arith.constant dense<0xFF800000> : vector<8xf32>
    %88 = vector.multi_reduction <maximumf>, %87, %cst_101 [1] : vector<8x5xf32> to vector<8xf32>
    %89 = vector.shape_cast %88 : vector<8xf32> to vector<8x1xf32>
    %90 = vector.broadcast %89 : vector<8x1xf32> to vector<8x5xf32>
    %91 = arith.cmpf oeq, %87, %90 : vector<8x5xf32>
    %c5_i32 = arith.constant 5 : i32
    %92 = vector.broadcast %c5_i32 : i32 to vector<8x5xi32>
    %93 = arith.select %91, %76, %92 : vector<8x5xi1>, vector<8x5xi32>
    %cst_102 = arith.constant dense<2147483647> : vector<8xi32>
    %94 = vector.multi_reduction <minsi>, %93, %cst_102 [1] : vector<8x5xi32> to vector<8xi32>
    %95 = vector.shape_cast %94 : vector<8xi32> to vector<8x1xi32>
    %96 = tpu.iota {dimensions = array<i32: 1>} : vector<8x16xi32>
    %c15_i32_103 = arith.constant 15 : i32
    %97 = vector.broadcast %c15_i32_103 : i32 to vector<8x16xi32>
    %98 = arith.cmpi eq, %96, %97 : vector<8x16xi32>
    %99 = vector.shape_cast %95 : vector<8x1xi32> to vector<8x1xi32>
    %100 = vector.broadcast %99 : vector<8x1xi32> to vector<8x16xi32>
    %c0_i32_104 = arith.constant 0 : i32
    %101 = vector.broadcast %c0_i32_104 : i32 to vector<8x16xi32>
    %102 = arith.select %98, %100, %101 : vector<8x16xi1>, vector<8x16xi32>
    %c0_i32_105 = arith.constant 0 : i32
    %c15_i32_106 = arith.constant 15 : i32
    %103 = arith.addi %c0_i32_105, %c15_i32_106 : i32
    %c1_i32_107 = arith.constant 1 : i32
    %104:2 = scf.for %arg39 = %c0_i32_105 to %103 step %c1_i32_107 iter_args(%arg40 = %95, %arg41 = %102) -> (vector<8x1xi32>, vector<8x16xi32>)  : i32 {
      %c14_i32 = arith.constant 14 : i32
      %106 = arith.subi %c14_i32, %arg39 : i32
      %c1_i32_111 = arith.constant 1 : i32
      %107 = arith.addi %106, %c1_i32_111 : i32
      %108 = arith.index_cast %107 : i32 to index
      %c0_112 = arith.constant 0 : index
      %c0_113 = arith.constant 0 : index
      %109 = vector.load %arg38[%108, %c0_112, %c0_113] : memref<16x8x5xi32, #tpu.memory_space<vmem>>, vector<1x8x5xi32>
      %110 = vector.shape_cast %109 : vector<1x8x5xi32> to vector<8x5xi32>
      %111 = vector.broadcast %arg40 : vector<8x1xi32> to vector<8x5xi32>
      %112 = arith.cmpi eq, %76, %111 : vector<8x5xi32>
      %c0_i32_114 = arith.constant 0 : i32
      %113 = vector.broadcast %c0_i32_114 : i32 to vector<8x5xi32>
      %114 = arith.select %112, %110, %113 : vector<8x5xi1>, vector<8x5xi32>
      %cst_115 = arith.constant dense<0> : vector<8xi32>
      %115 = vector.multi_reduction <add>, %114, %cst_115 [1] : vector<8x5xi32> to vector<8xi32>
      %116 = vector.shape_cast %115 : vector<8xi32> to vector<8x1xi32>
      %117 = vector.broadcast %106 : i32 to vector<8x16xi32>
      %118 = arith.cmpi eq, %96, %117 : vector<8x16xi32>
      %119 = vector.shape_cast %116 : vector<8x1xi32> to vector<8x1xi32>
      %120 = vector.broadcast %119 : vector<8x1xi32> to vector<8x16xi32>
      %121 = arith.select %118, %120, %arg41 : vector<8x16xi1>, vector<8x16xi32>
      scf.yield %116, %121 : vector<8x1xi32>, vector<8x16xi32>
    }
    %c15_i32_108 = arith.constant 15 : i32
    %c0_109 = arith.constant 0 : index
    %c0_110 = arith.constant 0 : index
    %105 = vector.load %arg29[%c0_109, %c0_110] : memref<8x16xi32, #tpu.memory_space<vmem>>, vector<8x16xi32>
    tpu.vector_store %arg29[%c0_109, %c0_110], %104#1 {strides = array<i32>} : memref<8x16xi32, #tpu.memory_space<vmem>>, vector<8x16xi32>,
    return
  }
  func.func @transform_0(%arg0: i32) -> (i32, i32, i32) {
    %c0_i32 = arith.constant 0 : i32
    %c0_i32_0 = arith.constant 0 : i32
    %c0_i32_1 = arith.constant 0 : i32
    return %c0_i32, %arg0, %c0_i32_0 : i32, i32, i32
  }
  func.func @transform_1(%arg0: i32) -> (i32, i32) {
    %c0_i32 = arith.constant 0 : i32
    %c0_i32_0 = arith.constant 0 : i32
    %c0_i32_1 = arith.constant 0 : i32
    return %c0_i32, %c0_i32_0 : i32, i32
  }
  func.func @transform_2(%arg0: i32) -> (i32, i32) {
    %c0_i32 = arith.constant 0 : i32
    %c0_i32_0 = arith.constant 0 : i32
    %c0_i32_1 = arith.constant 0 : i32
    return %c0_i32, %c0_i32_0 : i32, i32
  }
  func.func @transform_3(%arg0: i32) -> (i32, i32) {
    %c0_i32 = arith.constant 0 : i32
    %c0_i32_0 = arith.constant 0 : i32
    %c0_i32_1 = arith.constant 0 : i32
    return %c0_i32, %c0_i32_0 : i32, i32
  }
  func.func @transform_4(%arg0: i32) -> (i32, i32) {
    %c0_i32 = arith.constant 0 : i32
    %c0_i32_0 = arith.constant 0 : i32
    %c0_i32_1 = arith.constant 0 : i32
    return %c0_i32, %c0_i32_0 : i32, i32
  }
  func.func @transform_5(%arg0: i32) -> (i32, i32) {
    %c0_i32 = arith.constant 0 : i32
    %c0_i32_0 = arith.constant 0 : i32
    %c0_i32_1 = arith.constant 0 : i32
    return %c0_i32, %c0_i32_0 : i32, i32
  }
  func.func @transform_6(%arg0: i32) -> (i32, i32) {
    %c0_i32 = arith.constant 0 : i32
    %c0_i32_0 = arith.constant 0 : i32
    %c0_i32_1 = arith.constant 0 : i32
    return %c0_i32, %c0_i32_0 : i32, i32
  }
  func.func @transform_7(%arg0: i32) -> (i32, i32) {
    %c0_i32 = arith.constant 0 : i32
    %c0_i32_0 = arith.constant 0 : i32
    %c0_i32_1 = arith.constant 0 : i32
    return %c0_i32, %c0_i32_0 : i32, i32
  }
  func.func @transform_8(%arg0: i32) -> (i32, i32) {
    %c0_i32 = arith.constant 0 : i32
    %c0_i32_0 = arith.constant 0 : i32
    %c0_i32_1 = arith.constant 0 : i32
    return %c0_i32, %c0_i32_0 : i32, i32
  }
  func.func @transform_9(%arg0: i32) -> (i32, i32) {
    %c0_i32 = arith.constant 0 : i32
    %c0_i32_0 = arith.constant 0 : i32
    %c0_i32_1 = arith.constant 0 : i32
    return %c0_i32, %c0_i32_0 : i32, i32
  }
  func.func @transform_10(%arg0: i32) -> (i32, i32) {
    %c0_i32 = arith.constant 0 : i32
    %c0_i32_0 = arith.constant 0 : i32
    %c0_i32_1 = arith.constant 0 : i32
    return %c0_i32, %c0_i32_0 : i32, i32
  }
  func.func @transform_11(%arg0: i32) -> (i32, i32) {
    %c0_i32 = arith.constant 0 : i32
    %c0_i32_0 = arith.constant 0 : i32
    %c0_i32_1 = arith.constant 0 : i32
    return %c0_i32, %c0_i32_0 : i32, i32
  }
  func.func @transform_12(%arg0: i32) -> (i32, i32) {
    %c0_i32 = arith.constant 0 : i32
    %c0_i32_0 = arith.constant 0 : i32
    %c0_i32_1 = arith.constant 0 : i32
    return %c0_i32, %c0_i32_0 : i32, i32
  }
  func.func @transform_13(%arg0: i32) -> (i32, i32) {
    %c0_i32 = arith.constant 0 : i32
    %c0_i32_0 = arith.constant 0 : i32
    %c0_i32_1 = arith.constant 0 : i32
    return %c0_i32, %c0_i32_0 : i32, i32
  }
  func.func @transform_14(%arg0: i32) -> (i32, i32) {
    %c0_i32 = arith.constant 0 : i32
    %c0_i32_0 = arith.constant 0 : i32
    %c0_i32_1 = arith.constant 0 : i32
    return %c0_i32, %c0_i32_0 : i32, i32
  }
  func.func @transform_15(%arg0: i32) -> (i32, i32) {
    %c0_i32 = arith.constant 0 : i32
    %c0_i32_0 = arith.constant 0 : i32
    %c0_i32_1 = arith.constant 0 : i32
    return %c0_i32, %c0_i32_0 : i32, i32
  }
  func.func @transform_16(%arg0: i32) -> (i32, i32) {
    %c0_i32 = arith.constant 0 : i32
    %c0_i32_0 = arith.constant 0 : i32
    %c0_i32_1 = arith.constant 0 : i32
    return %c0_i32, %c0_i32_0 : i32, i32
  }
  func.func @transform_17(%arg0: i32) -> (i32, i32) {
    %c0_i32 = arith.constant 0 : i32
    %c0_i32_0 = arith.constant 0 : i32
    %c0_i32_1 = arith.constant 0 : i32
    return %c0_i32, %c0_i32_0 : i32, i32
  }
  func.func @transform_18(%arg0: i32) -> (i32, i32) {
    %c0_i32 = arith.constant 0 : i32
    %c0_i32_0 = arith.constant 0 : i32
    %c0_i32_1 = arith.constant 0 : i32
    return %c0_i32, %c0_i32_0 : i32, i32
  }
  func.func @transform_19(%arg0: i32) -> (i32, i32) {
    %c0_i32 = arith.constant 0 : i32
    %c0_i32_0 = arith.constant 0 : i32
    %c0_i32_1 = arith.constant 0 : i32
    return %c0_i32, %c0_i32_0 : i32, i32
  }
  func.func @transform_20(%arg0: i32) -> (i32, i32) {
    %c0_i32 = arith.constant 0 : i32
    %c0_i32_0 = arith.constant 0 : i32
    %c0_i32_1 = arith.constant 0 : i32
    return %c0_i32, %c0_i32_0 : i32, i32
  }
  func.func @transform_21(%arg0: i32) -> (i32, i32) {
    %c0_i32 = arith.constant 0 : i32
    %c0_i32_0 = arith.constant 0 : i32
    %c0_i32_1 = arith.constant 0 : i32
    return %c0_i32, %c0_i32_0 : i32, i32
  }
  func.func @transform_22(%arg0: i32) -> (i32, i32) {
    %c0_i32 = arith.constant 0 : i32
    %c0_i32_0 = arith.constant 0 : i32
    %c0_i32_1 = arith.constant 0 : i32
    return %c0_i32, %c0_i32_0 : i32, i32
  }
  func.func @transform_23(%arg0: i32) -> (i32, i32) {
    %c0_i32 = arith.constant 0 : i32
    %c0_i32_0 = arith.constant 0 : i32
    %c0_i32_1 = arith.constant 0 : i32
    return %c0_i32, %c0_i32_0 : i32, i32
  }
  func.func @transform_24(%arg0: i32) -> (i32, i32) {
    %c0_i32 = arith.constant 0 : i32
    %c0_i32_0 = arith.constant 0 : i32
    %c0_i32_1 = arith.constant 0 : i32
    return %c0_i32, %c0_i32_0 : i32, i32
  }
  func.func @transform_25(%arg0: i32) -> (i32, i32) {
    %c0_i32 = arith.constant 0 : i32
    %c0_i32_0 = arith.constant 0 : i32
    %c0_i32_1 = arith.constant 0 : i32
    return %c0_i32, %c0_i32_0 : i32, i32
  }
  func.func @transform_26(%arg0: i32) -> (i32, i32) {
    %c0_i32 = arith.constant 0 : i32
    %c0_i32_0 = arith.constant 0 : i32
    %c0_i32_1 = arith.constant 0 : i32
    return %c0_i32, %c0_i32_0 : i32, i32
  }
  func.func @transform_27(%arg0: i32) -> (i32, i32, i32) {
    %c0_i32 = arith.constant 0 : i32
    %c0_i32_0 = arith.constant 0 : i32
    %c0_i32_1 = arith.constant 0 : i32
    return %c0_i32, %arg0, %c0_i32_0 : i32, i32, i32
  }
  func.func @transform_28(%arg0: i32) -> (i32, i32) {
    %c0_i32 = arith.constant 0 : i32
    %c0_i32_0 = arith.constant 0 : i32
    return %arg0, %c0_i32 : i32, i32
  }
}

</mosaic_0001>

<bundles_post_ra>
// kernel: bigru_crf_decode.1
= control target key start
LH: loop header
LB: loop body
LE: loop exit
PB: predicated region body
PF: predicated region fallthrough
CT: control target
= control target key end

     0   :  { %s5232_s0 = inlined_call_operand.vmem [shape: f32[16,16,32], index: 0, kind: input, shape index: {}]   ;;  %s5233_s1 = inlined_call_operand.vmem [shape: bf16[32,32], index: 1, kind: input, shape index: {}]   ;;  %s5234_s2 = inlined_call_operand.vmem [shape: bf16[32,32], index: 2, kind: input, shape index: {}]   ;;  %s5235_s3 = inlined_call_operand.vmem [shape: bf16[32,32], index: 3, kind: input, shape index: {}]   ;;  %s5236_s4 = inlined_call_operand.vmem [shape: bf16[32,32], index: 4, kind: input, shape index: {}]   ;;  %s5237_s5 = inlined_call_operand.vmem [shape: bf16[32,32], index: 5, kind: input, shape index: {}]   ;;  %s5238_s6 = inlined_call_operand.vmem [shape: bf16[32,32], index: 6, kind: input, shape index: {}]   ;;  %s5239_s7 = inlined_call_operand.vmem [shape: f32[1,32], index: 7, kind: input, shape index: {}]   ;;  %s5240_s8 = inlined_call_operand.vmem [shape: f32[1,32], index: 8, kind: input, shape index: {}]   ;;  %s5241_s9 = inlined_call_operand.vmem [shape: f32[1,32], index: 9, kind: input, shape index: {}]   ;;  %s5242_s10 = inlined_call_operand.vmem [shape: f32[1,32], index: 10, kind: input, shape index: {}]   ;;  %s5243_s11 = inlined_call_operand.vmem [shape: bf16[32,32], index: 11, kind: input, shape index: {}]   ;;  %s5244_s12 = inlined_call_operand.vmem [shape: bf16[32,32], index: 12, kind: input, shape index: {}]   ;;  %s5245_s13 = inlined_call_operand.vmem [shape: bf16[32,32], index: 13, kind: input, shape index: {}]   ;;  %s5246_s14 = inlined_call_operand.vmem [shape: bf16[32,32], index: 14, kind: input, shape index: {}]   ;;  %s5247_s15 = inlined_call_operand.vmem [shape: bf16[32,32], index: 15, kind: input, shape index: {}]   ;;  %s5248_s16 = inlined_call_operand.vmem [shape: bf16[32,32], index: 16, kind: input, shape index: {}]   ;;  %s5249_s17 = inlined_call_operand.vmem [shape: f32[1,32], index: 17, kind: input, shape index: {}]   ;;  %s5250_s18 = inlined_call_operand.vmem [shape: f32[1,32], index: 18, kind: input, shape index: {}]   ;;  %s5251_s19 = inlined_call_operand.vmem [shape: f32[1,32], index: 19, kind: input, shape index: {}]   ;;  %s5252_s20 = inlined_call_operand.vmem [shape: f32[1,32], index: 20, kind: input, shape index: {}]   ;;  %s5253_s21 = inlined_call_operand.vmem [shape: bf16[32,5], index: 21, kind: input, shape index: {}]   ;;  %s5254_s22 = inlined_call_operand.vmem [shape: bf16[32,5], index: 22, kind: input, shape index: {}]   ;;  %s5255_s23 = inlined_call_operand.vmem [shape: f32[1,5], index: 23, kind: input, shape index: {}]   ;;  %s5256_s24 = inlined_call_operand.vmem [shape: f32[1,5], index: 24, kind: input, shape index: {}]   ;;  %s5257_s25 = inlined_call_operand.vmem [shape: f32[1,5], index: 25, kind: input, shape index: {}]   ;;  %s5258_s26 = inlined_call_operand.vmem [shape: f32[5,5], index: 26, kind: input, shape index: {}]   ;;  %s5259_s27 = inlined_call_operand.vmem [shape: f32[16,16,5], index: 27, kind: output, shape index: {0}]   ;;  %s5260_s28 = inlined_call_operand.hbm [shape: s32[16,16], index: 28, kind: output, shape index: {1}]  }
   0x1   :  { %5285 = sst [smem:[#allocation23_spill]] %s5232_s0 }
   0x2   :  { %5286 = sst [smem:[#allocation24_spill]] %s5233_s1 }
   0x3   :  { %5287 = sst [smem:[#allocation25_spill]] %s5234_s2 }
   0x4   :  { %5288 = sst [smem:[#allocation26_spill]] %s5235_s3 }
   0x5   :  { %5289 = sst [smem:[#allocation27_spill]] %s5236_s4 }
   0x6   :  { %5290 = sst [smem:[#allocation28_spill]] %s5237_s5 }
   0x7   :  { %5291 = sst [smem:[#allocation29_spill]] %s5238_s6 }
   0x8   :  { %5292 = sst [smem:[#allocation30_spill]] %s5239_s7 }
   0x9   :  { %5293 = sst [smem:[#allocation31_spill]] %s5240_s8 }
   0xa   :  { %5294 = sst [smem:[#allocation32_spill]] %s5241_s9 }
   0xb   :  { %5295 = sst [smem:[#allocation33_spill]] %s5242_s10 }
   0xc   :  { %5296 = sst [smem:[#allocation34_spill]] %s5243_s11 }
   0xd   :  { %5297 = sst [smem:[#allocation35_spill]] %s5244_s12 }
   0xe   :  { %5298 = sst [smem:[#allocation36_spill]] %s5245_s13 }
   0xf   :  { %34 = vsyncpa [#allocation14], 0 }
  0x10   :  { %36 = vsyncpa [#allocation14 + $0x1], 0  ;;  %s4268_s8 = smov 0   ;;  %s4270_s5 = smov 0  }
  0x11   :  { %s4272_s9 = smov 0   ;;  %s4274_s30 = smov 0  }
  0x12 LB: > { %5299 = sst [smem:[#allocation16_spill]] %s4067_s8  ;;  %s4289_s3 = sadd.s32 4294967295, %s4079_s30   ;;  %s4079_s30 = sphi %s4274_s30, %s5332_s30   ;;  %s4075_s9 = sphi %s4272_s9, %s5335_s9   ;;  %s4071_s5 = sphi %s4270_s5, %s5334_s5   ;;  %s4067_s8 = sphi %s4268_s8, %s5333_s8  }
  0x13   : > { %5300 = sst [smem:[#allocation17_spill]] %s4071_s5  ;;  %s3375_s6 = sadd.s32 4294967294, %s4079_s30  }
  0x14   : > { %5301 = sst [smem:[#allocation18_spill]] %s4075_s9  ;;  %s4293_s10 = sadd.s32 1, %s4079_s30  }
  0x15   : > { %5302 = sst [smem:[#allocation19_spill]] %s4079_s30  ;;  %s49_s0 = sadd.s32 1, %s4075_s9 }
  0x16   : > { %5303 = sst [smem:[#allocation20_spill]] %s4293_s10  ;;  %s46_s11 = ssub.s32 %s4079_s30, %s4293_s10 }
  0x17   : > { %p56_p0 = scmp.ne.s32.totalorder %s4075_s9, %s4071_s5  ;;  %p47_p1 = scmp.eq.s32.totalorder %s46_s11, 0 }
  0x18   : > { %p57_p2 = scmp.eq.s32.totalorder %s4079_s30, 0  ;;  %p632_p3 = scmp.eq.s32.totalorder %s4289_s3, 1 }
  0x19   : > { %p663_p4 = scmp.ne.s32.totalorder %s4071_s5, %s4067_s8  ;;  %p664_p7 = scmp.eq.s32.totalorder %s3375_s6, 1 }
  0x1a   : > { %s4305_s29 = scalar_select %p47_p1, %s4075_s9, %s49_s0  }
  0x1b   : > { %p58_p5 = por %p57_p2, %p56_p0  ;;  %p4307_p6 = por %p632_p3, %p56_p0 }
  0x1c   : > { %5304 = sst [smem:[#allocation21_spill]] %s4305_s29  ;;  %p4311_p8 = por %p664_p7, %p663_p4 }
  0x1d   : > { %p5284_p9 = scmp.ge.s32.totalorder %s4079_s30, 2 }
  0x1e   : > { %s5306_s7 = scalar_select %p4311_p8, 1, 0 }
  0x1f   : > { %758 = sbr.rel (%p5284_p9) target bundleno = 56 (0x38), region = 120 }
  0x20   : > { %5307 = sst [smem:[#allocation22_spill]] %s5306_s7 }
  0x26   : > { %761 = sbr.rel (!%p58_p5) target bundleno = 56 (0x38), region = 124  ;;  %s763_s12 = sand.u32 (%p58_p5), 1, %s4075_s9  }
  0x27   : > { %s3379_s1 = sshll.u32 (%p58_p5), %s4079_s30, 3  ;;  %s3378_s4 = sshll.u32 (%p58_p5), %s763_s12, 7 }
  0x28   : > { %s5308_s29 = sld [smem:[#allocation23_spill]] (%p58_p5)  ;;  %s765_s6 = scalar_lea.vmem (%p58_p5), [#allocation11], %s3378_s4 }
  0x2e   : > { %s4323_s10 = scalar_lea.vmem %s5308_s29, %s3379_s1 }
  0x2f   : > { %v825_v0 = vld [vmem:[%s4323_s10] sm:$0xff]  ;;  %v827_v1 = vld [vmem:[%s4323_s10 + $0x10] sm:$0xff] }
  0x30   : > { %v829_v2 = vld [vmem:[%s4323_s10 + $0x20] sm:$0xff]  ;;  %826 = vst [vmem:[%s765_s6] sm:$0xff] %v825_v0  ;;  %828 = vst [vmem:[%s765_s6 + $0x8] sm:$0xff] %v827_v1  ;;  %v831_v3 = vld [vmem:[%s4323_s10 + $0x30] sm:$0xff] }
  0x31   : > { %830 = vst [vmem:[%s765_s6 + $0x10] sm:$0xff] %v829_v2  ;;  %v833_v4 = vld [vmem:[%s4323_s10 + $0x40] sm:$0xff]  ;;  %v835_v5 = vld [vmem:[%s4323_s10 + $0x50] sm:$0xff]  ;;  %832 = vst [vmem:[%s765_s6 + $0x18] sm:$0xff] %v831_v3 }
  0x32   : > { %834 = vst [vmem:[%s765_s6 + $0x20] sm:$0xff] %v833_v4  ;;  %836 = vst [vmem:[%s765_s6 + $0x28] sm:$0xff] %v835_v5  ;;  %v837_v6 = vld [vmem:[%s4323_s10 + $0x60] sm:$0xff]  ;;  %v839_v7 = vld [vmem:[%s4323_s10 + $0x70] sm:$0xff] }
  0x33   : > { %v841_v8 = vld [vmem:[%s4323_s10 + $0x80] sm:$0xff]  ;;  %838 = vst [vmem:[%s765_s6 + $0x30] sm:$0xff] %v837_v6  ;;  %840 = vst [vmem:[%s765_s6 + $0x38] sm:$0xff] %v839_v7  ;;  %v843_v9 = vld [vmem:[%s4323_s10 + $0x90] sm:$0xff] }
  0x34   : > { %842 = vst [vmem:[%s765_s6 + $0x40] sm:$0xff] %v841_v8  ;;  %v845_v10 = vld [vmem:[%s4323_s10 + $0xa0] sm:$0xff]  ;;  %v847_v11 = vld [vmem:[%s4323_s10 + $0xb0] sm:$0xff]  ;;  %844 = vst [vmem:[%s765_s6 + $0x48] sm:$0xff] %v843_v9 }
  0x35   : > { %846 = vst [vmem:[%s765_s6 + $0x50] sm:$0xff] %v845_v10  ;;  %848 = vst [vmem:[%s765_s6 + $0x58] sm:$0xff] %v847_v11  ;;  %v849_v12 = vld [vmem:[%s4323_s10 + $0xc0] sm:$0xff]  ;;  %v851_v13 = vld [vmem:[%s4323_s10 + $0xd0] sm:$0xff] }
  0x36   : > { %v853_v14 = vld [vmem:[%s4323_s10 + $0xe0] sm:$0xff]  ;;  %850 = vst [vmem:[%s765_s6 + $0x60] sm:$0xff] %v849_v12  ;;  %852 = vst [vmem:[%s765_s6 + $0x68] sm:$0xff] %v851_v13  ;;  %v855_v15 = vld [vmem:[%s4323_s10 + $0xf0] sm:$0xff] }
  0x37   : > { %854 = vst [vmem:[%s765_s6 + $0x70] sm:$0xff] %v853_v14  ;;  %856 = vst [vmem:[%s765_s6 + $0x78] sm:$0xff] %v855_v15 }
  0x38 PF: > { %p3380_p10 = scmp.ge.s32.totalorder %s4079_s30, 1  ;;  %p861_p11 = scmp.lt.s32.totalorder %s4079_s30, 3 }
  0x3a   : > { %p862_p12 = pnand %p3380_p10, %p861_p11 }
  0x3b   : > { %s5309_s1 = sld [smem:[#allocation24_spill]] (!%p862_p12)  ;;  %s4347_s4 = sand.u32 (!%p862_p12), 1, %s4071_s5   ;;  %vm993_vm0 = vcmask (!%p862_p12), 261120  }
  0x3c   : > { %865 = sbr.rel (%p862_p12) target bundleno = 2395 (0x95b), region = 162  ;;  %s5310_s9 = sld [smem:[#allocation25_spill]] (!%p862_p12) }
  0x3d   : > { %s5275_s10 = sshll.u32 (!%p862_p12), %s4347_s4, 7  ;;  %s5312_s11 = sld [smem:[#allocation26_spill]] (!%p862_p12) }
  0x3e   : > { %s4362_s0 = scalar_lea.vmem (!%p862_p12), [#allocation11], %s5275_s10  ;;  %s5313_s12 = sld [smem:[#allocation34_spill]] (!%p862_p12) }
  0x3f   : > { %v946_v20 = vld [vmem:[%s4362_s0] sm:$0xff] (!%p862_p12)  ;;  %v947_v21 = vld [vmem:[%s4362_s0 + $0x8] sm:$0xff] (!%p862_p12)  ;;  %v948_v22 = vld [vmem:[%s4362_s0 + $0x10] sm:$0xff] (!%p862_p12)  ;;  %s5314_s6 = sld [smem:[#allocation35_spill]] (!%p862_p12)  ;;  %s5315_s13 = sld [smem:[#allocation36_spill]] (!%p862_p12) }
  0x40   : > { %v4367_v23 = vpack.c.bf16 (!%p862_p12), %v947_v21, %v946_v20  ;;  %v949_v24 = vld [vmem:[%s4362_s0 + $0x18] sm:$0xff] (!%p862_p12)  ;;  %v950_v28 = vld [vmem:[%s4362_s0 + $0x20] sm:$0xff] (!%p862_p12)  ;;  %v951_v29 = vld [vmem:[%s4362_s0 + $0x28] sm:$0xff] (!%p862_p12)  ;;  %s5318_s29 = sld [smem:[#allocation28_spill]] (!%p862_p12)  ;;  %s5322_s5 = sld [smem:[#allocation31_spill]] (!%p862_p12) }
  0x41   : > { %v3945_v16 = vld [vmem:[%s5309_s1] sm:$0xff] (!%p862_p12)   ;;  %v3947_v18 = vld [vmem:[%s5309_s1 + $0x8] sm:$0xff] (!%p862_p12)   ;;  %v4370_v25 = vpack.c.bf16 (!%p862_p12), %v949_v24, %v948_v22  ;;  %v4384_v30 = vpack.c.bf16 (!%p862_p12), %v951_v29, %v950_v28  ;;  %v952_v31 = vld [vmem:[%s4362_s0 + $0x30] sm:$0xff] (!%p862_p12) }
  0x42   : > { %s5311_s7 = smov (!%p862_p12), %s5310_s9  ;;  %v3946_v17 = vld [vmem:[%s5310_s9] sm:$0xff] (!%p862_p12)   ;;  %3605 = vmatprep.subr.bf16.mxu0 (!%p862_p12), %v3945_v16  ;;  %3609 = vmatprep.mubr.msk.bf16.mxu0 (!%p862_p12), %vm993_vm0, %v4367_v23  ;;  %v953_v32 = vld [vmem:[%s4362_s0 + $0x38] sm:$0xff] (!%p862_p12)  ;;  %v955_v36 = vld [vmem:[%s4362_s0 + $0x48] sm:$0xff] (!%p862_p12)  ;;  %s5316_s9 = sld [smem:[#allocation27_spill]] (!%p862_p12) }
  0x43   : > { %3625 = vmatprep.subr.bf16.mxu1 %v3946_v17  ;;  %3606 = vmatpush3.bf16.msra.mxu0 %v3945_v16  ;;  %v3948_v19 = vld [vmem:[%s5311_s7 + $0x8] sm:$0xff]   ;;  %v3949_v26 = vld [vmem:[%s5312_s11] sm:$0xff]   ;;  %v965_v37 = vpack.c.bf16 %v953_v32, %v952_v31  ;;  %v956_v41 = vld [vmem:[%s4362_s0 + $0x50] sm:$0xff]  ;;  %s5320_s7 = sld [smem:[#allocation33_spill]] }
  0x44   : > { %3626 = vmatpush3.bf16.msra.mxu1 %v3946_v17  ;;  %3607 = vmatprep.subr.bf16.mxu0 %v3947_v18  ;;  %v3950_v27 = vld [vmem:[%s5313_s12] sm:$0xff]   ;;  %v3951_v33 = vld [vmem:[%s5312_s11 + $0x8] sm:$0xff]   ;;  %v957_v42 = vld [vmem:[%s4362_s0 + $0x58] sm:$0xff] }
  0x45   : > { %3627 = vmatprep.subr.bf16.mxu1 %v3948_v19  ;;  %3629 = vmatprep.mubr.msk.bf16.mxu1 %vm993_vm0, %v4367_v23  ;;  %v3952_v34 = vld [vmem:[%s5313_s12 + $0x8] sm:$0xff]   ;;  %v954_v35 = vld [vmem:[%s4362_s0 + $0x40] sm:$0xff]  ;;  %v967_v45 = vpack.c.bf16 %v957_v42, %v956_v41  ;;  %v960_v47 = vld [vmem:[%s4362_s0 + $0x70] sm:$0xff] }
  0x46   : > { %v3953_v38 = vld [vmem:[%s5314_s6] sm:$0xff]   ;;  %v966_v39 = vpack.c.bf16 %v955_v36, %v954_v35  ;;  %v959_v44 = vld [vmem:[%s4362_s0 + $0x68] sm:$0xff]  ;;  %v961_v48 = vld [vmem:[%s4362_s0 + $0x78] sm:$0xff] }
  0x47   : > { %3608 = vmatpush3.bf16.msra.mxu0 %v3947_v18  ;;  %v3954_v40 = vld [vmem:[%s5315_s13] sm:$0xff]   ;;  %v969_v49 = vpack.c.bf16 %v961_v48, %v960_v47  ;;  %v3955_v50 = vld [vmem:[%s5314_s6 + $0x8] sm:$0xff]  }
  0x48   : > { %3628 = vmatpush3.bf16.msra.mxu1 %v3948_v19  ;;  %3645 = vmatprep.subr.bf16.mxu0 %v3949_v26  ;;  %v958_v43 = vld [vmem:[%s4362_s0 + $0x60] sm:$0xff]  ;;  %v3956_v51 = vld [vmem:[%s5315_s13 + $0x8] sm:$0xff]   ;;  %s5317_s0 = smov %s5316_s9  ;;  %s5319_s13 = sld [smem:[#allocation29_spill]] }
  0x49   : > { %3665 = vmatprep.subr.bf16.mxu1 %v3950_v27  ;;  %v968_v46 = vpack.c.bf16 %v959_v44, %v958_v43  ;;  %v4479_v52 = vld [vmem:[%s5316_s9] sm:$0xf]  ;;  %v4484_v53 = vld [vmem:[%s5317_s0 + $0x4] sm:$0xf]  ;;  %v4489_v54 = vld [vmem:[%s5317_s0 + $0x8] sm:$0xf] }
  0x4a   : > { %3610 = vmatmul.mubr.msk.bf16.vlgmr.msra.gmra.mrb[0].mxu0 %vm993_vm0, %v4370_v25  ;;  %v4494_v55 = vld [vmem:[%s5317_s0 + $0xc] sm:$0xf]  ;;  %v4499_v56 = vld [vmem:[%s5318_s29] sm:$0xf]  ;;  %v4504_v57 = vld [vmem:[%s5318_s29 + $0x4] sm:$0xf] }
  0x4b   : > { %3630 = vmatmul.mubr.msk.bf16.vlgmr.msra.gmra.mrb[0].mxu1 %vm993_vm0, %v4370_v25  ;;  %3646 = vmatpush3.bf16.msra.mxu0 %v3949_v26  ;;  %v4509_v58 = vld [vmem:[%s5318_s29 + $0x8] sm:$0xf]  ;;  %v4514_v59 = vld [vmem:[%s5318_s29 + $0xc] sm:$0xf]  ;;  %v4539_v0 = vld [vmem:[%s5320_s7] ss:$0 sm:$0xff] }
  0x4c   : > { %3666 = vmatpush3.bf16.msra.mxu1 %v3950_v27  ;;  %3613 = vmatprep.mubr.msk.bf16.mxu0 %vm993_vm0, %v4384_v30  ;;  %s5321_s0 = sld [smem:[#allocation30_spill]]  ;;  %v4549_v2 = vld [vmem:[%s5322_s5] ss:$0 sm:$0xff]  ;;  %s5323_s9 = sld [smem:[#allocation32_spill]] }
  0x4d   : > { %3633 = vmatprep.mubr.msk.bf16.mxu1 %vm993_vm0, %v4384_v30  ;;  %3647 = vmatprep.subr.bf16.mxu0 %v3951_v33  ;;  %s5325_s5 = sshll.u32 %s4347_s4, 3  ;;  %s4773_s29 = smov 0  }
  0x4e   : > { %3667 = vmatprep.subr.bf16.mxu1 %v3952_v34  ;;  %v4519_v60 = vld [vmem:[%s5319_s13] sm:$0xf]  ;;  %v4524_v61 = vld [vmem:[%s5319_s13 + $0x4] sm:$0xf]  ;;  %v4529_v62 = vld [vmem:[%s5319_s13 + $0x8] sm:$0xf] }
  0x4f   : > { %3648 = vmatpush3.bf16.msra.mxu0 %v3951_v33  ;;  %v4534_v63 = vld [vmem:[%s5319_s13 + $0xc] sm:$0xf]  ;;  %s4769_s8 = scalar_lea.vmem [#allocation13], %s5325_s5 }
  0x50   : > { %3668 = vmatpush3.bf16.msra.mxu1 %v3952_v34  ;;  %3685 = vmatprep.subr.bf16.mxu0 %v3953_v38 }
  0x51   : > { %3705 = vmatprep.subr.bf16.mxu1 %v3954_v40 }
  0x52   : > { %3614 = vmatmul.mubr.msk.bf16.gmra.mrb[4].mxu0 %vm993_vm0, %v965_v37  ;;  %v4544_v1 = vld [vmem:[%s5321_s0] ss:$0 sm:$0xff]  ;;  %s5324_s0 = sshll.u32 %s4347_s4, 7 }
  0x53   : > { %3634 = vmatmul.mubr.msk.bf16.gmra.mrb[4].mxu1 %vm993_vm0, %v965_v37  ;;  %3617 = vmatprep.mubr.msk.bf16.mxu0 %vm993_vm0, %v966_v39  ;;  %s4765_s12 = scalar_lea.vmem [#allocation12], %s5324_s0 }
  0x54   : > { %3637 = vmatprep.mubr.msk.bf16.mxu1 %vm993_vm0, %v966_v39 }
  0x5a   : > { %3618 = vmatmul.mubr.msk.bf16.gmra.mrb[8].mxu0 %vm993_vm0, %v967_v45 }
  0x5b   : > { %3638 = vmatmul.mubr.msk.bf16.gmra.mrb[8].mxu1 %vm993_vm0, %v967_v45  ;;  %3621 = vmatprep.mubr.msk.bf16.mxu0 %vm993_vm0, %v968_v46 }
  0x5c   : > { %3641 = vmatprep.mubr.msk.bf16.mxu1 %vm993_vm0, %v968_v46 }
  0x62   : > { %3622 = vmatmul.mubr.msk.bf16.gmra.mrb[12].mxu0 %vm993_vm0, %v969_v49 }
  0x63   : > { %3642 = vmatmul.mubr.msk.bf16.gmra.mrb[12].mxu1 %vm993_vm0, %v969_v49  ;;  %3649 = vmatprep.mubr.msk.bf16.mxu0 %vm993_vm0, %v4367_v23 }
  0x64   : > { %3669 = vmatprep.mubr.msk.bf16.mxu1 %vm993_vm0, %v4367_v23 }
  0x6a   : > { %3650 = vmatmul.mubr.msk.bf16.vlgmr.msra.gmra.mrb[16].mxu0 %vm993_vm0, %v4370_v25 }
  0x6b   : > { %3670 = vmatmul.mubr.msk.bf16.vlgmr.msra.gmra.mrb[16].mxu1 %vm993_vm0, %v4370_v25  ;;  %3686 = vmatpush3.bf16.msra.mxu0 %v3953_v38 }
  0x6c   : > { %3706 = vmatpush3.bf16.msra.mxu1 %v3954_v40  ;;  %3653 = vmatprep.mubr.msk.bf16.mxu0 %vm993_vm0, %v4384_v30 }
  0x6d   : > { %3673 = vmatprep.mubr.msk.bf16.mxu1 %vm993_vm0, %v4384_v30  ;;  %3687 = vmatprep.subr.bf16.mxu0 %v3955_v50 }
  0x6e   : > { %3707 = vmatprep.subr.bf16.mxu1 %v3956_v51 }
  0x6f   : > { %3688 = vmatpush3.bf16.msra.mxu0 %v3955_v50 }
  0x70   : > { %3708 = vmatpush3.bf16.msra.mxu1 %v3956_v51 }
  0x72   : > { %3654 = vmatmul.mubr.msk.bf16.gmra.mrb[20].mxu0 %vm993_vm0, %v965_v37 }
  0x73   : > { %3674 = vmatmul.mubr.msk.bf16.gmra.mrb[20].mxu1 %vm993_vm0, %v965_v37  ;;  %3657 = vmatprep.mubr.msk.bf16.mxu0 %vm993_vm0, %v966_v39 }
  0x74   : > { %3677 = vmatprep.mubr.msk.bf16.mxu1 %vm993_vm0, %v966_v39 }
  0x7a   : > { %3658 = vmatmul.mubr.msk.bf16.gmra.mrb[24].mxu0 %vm993_vm0, %v967_v45 }
  0x7b   : > { %3678 = vmatmul.mubr.msk.bf16.gmra.mrb[24].mxu1 %vm993_vm0, %v967_v45  ;;  %3661 = vmatprep.mubr.msk.bf16.mxu0 %vm993_vm0, %v968_v46 }
  0x7c   : > { %3681 = vmatprep.mubr.msk.bf16.mxu1 %vm993_vm0, %v968_v46 }
  0x82   : > { %3662 = vmatmul.mubr.msk.bf16.gmra.mrb[28].mxu0 %vm993_vm0, %v969_v49 }
  0x83   : > { %3682 = vmatmul.mubr.msk.bf16.gmra.mrb[28].mxu1 %vm993_vm0, %v969_v49  ;;  %3689 = vmatprep.mubr.msk.bf16.mxu0 %vm993_vm0, %v4367_v23 }
  0x84   : > { %3709 = vmatprep.mubr.msk.bf16.mxu1 %vm993_vm0, %v4367_v23 }
  0x8a   : > { %3690 = vmatmul.mubr.msk.bf16.vlgmr.msra.gmra.mrb[32].mxu0 %vm993_vm0, %v4370_v25 }
  0x8b   : > { %3710 = vmatmul.mubr.msk.bf16.vlgmr.msra.gmra.mrb[32].mxu1 %vm993_vm0, %v4370_v25  ;;  %3693 = vmatprep.mubr.msk.bf16.mxu0 %vm993_vm0, %v4384_v30 }
  0x8c   : > { %3713 = vmatprep.mubr.msk.bf16.mxu1 %vm993_vm0, %v4384_v30 }
  0x92   : > { %3694 = vmatmul.mubr.msk.bf16.gmra.mrb[36].mxu0 %vm993_vm0, %v965_v37 }
  0x93   : > { %3714 = vmatmul.mubr.msk.bf16.gmra.mrb[36].mxu1 %vm993_vm0, %v965_v37  ;;  %3697 = vmatprep.mubr.msk.bf16.mxu0 %vm993_vm0, %v966_v39 }
  0x94   : > { %3717 = vmatprep.mubr.msk.bf16.mxu1 %vm993_vm0, %v966_v39 }
  0x9a   : > { %3698 = vmatmul.mubr.msk.bf16.gmra.mrb[40].mxu0 %vm993_vm0, %v967_v45 }
  0x9b   : > { %3718 = vmatmul.mubr.msk.bf16.gmra.mrb[40].mxu1 %vm993_vm0, %v967_v45  ;;  %3701 = vmatprep.mubr.msk.bf16.mxu0 %vm993_vm0, %v968_v46 }
  0x9c   : > { %3721 = vmatprep.mubr.msk.bf16.mxu1 %vm993_vm0, %v968_v46 }
  0xa2   : > { %3702 = vmatmul.mubr.msk.bf16.gmra.mrb[44].mxu0 %vm993_vm0, %v969_v49 }
  0xa3   : > { %3722 = vmatmul.mubr.msk.bf16.gmra.mrb[44].mxu1 %vm993_vm0, %v969_v49 }
 0x11d   : > { %v3611_v3 = vpop.f32.mrb[0].mxu0 }
 0x11e   : > { %v1061_v4 = vadd.f32 %v3611_v3, %v4544_v1  ;;  %v3631_v5 = vpop.f32.mrb[0].mxu1  ;;  %v1052_v6 = vpop.f32.mrb[1].mxu0 }
 0x11f   : > { %v1197_v7 = vadd.f32 %v3631_v5, %v4549_v2  ;;  %v1053_v8 = vadd.f32 %v4544_v1, %v1052_v6  ;;  %v1188_v9 = vpop.f32.mrb[1].mxu1  ;;  %v3612_v10 = vpop.f32.mrb[2].mxu0 }
 0x120   : > { %1117 = vst.msk [vmem:[#allocation2 + $0x10] sm:$0xff] %vm993_vm0, %v1061_v4  ;;  %v1189_v11 = vadd.f32 %v4549_v2, %v1188_v9  ;;  %v1064_v12 = vadd.f32 %v3612_v10, %v4544_v1  ;;  %v3632_v13 = vpop.f32.mrb[2].mxu1  ;;  %v1055_v14 = vpop.f32.mrb[3].mxu0 }
 0x121   : > { %1253 = vst.msk [vmem:[#allocation3 + $0x10] sm:$0xff] %vm993_vm0, %v1197_v7  ;;  %1115 = vst.msk [vmem:[#allocation2] sm:$0xff] %vm993_vm0, %v1053_v8  ;;  %v1200_v15 = vadd.f32 %v3632_v13, %v4549_v2  ;;  %v1056_v16 = vadd.f32 %v4544_v1, %v1055_v14  ;;  %v1191_v17 = vpop.f32.mrb[3].mxu1 }
 0x122   : > { %1251 = vst.msk [vmem:[#allocation3] sm:$0xff] %vm993_vm0, %v1189_v11  ;;  %1118 = vst.msk [vmem:[#allocation2 + $0x18] sm:$0xff] %vm993_vm0, %v1064_v12  ;;  %v1192_v18 = vadd.f32 %v4549_v2, %v1191_v17 }
 0x123   : > { %1254 = vst.msk [vmem:[#allocation3 + $0x18] sm:$0xff] %vm993_vm0, %v1200_v15  ;;  %1116 = vst.msk [vmem:[#allocation2 + $0x8] sm:$0xff] %vm993_vm0, %v1056_v16 }
 0x124   : > { %1252 = vst.msk [vmem:[#allocation3 + $0x8] sm:$0xff] %vm993_vm0, %v1192_v18  ;;  %v4617_v18 = vld [vmem:[%s5323_s9] ss:$0 sm:$0xff] }
 0x125   : > { %v3615_v19 = vpop.f32.mrb[4].mxu0 }
 0x126   : > { %v1077_v20 = vadd.f32 %v3615_v19, %v4544_v1  ;;  %v3635_v21 = vpop.f32.mrb[4].mxu1  ;;  %v1068_v22 = vpop.f32.mrb[5].mxu0 }
 0x127   : > { %v1213_v23 = vadd.f32 %v3635_v21, %v4549_v2  ;;  %v1069_v24 = vadd.f32 %v4544_v1, %v1068_v22  ;;  %v1204_v25 = vpop.f32.mrb[5].mxu1  ;;  %v3616_v26 = vpop.f32.mrb[6].mxu0 }
 0x128   : > { %1121 = vst.msk [vmem:[#allocation2 + $0x30] sm:$0xff] %vm993_vm0, %v1077_v20  ;;  %v1205_v27 = vadd.f32 %v4549_v2, %v1204_v25  ;;  %v1080_v28 = vadd.f32 %v3616_v26, %v4544_v1  ;;  %v3636_v29 = vpop.f32.mrb[6].mxu1  ;;  %v1071_v30 = vpop.f32.mrb[7].mxu0 }
 0x129   : > { %1257 = vst.msk [vmem:[#allocation3 + $0x30] sm:$0xff] %vm993_vm0, %v1213_v23  ;;  %1119 = vst.msk [vmem:[#allocation2 + $0x20] sm:$0xff] %vm993_vm0, %v1069_v24  ;;  %v1216_v31 = vadd.f32 %v3636_v29, %v4549_v2  ;;  %v1072_v32 = vadd.f32 %v4544_v1, %v1071_v30  ;;  %v1207_v33 = vpop.f32.mrb[7].mxu1 }
 0x12a   : > { %1255 = vst.msk [vmem:[#allocation3 + $0x20] sm:$0xff] %vm993_vm0, %v1205_v27  ;;  %1122 = vst.msk [vmem:[#allocation2 + $0x38] sm:$0xff] %vm993_vm0, %v1080_v28  ;;  %v1208_v34 = vadd.f32 %v4549_v2, %v1207_v33 }
 0x12b   : > { %1258 = vst.msk [vmem:[#allocation3 + $0x38] sm:$0xff] %vm993_vm0, %v1216_v31  ;;  %1120 = vst.msk [vmem:[#allocation2 + $0x28] sm:$0xff] %vm993_vm0, %v1072_v32 }
 0x12c   : > { %1256 = vst.msk [vmem:[#allocation3 + $0x28] sm:$0xff] %vm993_vm0, %v1208_v34 }
 0x12d   : > { %v3619_v35 = vpop.f32.mrb[8].mxu0 }
 0x12e   : > { %v1093_v36 = vadd.f32 %v3619_v35, %v4544_v1  ;;  %v3639_v37 = vpop.f32.mrb[8].mxu1  ;;  %v1084_v38 = vpop.f32.mrb[9].mxu0 }
 0x12f   : > { %v1229_v39 = vadd.f32 %v3639_v37, %v4549_v2  ;;  %v1085_v40 = vadd.f32 %v4544_v1, %v1084_v38  ;;  %v1220_v41 = vpop.f32.mrb[9].mxu1  ;;  %v3620_v42 = vpop.f32.mrb[10].mxu0 }
 0x130   : > { %1125 = vst.msk [vmem:[#allocation2 + $0x50] sm:$0xff] %vm993_vm0, %v1093_v36  ;;  %v1221_v43 = vadd.f32 %v4549_v2, %v1220_v41  ;;  %v1096_v44 = vadd.f32 %v3620_v42, %v4544_v1  ;;  %v3640_v45 = vpop.f32.mrb[10].mxu1  ;;  %v1087_v46 = vpop.f32.mrb[11].mxu0 }
 0x131   : > { %1261 = vst.msk [vmem:[#allocation3 + $0x50] sm:$0xff] %vm993_vm0, %v1229_v39  ;;  %1123 = vst.msk [vmem:[#allocation2 + $0x40] sm:$0xff] %vm993_vm0, %v1085_v40  ;;  %v1232_v47 = vadd.f32 %v3640_v45, %v4549_v2  ;;  %v1088_v48 = vadd.f32 %v4544_v1, %v1087_v46  ;;  %v1223_v49 = vpop.f32.mrb[11].mxu1 }
 0x132   : > { %1259 = vst.msk [vmem:[#allocation3 + $0x40] sm:$0xff] %vm993_vm0, %v1221_v43  ;;  %1126 = vst.msk [vmem:[#allocation2 + $0x58] sm:$0xff] %vm993_vm0, %v1096_v44  ;;  %v1224_v50 = vadd.f32 %v4549_v2, %v1223_v49 }
 0x133   : > { %1262 = vst.msk [vmem:[#allocation3 + $0x58] sm:$0xff] %vm993_vm0, %v1232_v47  ;;  %1124 = vst.msk [vmem:[#allocation2 + $0x48] sm:$0xff] %vm993_vm0, %v1088_v48 }
 0x134   : > { %1260 = vst.msk [vmem:[#allocation3 + $0x48] sm:$0xff] %vm993_vm0, %v1224_v50 }
 0x135   : > { %v3623_v51 = vpop.f32.mrb[12].mxu0 }
 0x136   : > { %v1109_v3 = vadd.f32 %v3623_v51, %v4544_v1  ;;  %v3643_v4 = vpop.f32.mrb[12].mxu1  ;;  %v1100_v5 = vpop.f32.mrb[13].mxu0 }
 0x137   : > { %v1245_v6 = vadd.f32 %v3643_v4, %v4549_v2  ;;  %v1101_v7 = vadd.f32 %v4544_v1, %v1100_v5  ;;  %v1236_v8 = vpop.f32.mrb[13].mxu1  ;;  %v3624_v9 = vpop.f32.mrb[14].mxu0 }
 0x138   : > { %1129 = vst.msk [vmem:[#allocation2 + $0x70] sm:$0xff] %vm993_vm0, %v1109_v3  ;;  %v1237_v10 = vadd.f32 %v4549_v2, %v1236_v8  ;;  %v1112_v11 = vadd.f32 %v3624_v9, %v4544_v1  ;;  %v3644_v12 = vpop.f32.mrb[14].mxu1  ;;  %v1103_v13 = vpop.f32.mrb[15].mxu0 }
 0x139   : > { %1265 = vst.msk [vmem:[#allocation3 + $0x70] sm:$0xff] %vm993_vm0, %v1245_v6  ;;  %1127 = vst.msk [vmem:[#allocation2 + $0x60] sm:$0xff] %vm993_vm0, %v1101_v7  ;;  %v1248_v14 = vadd.f32 %v3644_v12, %v4549_v2  ;;  %v1104_v15 = vadd.f32 %v4544_v1, %v1103_v13  ;;  %v1239_v16 = vpop.f32.mrb[15].mxu1  ;;  %v4623_v1 = vld [vmem:[%s5249_s17] ss:$0 sm:$0xff] }
 0x13a   : > { %1263 = vst.msk [vmem:[#allocation3 + $0x60] sm:$0xff] %vm993_vm0, %v1237_v10  ;;  %1130 = vst.msk [vmem:[#allocation2 + $0x78] sm:$0xff] %vm993_vm0, %v1112_v11  ;;  %v1240_v17 = vadd.f32 %v4549_v2, %v1239_v16 }
 0x13b   : > { %1266 = vst.msk [vmem:[#allocation3 + $0x78] sm:$0xff] %vm993_vm0, %v1248_v14  ;;  %1128 = vst.msk [vmem:[#allocation2 + $0x68] sm:$0xff] %vm993_vm0, %v1104_v15 }
 0x13c   : > { %1264 = vst.msk [vmem:[#allocation3 + $0x68] sm:$0xff] %vm993_vm0, %v1240_v17 }
 0x13d   : > { %v3651_v19 = vpop.f32.mrb[16].mxu0 }
 0x13e   : > { %v1333_v20 = vadd.f32 %v3651_v19, %v4617_v18  ;;  %v3671_v2 = vpop.f32.mrb[16].mxu1  ;;  %v1324_v21 = vpop.f32.mrb[17].mxu0 }
 0x13f   : > { %v1469_v22 = vadd.f32 %v3671_v2, %v4623_v1  ;;  %v1325_v23 = vadd.f32 %v4617_v18, %v1324_v21  ;;  %v1460_v24 = vpop.f32.mrb[17].mxu1  ;;  %v3652_v25 = vpop.f32.mrb[18].mxu0 }
 0x140   : > { %1389 = vst.msk [vmem:[#allocation4 + $0x10] sm:$0xff] %vm993_vm0, %v1333_v20  ;;  %v1461_v26 = vadd.f32 %v4623_v1, %v1460_v24  ;;  %v1336_v27 = vadd.f32 %v3652_v25, %v4617_v18  ;;  %v3672_v28 = vpop.f32.mrb[18].mxu1  ;;  %v1327_v29 = vpop.f32.mrb[19].mxu0 }
 0x141   : > { %1525 = vst.msk [vmem:[#allocation5 + $0x10] sm:$0xff] %vm993_vm0, %v1469_v22  ;;  %1387 = vst.msk [vmem:[#allocation4] sm:$0xff] %vm993_vm0, %v1325_v23  ;;  %v1472_v30 = vadd.f32 %v3672_v28, %v4623_v1  ;;  %v1328_v31 = vadd.f32 %v4617_v18, %v1327_v29  ;;  %v1463_v32 = vpop.f32.mrb[19].mxu1 }
 0x142   : > { %1523 = vst.msk [vmem:[#allocation5] sm:$0xff] %vm993_vm0, %v1461_v26  ;;  %1390 = vst.msk [vmem:[#allocation4 + $0x18] sm:$0xff] %vm993_vm0, %v1336_v27  ;;  %v1464_v33 = vadd.f32 %v4623_v1, %v1463_v32 }
 0x143   : > { %1526 = vst.msk [vmem:[#allocation5 + $0x18] sm:$0xff] %vm993_vm0, %v1472_v30  ;;  %1388 = vst.msk [vmem:[#allocation4 + $0x8] sm:$0xff] %vm993_vm0, %v1328_v31 }
 0x144   : > { %1524 = vst.msk [vmem:[#allocation5 + $0x8] sm:$0xff] %vm993_vm0, %v1464_v33  ;;  %v4691_v33 = vld [vmem:[%s5250_s18] ss:$0 sm:$0xff] }
 0x145   : > { %v3655_v34 = vpop.f32.mrb[20].mxu0 }
 0x146   : > { %v1349_v35 = vadd.f32 %v3655_v34, %v4617_v18  ;;  %v3675_v36 = vpop.f32.mrb[20].mxu1  ;;  %v1340_v37 = vpop.f32.mrb[21].mxu0 }
 0x147   : > { %v1485_v38 = vadd.f32 %v3675_v36, %v4623_v1  ;;  %v1341_v39 = vadd.f32 %v4617_v18, %v1340_v37  ;;  %v1476_v40 = vpop.f32.mrb[21].mxu1  ;;  %v3656_v41 = vpop.f32.mrb[22].mxu0 }
 0x148   : > { %1393 = vst.msk [vmem:[#allocation4 + $0x30] sm:$0xff] %vm993_vm0, %v1349_v35  ;;  %v1477_v42 = vadd.f32 %v4623_v1, %v1476_v40  ;;  %v1352_v43 = vadd.f32 %v3656_v41, %v4617_v18  ;;  %v3676_v44 = vpop.f32.mrb[22].mxu1  ;;  %v1343_v45 = vpop.f32.mrb[23].mxu0 }
 0x149   : > { %1529 = vst.msk [vmem:[#allocation5 + $0x30] sm:$0xff] %vm993_vm0, %v1485_v38  ;;  %1391 = vst.msk [vmem:[#allocation4 + $0x20] sm:$0xff] %vm993_vm0, %v1341_v39  ;;  %v1488_v46 = vadd.f32 %v3676_v44, %v4623_v1  ;;  %v1344_v47 = vadd.f32 %v4617_v18, %v1343_v45  ;;  %v1479_v48 = vpop.f32.mrb[23].mxu1 }
 0x14a   : > { %1527 = vst.msk [vmem:[#allocation5 + $0x20] sm:$0xff] %vm993_vm0, %v1477_v42  ;;  %1394 = vst.msk [vmem:[#allocation4 + $0x38] sm:$0xff] %vm993_vm0, %v1352_v43  ;;  %v1480_v49 = vadd.f32 %v4623_v1, %v1479_v48 }
 0x14b   : > { %1530 = vst.msk [vmem:[#allocation5 + $0x38] sm:$0xff] %vm993_vm0, %v1488_v46  ;;  %1392 = vst.msk [vmem:[#allocation4 + $0x28] sm:$0xff] %vm993_vm0, %v1344_v47 }
 0x14c   : > { %1528 = vst.msk [vmem:[#allocation5 + $0x28] sm:$0xff] %vm993_vm0, %v1480_v49 }
 0x14d   : > { %v3659_v50 = vpop.f32.mrb[24].mxu0 }
 0x14e   : > { %v1365_v51 = vadd.f32 %v3659_v50, %v4617_v18  ;;  %v3679_v3 = vpop.f32.mrb[24].mxu1  ;;  %v1356_v4 = vpop.f32.mrb[25].mxu0 }
 0x14f   : > { %v1501_v5 = vadd.f32 %v3679_v3, %v4623_v1  ;;  %v1357_v6 = vadd.f32 %v4617_v18, %v1356_v4  ;;  %v1492_v7 = vpop.f32.mrb[25].mxu1  ;;  %v3660_v8 = vpop.f32.mrb[26].mxu0 }
 0x150   : > { %1397 = vst.msk [vmem:[#allocation4 + $0x50] sm:$0xff] %vm993_vm0, %v1365_v51  ;;  %v1493_v9 = vadd.f32 %v4623_v1, %v1492_v7  ;;  %v1368_v10 = vadd.f32 %v3660_v8, %v4617_v18  ;;  %v3680_v11 = vpop.f32.mrb[26].mxu1  ;;  %v1359_v12 = vpop.f32.mrb[27].mxu0 }
 0x151   : > { %1533 = vst.msk [vmem:[#allocation5 + $0x50] sm:$0xff] %vm993_vm0, %v1501_v5  ;;  %1395 = vst.msk [vmem:[#allocation4 + $0x40] sm:$0xff] %vm993_vm0, %v1357_v6  ;;  %v1504_v13 = vadd.f32 %v3680_v11, %v4623_v1  ;;  %v1360_v14 = vadd.f32 %v4617_v18, %v1359_v12  ;;  %v1495_v15 = vpop.f32.mrb[27].mxu1 }
 0x152   : > { %1531 = vst.msk [vmem:[#allocation5 + $0x40] sm:$0xff] %vm993_vm0, %v1493_v9  ;;  %1398 = vst.msk [vmem:[#allocation4 + $0x58] sm:$0xff] %vm993_vm0, %v1368_v10  ;;  %v1496_v16 = vadd.f32 %v4623_v1, %v1495_v15 }
 0x153   : > { %1534 = vst.msk [vmem:[#allocation5 + $0x58] sm:$0xff] %vm993_vm0, %v1504_v13  ;;  %1396 = vst.msk [vmem:[#allocation4 + $0x48] sm:$0xff] %vm993_vm0, %v1360_v14 }
 0x154   : > { %1532 = vst.msk [vmem:[#allocation5 + $0x48] sm:$0xff] %vm993_vm0, %v1496_v16 }
 0x155   : > { %v3663_v17 = vpop.f32.mrb[28].mxu0 }
 0x156   : > { %v1381_v19 = vadd.f32 %v3663_v17, %v4617_v18  ;;  %v3683_v20 = vpop.f32.mrb[28].mxu1  ;;  %v1372_v2 = vpop.f32.mrb[29].mxu0 }
 0x157   : > { %v1517_v21 = vadd.f32 %v3683_v20, %v4623_v1  ;;  %v1373_v22 = vadd.f32 %v4617_v18, %v1372_v2  ;;  %v1508_v23 = vpop.f32.mrb[29].mxu1  ;;  %v3664_v24 = vpop.f32.mrb[30].mxu0 }
 0x158   : > { %1401 = vst.msk [vmem:[#allocation4 + $0x70] sm:$0xff] %vm993_vm0, %v1381_v19  ;;  %v1509_v25 = vadd.f32 %v4623_v1, %v1508_v23  ;;  %v1384_v26 = vadd.f32 %v3664_v24, %v4617_v18  ;;  %v3684_v27 = vpop.f32.mrb[30].mxu1  ;;  %v1375_v28 = vpop.f32.mrb[31].mxu0 }
 0x159   : > { %1537 = vst.msk [vmem:[#allocation5 + $0x70] sm:$0xff] %vm993_vm0, %v1517_v21  ;;  %1399 = vst.msk [vmem:[#allocation4 + $0x60] sm:$0xff] %vm993_vm0, %v1373_v22  ;;  %v1520_v29 = vadd.f32 %v3684_v27, %v4623_v1  ;;  %v1376_v30 = vadd.f32 %v4617_v18, %v1375_v28  ;;  %v1511_v31 = vpop.f32.mrb[31].mxu1  ;;  %v4697_v18 = vld [vmem:[%s5251_s19] ss:$0 sm:$0xff] }
 0x15a   : > { %1535 = vst.msk [vmem:[#allocation5 + $0x60] sm:$0xff] %vm993_vm0, %v1509_v25  ;;  %1402 = vst.msk [vmem:[#allocation4 + $0x78] sm:$0xff] %vm993_vm0, %v1384_v26  ;;  %v1512_v32 = vadd.f32 %v4623_v1, %v1511_v31 }
 0x15b   : > { %1538 = vst.msk [vmem:[#allocation5 + $0x78] sm:$0xff] %vm993_vm0, %v1520_v29  ;;  %1400 = vst.msk [vmem:[#allocation4 + $0x68] sm:$0xff] %vm993_vm0, %v1376_v30 }
 0x15c   : > { %1536 = vst.msk [vmem:[#allocation5 + $0x68] sm:$0xff] %vm993_vm0, %v1512_v32 }
 0x15d   : > { %v3691_v34 = vpop.f32.mrb[32].mxu0 }
 0x15e   : > { %v1605_v35 = vadd.f32 %v3691_v34, %v4691_v33  ;;  %v3711_v1 = vpop.f32.mrb[32].mxu1  ;;  %v1596_v36 = vpop.f32.mrb[33].mxu0 }
 0x15f   : > { %v1741_v37 = vadd.f32 %v3711_v1, %v4697_v18  ;;  %v1597_v38 = vadd.f32 %v4691_v33, %v1596_v36  ;;  %v1732_v39 = vpop.f32.mrb[33].mxu1  ;;  %v3692_v40 = vpop.f32.mrb[34].mxu0 }
 0x160   : > { %1661 = vst.msk [vmem:[#allocation6 + $0x10] sm:$0xff] %vm993_vm0, %v1605_v35  ;;  %v1733_v41 = vadd.f32 %v4697_v18, %v1732_v39  ;;  %v1608_v42 = vadd.f32 %v3692_v40, %v4691_v33  ;;  %v3712_v43 = vpop.f32.mrb[34].mxu1  ;;  %v1599_v44 = vpop.f32.mrb[35].mxu0 }
 0x161   : > { %1797 = vst.msk [vmem:[#allocation7 + $0x10] sm:$0xff] %vm993_vm0, %v1741_v37  ;;  %1659 = vst.msk [vmem:[#allocation6] sm:$0xff] %vm993_vm0, %v1597_v38  ;;  %v1744_v45 = vadd.f32 %v3712_v43, %v4697_v18  ;;  %v1600_v46 = vadd.f32 %v4691_v33, %v1599_v44  ;;  %v1735_v47 = vpop.f32.mrb[35].mxu1 }
 0x162   : > { %1795 = vst.msk [vmem:[#allocation7] sm:$0xff] %vm993_vm0, %v1733_v41  ;;  %1662 = vst.msk [vmem:[#allocation6 + $0x18] sm:$0xff] %vm993_vm0, %v1608_v42  ;;  %v1736_v48 = vadd.f32 %v4697_v18, %v1735_v47 }
 0x163   : > { %1798 = vst.msk [vmem:[#allocation7 + $0x18] sm:$0xff] %vm993_vm0, %v1744_v45  ;;  %1660 = vst.msk [vmem:[#allocation6 + $0x8] sm:$0xff] %vm993_vm0, %v1600_v46 }
 0x164   : > { %1796 = vst.msk [vmem:[#allocation7 + $0x8] sm:$0xff] %vm993_vm0, %v1736_v48 }
 0x165   : > { %v3695_v49 = vpop.f32.mrb[36].mxu0 }
 0x166   : > { %v1621_v50 = vadd.f32 %v3695_v49, %v4691_v33  ;;  %v3715_v51 = vpop.f32.mrb[36].mxu1  ;;  %v1612_v3 = vpop.f32.mrb[37].mxu0 }
 0x167   : > { %v1757_v4 = vadd.f32 %v3715_v51, %v4697_v18  ;;  %v1613_v5 = vadd.f32 %v4691_v33, %v1612_v3  ;;  %v1748_v6 = vpop.f32.mrb[37].mxu1  ;;  %v3696_v7 = vpop.f32.mrb[38].mxu0 }
 0x168   : > { %1665 = vst.msk [vmem:[#allocation6 + $0x30] sm:$0xff] %vm993_vm0, %v1621_v50  ;;  %v1749_v8 = vadd.f32 %v4697_v18, %v1748_v6  ;;  %v1624_v9 = vadd.f32 %v3696_v7, %v4691_v33  ;;  %v3716_v10 = vpop.f32.mrb[38].mxu1  ;;  %v1615_v11 = vpop.f32.mrb[39].mxu0 }
 0x169   : > { %1801 = vst.msk [vmem:[#allocation7 + $0x30] sm:$0xff] %vm993_vm0, %v1757_v4  ;;  %1663 = vst.msk [vmem:[#allocation6 + $0x20] sm:$0xff] %vm993_vm0, %v1613_v5  ;;  %v1760_v12 = vadd.f32 %v3716_v10, %v4697_v18  ;;  %v1616_v13 = vadd.f32 %v4691_v33, %v1615_v11  ;;  %v1751_v14 = vpop.f32.mrb[39].mxu1 }
 0x16a   : > { %1799 = vst.msk [vmem:[#allocation7 + $0x20] sm:$0xff] %vm993_vm0, %v1749_v8  ;;  %1666 = vst.msk [vmem:[#allocation6 + $0x38] sm:$0xff] %vm993_vm0, %v1624_v9  ;;  %v1752_v15 = vadd.f32 %v4697_v18, %v1751_v14 }
 0x16b   : > { %1802 = vst.msk [vmem:[#allocation7 + $0x38] sm:$0xff] %vm993_vm0, %v1760_v12  ;;  %1664 = vst.msk [vmem:[#allocation6 + $0x28] sm:$0xff] %vm993_vm0, %v1616_v13 }
 0x16c   : > { %1800 = vst.msk [vmem:[#allocation7 + $0x28] sm:$0xff] %vm993_vm0, %v1752_v15 }
 0x16d   : > { %v3699_v16 = vpop.f32.mrb[40].mxu0 }
 0x16e   : > { %v1637_v17 = vadd.f32 %v3699_v16, %v4691_v33  ;;  %v3719_v19 = vpop.f32.mrb[40].mxu1  ;;  %v1628_v20 = vpop.f32.mrb[41].mxu0 }
 0x16f   : > { %v1773_v2 = vadd.f32 %v3719_v19, %v4697_v18  ;;  %v1629_v21 = vadd.f32 %v4691_v33, %v1628_v20  ;;  %v1764_v22 = vpop.f32.mrb[41].mxu1  ;;  %v3700_v23 = vpop.f32.mrb[42].mxu0 }
 0x170   : > { %1669 = vst.msk [vmem:[#allocation6 + $0x50] sm:$0xff] %vm993_vm0, %v1637_v17  ;;  %v1765_v24 = vadd.f32 %v4697_v18, %v1764_v22  ;;  %v1640_v25 = vadd.f32 %v3700_v23, %v4691_v33  ;;  %v3720_v26 = vpop.f32.mrb[42].mxu1  ;;  %v1631_v27 = vpop.f32.mrb[43].mxu0 }
 0x171   : > { %1805 = vst.msk [vmem:[#allocation7 + $0x50] sm:$0xff] %vm993_vm0, %v1773_v2  ;;  %1667 = vst.msk [vmem:[#allocation6 + $0x40] sm:$0xff] %vm993_vm0, %v1629_v21  ;;  %v1776_v28 = vadd.f32 %v3720_v26, %v4697_v18  ;;  %v1632_v29 = vadd.f32 %v4691_v33, %v1631_v27  ;;  %v1767_v30 = vpop.f32.mrb[43].mxu1 }
 0x172   : > { %1803 = vst.msk [vmem:[#allocation7 + $0x40] sm:$0xff] %vm993_vm0, %v1765_v24  ;;  %1670 = vst.msk [vmem:[#allocation6 + $0x58] sm:$0xff] %vm993_vm0, %v1640_v25  ;;  %v1768_v31 = vadd.f32 %v4697_v18, %v1767_v30 }
 0x173   : > { %1806 = vst.msk [vmem:[#allocation7 + $0x58] sm:$0xff] %vm993_vm0, %v1776_v28  ;;  %1668 = vst.msk [vmem:[#allocation6 + $0x48] sm:$0xff] %vm993_vm0, %v1632_v29 }
 0x174   : > { %1804 = vst.msk [vmem:[#allocation7 + $0x48] sm:$0xff] %vm993_vm0, %v1768_v31 }
 0x175   : > { %v3703_v32 = vpop.f32.mrb[44].mxu0 }
 0x176   : > { %v1653_v34 = vadd.f32 %v3703_v32, %v4691_v33  ;;  %v3723_v35 = vpop.f32.mrb[44].mxu1  ;;  %v1644_v1 = vpop.f32.mrb[45].mxu0 }
 0x177   : > { %v1789_v36 = vadd.f32 %v3723_v35, %v4697_v18  ;;  %v1645_v37 = vadd.f32 %v4691_v33, %v1644_v1  ;;  %v1780_v38 = vpop.f32.mrb[45].mxu1  ;;  %v3704_v39 = vpop.f32.mrb[46].mxu0 }
 0x178   : > { %1673 = vst.msk [vmem:[#allocation6 + $0x70] sm:$0xff] %vm993_vm0, %v1653_v34  ;;  %v1781_v40 = vadd.f32 %v4697_v18, %v1780_v38  ;;  %v1656_v41 = vadd.f32 %v3704_v39, %v4691_v33  ;;  %v3724_v42 = vpop.f32.mrb[46].mxu1  ;;  %v1647_v43 = vpop.f32.mrb[47].mxu0 }
 0x179   : > { %1809 = vst.msk [vmem:[#allocation7 + $0x70] sm:$0xff] %vm993_vm0, %v1789_v36  ;;  %1671 = vst.msk [vmem:[#allocation6 + $0x60] sm:$0xff] %vm993_vm0, %v1645_v37  ;;  %v1792_v44 = vadd.f32 %v3724_v42, %v4697_v18  ;;  %v1648_v45 = vadd.f32 %v4691_v33, %v1647_v43  ;;  %v1783_v46 = vpop.f32.mrb[47].mxu1  ;;  %v4771_v33 = vmov 0.0  }
 0x17a   : > { %1807 = vst.msk [vmem:[#allocation7 + $0x60] sm:$0xff] %vm993_vm0, %v1781_v40  ;;  %1674 = vst.msk [vmem:[#allocation6 + $0x78] sm:$0xff] %vm993_vm0, %v1656_v41  ;;  %v1784_v47 = vadd.f32 %v4697_v18, %v1783_v46 }
 0x17b   : > { %1810 = vst.msk [vmem:[#allocation7 + $0x78] sm:$0xff] %vm993_vm0, %v1792_v44  ;;  %1672 = vst.msk [vmem:[#allocation6 + $0x68] sm:$0xff] %vm993_vm0, %v1648_v45 }
 0x17c   : > { %1808 = vst.msk [vmem:[#allocation7 + $0x68] sm:$0xff] %vm993_vm0, %v1784_v47 }
 0x17d LB: >> { %v3450_v18 = vcombine.low %v4479_v52, %v4484_v53  ;;  %v4117_v48 = vmov 0.0   ;;  %vm4118_vm1 = vmmov 0   ;;  %v3453_v49 = vcombine.low %v4499_v56, %v4504_v57  ;;  %s4802_s9 = sshll.u32 %s4087_s29, 3  ;;  %s1829_s29 = sadd.s32 1, %s4087_s29   ;;  %s4087_s29 = sphi %s4773_s29, %s1829_s29   ;;  %v4083_v33 = vphi %v4771_v33, %v2024_v33  }
 0x17e   : >> { %3725 = vmatprep.subr.bf16.mxu0 %v4117_v48  ;;  %3729 = vmatprep.mubr.msk.bf16.mxu0 %vm4118_vm1, %v4117_v48  ;;  %v3451_v50 = vcombine.low %v4489_v54, %v4494_v55  ;;  %v3454_v51 = vcombine.low %v4509_v58, %v4514_v59  ;;  %v1831_v3 = vpack.c.bf16 %v4083_v33, %v4083_v33  ;;  %s1940_s10 = scalar_lea.vmem [#allocation2], %s4802_s9  ;;  %s1949_s30 = scalar_lea.vmem [#allocation3], %s4802_s9 }
 0x17f   : >> { %3726 = vmatpush3.bf16.msra.mxu0 %v3450_v18  ;;  %3733 = vmatprep.subr.bf16.mxu1 %v4117_v48  ;;  %v3460_v4 = vcombine.low %v4519_v60, %v4524_v61  ;;  %v3461_v5 = vcombine.low %v4529_v62, %v4534_v63  ;;  %v1941_v6 = vld [vmem:[%s1940_s10] sm:$0xff]  ;;  %s1958_s1 = scalar_lea.vmem [#allocation4], %s4802_s9  ;;  %s2025_s6 = scalar_lea.vmem [#allocation8], %s4802_s9 }
 0x180   : >> { %3727 = vmatprep.subr.bf16.mxu0 %v4117_v48  ;;  %3734 = vmatpush3.bf16.msra.mxu1 %v3453_v49  ;;  %v1950_v7 = vld [vmem:[%s1949_s30] sm:$0xff]  ;;  %p1826_p13 = scmp.ge.s32.totalorder %s1829_s29, 16  }
 0x181   : >> { %3735 = vmatprep.subr.bf16.mxu1 %v4117_v48  ;;  %3737 = vmatprep.mubr.msk.bf16.mxu1 %vm4118_vm1, %v4117_v48  ;;  %v1959_v30 = vld [vmem:[%s1958_s1] sm:$0xff]  ;;  %v4829_v40 = vld [vmem:[%s5246_s14 + $0x8] sm:$0xf] (%p1826_p13)  ;;  %v4834_v41 = vld [vmem:[%s5246_s14 + $0xc] sm:$0xf] (%p1826_p13)  ;;  %v4881_v61 = vmov (%p1826_p13), 0.0  }
 0x182   : > { %v4819_v38 = vld [vmem:[%s5246_s14] sm:$0xf] (%p1826_p13)  ;;  %v4824_v39 = vld [vmem:[%s5246_s14 + $0x4] sm:$0xf] (%p1826_p13)  ;;  %v4849_v54 = vld [vmem:[%s5247_s15 + $0x8] sm:$0xf] (%p1826_p13) }
 0x183   : >> { %3728 = vmatpush3.bf16.msra.mxu0 %v3451_v50  ;;  %v4839_v52 = vld [vmem:[%s5247_s15] sm:$0xf] (%p1826_p13)  ;;  %v4844_v53 = vld [vmem:[%s5247_s15 + $0x4] sm:$0xf] (%p1826_p13)  ;;  %v4854_v55 = vld [vmem:[%s5247_s15 + $0xc] sm:$0xf] (%p1826_p13) }
 0x184   : >> { %3736 = vmatpush3.bf16.msra.mxu1 %v3454_v51  ;;  %3741 = vmatprep.subr.bf16.mxu0 %v4117_v48  ;;  %v4859_v56 = vld [vmem:[%s5248_s16] sm:$0xf] (%p1826_p13)  ;;  %v4864_v57 = vld [vmem:[%s5248_s16 + $0x4] sm:$0xf] (%p1826_p13)  ;;  %v4869_v58 = vld [vmem:[%s5248_s16 + $0x8] sm:$0xf] (%p1826_p13) }
 0x185   : > { %v4874_v59 = vld [vmem:[%s5248_s16 + $0xc] sm:$0xf] (%p1826_p13)  ;;  %v4879_v60 = vld [vmem:[%s5252_s20] ss:$0 sm:$0xff] (%p1826_p13)  ;;  %s4883_s30 = smov (%p1826_p13), 0  }
 0x186   : >> { %3730 = vmatmul.mubr.msk.bf16.vlgmr.msra.gmra.mrb[0].mxu0 %vm993_vm0, %v1831_v3 }
 0x187   : >> { %3738 = vmatmul.mubr.msk.bf16.vlgmr.msra.gmra.mrb[0].mxu1 %vm993_vm0, %v1831_v3  ;;  %3742 = vmatpush3.bf16.msra.mxu0 %v3460_v4 }
 0x188   : >> { %3743 = vmatprep.subr.bf16.mxu0 %v4117_v48  ;;  %3745 = vmatprep.mubr.msk.bf16.mxu0 %vm4118_vm1, %v4117_v48 }
 0x18b   : >> { %3744 = vmatpush3.bf16.msra.mxu0 %v3461_v5 }
 0x18e   : >> { %3746 = vmatmul.mubr.msk.bf16.vlgmr.msra.gmra.mrb[4].mxu0 %vm993_vm0, %v1831_v3 }
 0x259   : >> { %v1881_v8 = vpop.f32.mrb[0].mxu0 }
 0x25a   : >> { %v1942_v9 = vadd.f32 %v1941_v6, %v1881_v8  ;;  %v3731_v10 = vpop.f32.mrb[1].mxu0  ;;  %v1933_v11 = vpop.f32.mrb[0].mxu1 }
 0x25b   : >> { %v1884_v12 = vpop.f32.mrb[2].mxu0  ;;  %v1951_v13 = vadd.f32 %v1950_v7, %v1933_v11  ;;  %v3739_v14 = vpop.f32.mrb[1].mxu1 }
 0x25c   : >> { %v3457_v15 = vmul.f32 -1.442695, %v1942_v9  ;;  %v3732_v16 = vpop.f32.mrb[3].mxu0  ;;  %v1936_v17 = vpop.f32.mrb[2].mxu1 }
 0x25d   : >> { %v3740_v19 = vpop.f32.mrb[3].mxu1  ;;  %v3458_v20 = vmul.f32 -1.442695, %v1951_v13 }
 0x25e   : >> { %3957 = vpow2.f32 %v3457_v15 }
 0x25f   : >> { %3959 = vpow2.f32 %v3458_v20 }
 0x261   : >> { %v2012_v2 = vpop.f32.mrb[4].mxu0 }
 0x262   : >> { %v3747_v21 = vpop.f32.mrb[5].mxu0  ;;  %v2013_v28 = vadd.f32 %v4539_v0, %v2012_v2 }
 0x263   : >> { %v2015_v22 = vpop.f32.mrb[6].mxu0 }
 0x264   : >> { %v3748_v23 = vpop.f32.mrb[7].mxu0 }
 0x268   : >> { %v3958_v24 = vpop.eup %3957 }
 0x269   : >> { %v1946_v25 = vadd.f32 1.0, %v3958_v24  ;;  %v3960_v26 = vpop.eup %3959 }
 0x26a   : >> { %v1955_v27 = vadd.f32 1.0, %v3960_v26 }
 0x26b   : >> { %3961 = vrcp.f32 %v1946_v25 }
 0x26c   : >> { %3963 = vrcp.f32 %v1955_v27 }
 0x275   : >> { %v3962_v29 = vpop.eup %3961 }
 0x276   : >> { %v2018_v31 = vmul.f32 %v3962_v29, %v2013_v28  ;;  %v3964_v34 = vpop.eup %3963 }
 0x277   : >> { %v2021_v35 = vsub.f32 1.0, %v3964_v34  ;;  %v2023_v36 = vmul.f32 %v4083_v33, %v3964_v34 }
 0x278   : >> { %v2019_v32 = vadd.f32 %v2018_v31, %v1959_v30 }
 0x27a   : >> { %3965 = vtanh.f32 %v2019_v32 }
 0x283   : > { %1828 = sbr.rel (!%p1826_p13) target bundleno = 381 (0x17d), region = 295 }
 0x284   : >> { %v3966_v1 = vpop.eup %3965 }
 0x285   : >> { %v2022_v37 = vmul.f32 %v3966_v1, %v2021_v35 }
 0x287   : >> { %v2024_v33 = vadd.f32 %v2023_v36, %v2022_v37  }
 0x289   : >> { %2026 = vst.msk [vmem:[%s2025_s6] sm:$0xff] %vm993_vm0, %v2024_v33 }
 0x28a LB: >> { %v3463_v62 = vcombine.low %v4819_v38, %v4824_v39  ;;  %v4119_v63 = vmov 0.0   ;;  %vm4120_vm2 = vmmov 0   ;;  %v3466_v0 = vcombine.low %v4839_v52, %v4844_v53  ;;  %s2047_s1 = ssub.s32 15, %s4095_s30  ;;  %s2045_s30 = sadd.s32 1, %s4095_s30   ;;  %s4095_s30 = sphi %s4883_s30, %s2045_s30   ;;  %v4091_v61 = vphi %v4881_v61, %v2241_v61  }
 0x28b   : >> { %3749 = vmatprep.subr.bf16.mxu0 %v4119_v63  ;;  %3753 = vmatprep.mubr.msk.bf16.mxu0 %vm4120_vm2, %v4119_v63  ;;  %v3464_v42 = vcombine.low %v4829_v40, %v4834_v41  ;;  %v3467_v43 = vcombine.low %v4849_v54, %v4854_v55  ;;  %v2048_v44 = vpack.c.bf16 %v4091_v61, %v4091_v61  ;;  %s4912_s29 = sshll.u32 %s2047_s1, 3  ;;  %p2042_p0 = scmp.ge.s32.totalorder %s2045_s30, 16  }
 0x28c   : >> { %3750 = vmatpush3.bf16.msra.mxu0 %v3463_v62  ;;  %3757 = vmatprep.subr.bf16.mxu1 %v4119_v63  ;;  %v3473_v45 = vcombine.low %v4859_v56, %v4864_v57  ;;  %v3474_v46 = vcombine.low %v4869_v58, %v4874_v59  ;;  %s2157_s6 = scalar_lea.vmem [#allocation5], %s4912_s29  ;;  %s2166_s7 = scalar_lea.vmem [#allocation6], %s4912_s29  ;;  %v3977_v28 = vld [vmem:[%s5254_s22] sm:$0xff] (%p2042_p0)   ;;  %v3979_v30 = vld [vmem:[%s5254_s22 + $0x8] sm:$0xff] (%p2042_p0)   ;;  %vm2589_vm3 = vcmask (%p2042_p0), 39936  }
 0x28d   : >> { %3751 = vmatprep.subr.bf16.mxu0 %v4119_v63  ;;  %3758 = vmatpush3.bf16.msra.mxu1 %v3466_v0  ;;  %v2158_v47 = vld [vmem:[%s2157_s6] sm:$0xff]  ;;  %s2175_s11 = scalar_lea.vmem [#allocation7], %s4912_s29  ;;  %s2242_s0 = scalar_lea.vmem [#allocation9], %s4912_s29  ;;  %v3980_v31 = vld [vmem:[%s5253_s21 + $0x8] sm:$0xff] (%p2042_p0)  }
 0x28e   : >> { %3759 = vmatprep.subr.bf16.mxu1 %v4119_v63  ;;  %3761 = vmatprep.mubr.msk.bf16.mxu1 %vm4120_vm2, %v4119_v63  ;;  %v2167_v33 = vld [vmem:[%s2166_s7] sm:$0xff]  ;;  %s5021_s29 = smov (%p2042_p0), 1  }
 0x28f   : >> { %v2176_v2 = vld [vmem:[%s2175_s11] sm:$0xff] }
 0x290   : >> { %3752 = vmatpush3.bf16.msra.mxu0 %v3464_v42  ;;  %v3978_v29 = vld [vmem:[%s5253_s21] sm:$0xff] (%p2042_p0)   ;;  %v2245_v36 = vld [vmem:[#allocation8 + $0x8] sm:$0xff] (%p2042_p0)  ;;  %v2246_v41 = vld [vmem:[#allocation8 + $0x10] sm:$0xff] (%p2042_p0) }
 0x291   : >> { %3760 = vmatpush3.bf16.msra.mxu1 %v3467_v43  ;;  %3765 = vmatprep.subr.bf16.mxu0 %v4119_v63  ;;  %v2244_v35 = vld [vmem:[#allocation8] sm:$0xff] (%p2042_p0)  ;;  %v2247_v52 = vld [vmem:[#allocation8 + $0x18] sm:$0xff] (%p2042_p0)  ;;  %v2249_v57 = vld [vmem:[#allocation8 + $0x28] sm:$0xff] (%p2042_p0) }
 0x292   : > { %3773 = vmatprep.subr.bf16.mxu1 (%p2042_p0), %v3977_v28  ;;  %v2260_v39 = vpack.c.bf16 (%p2042_p0), %v2245_v36, %v2244_v35  ;;  %v2261_v54 = vpack.c.bf16 (%p2042_p0), %v2247_v52, %v2246_v41  ;;  %v2248_v56 = vld [vmem:[#allocation8 + $0x20] sm:$0xff] (%p2042_p0)  ;;  %v2250_v62 = vld [vmem:[#allocation8 + $0x30] sm:$0xff] (%p2042_p0) }
 0x293   : >> { %3754 = vmatmul.mubr.msk.bf16.vlgmr.msra.gmra.mrb[0].mxu0 %vm993_vm0, %v2048_v44  ;;  %v2262_v59 = vpack.c.bf16 (%p2042_p0), %v2249_v57, %v2248_v56  ;;  %v2252_v43 = vld [vmem:[#allocation8 + $0x40] sm:$0xff] (%p2042_p0) }
 0x294   : >> { %3762 = vmatmul.mubr.msk.bf16.vlgmr.msra.gmra.mrb[0].mxu1 %vm993_vm0, %v2048_v44  ;;  %3766 = vmatpush3.bf16.msra.mxu0 %v3473_v45 }
 0x295   : >> { %3767 = vmatprep.subr.bf16.mxu0 %v4119_v63  ;;  %3769 = vmatprep.mubr.msk.bf16.mxu0 %vm4120_vm2, %v4119_v63  ;;  %v2251_v63 = vld [vmem:[#allocation8 + $0x38] sm:$0xff] (%p2042_p0) }
 0x296   : > { %3774 = vmatpush3.bf16.msra.mxu1 (%p2042_p0), %v3977_v28 }
 0x297   : > { %3775 = vmatprep.subr.bf16.mxu1 (%p2042_p0), %v3979_v30 }
 0x298   : >> { %3768 = vmatpush3.bf16.msra.mxu0 %v3474_v46  ;;  %v2263_v46 = vpack.c.bf16 (%p2042_p0), %v2251_v63, %v2250_v62 }
 0x299   : > { %3793 = vmatprep.subr.bf16.mxu0 (%p2042_p0), %v3978_v29 }
 0x29a   : > { %3776 = vmatpush3.bf16.msra.mxu1 (%p2042_p0), %v3979_v30 }
 0x29b   : >> { %3770 = vmatmul.mubr.msk.bf16.vlgmr.msra.gmra.mrb[4].mxu0 %vm993_vm0, %v2048_v44  ;;  %v2253_v44 = vld [vmem:[#allocation8 + $0x48] sm:$0xff] (%p2042_p0) }
 0x29c   : > { %3794 = vmatpush3.bf16.msra.mxu0 (%p2042_p0), %v3978_v29  ;;  %3797 = vmatprep.mubr.msk.bf16.mxu0 (%p2042_p0), %vm993_vm0, %v2260_v39 }
 0x29d   : > { %3795 = vmatprep.subr.bf16.mxu0 (%p2042_p0), %v3980_v31 }
 0x2a0   : > { %3796 = vmatpush3.bf16.msra.mxu0 (%p2042_p0), %v3980_v31 }
 0x366   : >> { %v2098_v18 = vpop.f32.mrb[0].mxu0 }
 0x367   : >> { %v2159_v48 = vadd.f32 %v2158_v47, %v2098_v18  ;;  %v3755_v49 = vpop.f32.mrb[1].mxu0  ;;  %v2150_v50 = vpop.f32.mrb[0].mxu1 }
 0x368   : >> { %v2101_v51 = vpop.f32.mrb[2].mxu0  ;;  %v2168_v3 = vadd.f32 %v2167_v33, %v2150_v50  ;;  %v3763_v4 = vpop.f32.mrb[1].mxu1  ;;  %v2264_v33 = vpack.c.bf16 (%p2042_p0), %v2253_v44, %v2252_v43  ;;  %v2254_v49 = vld [vmem:[#allocation8 + $0x50] sm:$0xff] (%p2042_p0)  ;;  %v2255_v50 = vld [vmem:[#allocation8 + $0x58] sm:$0xff] (%p2042_p0) }
 0x369   : >> { %v3470_v5 = vmul.f32 -1.442695, %v2159_v48  ;;  %v3756_v6 = vpop.f32.mrb[3].mxu0  ;;  %v2153_v7 = vpop.f32.mrb[2].mxu1  ;;  %3798 = vmatmul.mubr.msk.bf16.vlgmr.msra.gmra.mrb[0].mxu0 (%p2042_p0), %vm993_vm0, %v2261_v54  ;;  %v2256_v4 = vld [vmem:[#allocation8 + $0x60] sm:$0xff] (%p2042_p0) }
 0x36a   : >> { %v3764_v8 = vpop.f32.mrb[3].mxu1  ;;  %v3471_v9 = vmul.f32 -1.442695, %v2168_v3  ;;  %3801 = vmatprep.mubr.msk.bf16.mxu0 (%p2042_p0), %vm993_vm0, %v2262_v59  ;;  %v2265_v7 = vpack.c.bf16 (%p2042_p0), %v2255_v50, %v2254_v49 }
 0x36b   : >> { %3967 = vpow2.f32 %v3470_v5  ;;  %v2257_v5 = vld [vmem:[#allocation8 + $0x68] sm:$0xff] (%p2042_p0) }
 0x36c   : >> { %3969 = vpow2.f32 %v3471_v9  ;;  %v2266_v9 = vpack.c.bf16 (%p2042_p0), %v2257_v5, %v2256_v4 }
 0x36e   : >> { %v2229_v10 = vpop.f32.mrb[4].mxu0 }
 0x36f   : >> { %v3771_v11 = vpop.f32.mrb[5].mxu0  ;;  %v2230_v19 = vadd.f32 %v4879_v60, %v2229_v10 }
 0x370   : >> { %v2232_v12 = vpop.f32.mrb[6].mxu0 }
 0x371   : >> { %v3772_v13 = vpop.f32.mrb[7].mxu0  ;;  %3802 = vmatmul.mubr.msk.bf16.gmra.mrb[4].mxu0 (%p2042_p0), %vm993_vm0, %v2263_v46  ;;  %v2258_v12 = vld [vmem:[#allocation8 + $0x70] sm:$0xff] (%p2042_p0) }
 0x372   : > { %3805 = vmatprep.mubr.msk.bf16.mxu0 (%p2042_p0), %vm993_vm0, %v2264_v33  ;;  %v2259_v13 = vld [vmem:[#allocation8 + $0x78] sm:$0xff] (%p2042_p0) }
 0x375   : >> { %v3968_v14 = vpop.eup %3967 }
 0x376   : >> { %v2163_v15 = vadd.f32 1.0, %v3968_v14  ;;  %v3970_v16 = vpop.eup %3969 }
 0x377   : >> { %v2172_v17 = vadd.f32 1.0, %v3970_v16  ;;  %v2607_v16 = vlaneseq (%p2042_p0) }
 0x378   : >> { %3971 = vrcp.f32 %v2163_v15  ;;  %v2267_v15 = vpack.c.bf16 (%p2042_p0), %v2259_v13, %v2258_v12 }
 0x379   : >> { %3973 = vrcp.f32 %v2172_v17  ;;  %3806 = vmatmul.mubr.msk.bf16.gmra.mrb[8].mxu0 (%p2042_p0), %vm993_vm0, %v2265_v7  ;;  %v4957_v17 = vld [vmem:[%s5258_s26] sm:$0x1f] (%p2042_p0) }
 0x37a   : > { %3809 = vmatprep.mubr.msk.bf16.mxu0 (%p2042_p0), %vm993_vm0, %v2266_v9 }
 0x381   : > { %3810 = vmatmul.mubr.msk.bf16.gmra.mrb[12].mxu0 (%p2042_p0), %vm993_vm0, %v2267_v15 }
 0x382   : >> { %v3972_v20 = vpop.eup %3971 }
 0x383   : >> { %v2235_v21 = vmul.f32 %v3972_v20, %v2230_v19  ;;  %v3974_v23 = vpop.eup %3973  ;;  %v4960_v19 = vand.u32 (%p2042_p0), 127, %v2607_v16 }
 0x384   : >> { %v2238_v24 = vsub.f32 1.0, %v3974_v23  ;;  %v2240_v26 = vmul.f32 %v4091_v61, %v3974_v23 }
 0x385   : >> { %v2236_v22 = vadd.f32 %v2235_v21, %v2176_v2  ;;  %v4965_v21 = vld [vmem:[%s5255_s23] ss:$0 sm:$0xff] (%p2042_p0) }
 0x387   : >> { %3975 = vtanh.f32 %v2236_v22 }
 0x390   : > { %2044 = sbr.rel (!%p2042_p0) target bundleno = 650 (0x28a), region = 306 }
 0x391   : >> { %v3976_v25 = vpop.eup %3975 }
 0x392   : >> { %v2239_v27 = vmul.f32 %v3976_v25, %v2238_v24 }
 0x394   : >> { %v2241_v61 = vadd.f32 %v2240_v26, %v2239_v27  }
 0x396   : >> { %2243 = vst.msk [vmem:[%s2242_s0] sm:$0xff] %vm993_vm0, %v2241_v61 }
 0x39d   : > { %v2268_v32 = vld [vmem:[#allocation9] sm:$0xff]  ;;  %v2269_v34 = vld [vmem:[#allocation9 + $0x8] sm:$0xff]  ;;  %v2270_v37 = vld [vmem:[#allocation9 + $0x10] sm:$0xff] }
 0x39e   : > { %v2284_v1 = vpack.c.bf16 %v2269_v34, %v2268_v32  ;;  %v2271_v38 = vld [vmem:[#allocation9 + $0x18] sm:$0xff]  ;;  %v2272_v53 = vld [vmem:[#allocation9 + $0x20] sm:$0xff]  ;;  %v2273_v55 = vld [vmem:[#allocation9 + $0x28] sm:$0xff] }
 0x39f   : > { %v2285_v40 = vpack.c.bf16 %v2271_v38, %v2270_v37  ;;  %v2286_v58 = vpack.c.bf16 %v2273_v55, %v2272_v53  ;;  %v2274_v60 = vld [vmem:[#allocation9 + $0x30] sm:$0xff]  ;;  %v2275_v61 = vld [vmem:[#allocation9 + $0x38] sm:$0xff]  ;;  %v2276_v0 = vld [vmem:[#allocation9 + $0x40] sm:$0xff] }
 0x3a0   : > { %3777 = vmatprep.mubr.msk.bf16.mxu1 %vm993_vm0, %v2284_v1  ;;  %v2277_v42 = vld [vmem:[#allocation9 + $0x48] sm:$0xff]  ;;  %v2287_v45 = vpack.c.bf16 %v2275_v61, %v2274_v60  ;;  %v2278_v18 = vld [vmem:[#allocation9 + $0x50] sm:$0xff]  ;;  %v2279_v48 = vld [vmem:[#allocation9 + $0x58] sm:$0xff] }
 0x3a1   : > { %3778 = vmatmul.mubr.msk.bf16.vlgmr.msra.gmra.mrb[0].mxu1 %vm993_vm0, %v2285_v40  ;;  %v2288_v47 = vpack.c.bf16 %v2277_v42, %v2276_v0  ;;  %v2280_v51 = vld [vmem:[#allocation9 + $0x60] sm:$0xff]  ;;  %v2281_v3 = vld [vmem:[#allocation9 + $0x68] sm:$0xff]  ;;  %v2289_v6 = vpack.c.bf16 %v2279_v48, %v2278_v18  ;;  %v2282_v10 = vld [vmem:[#allocation9 + $0x70] sm:$0xff] }
 0x3a2   : > { %3781 = vmatprep.mubr.msk.bf16.mxu1 %vm993_vm0, %v2286_v58  ;;  %v2290_v8 = vpack.c.bf16 %v2281_v3, %v2280_v51  ;;  %v2283_v11 = vld [vmem:[#allocation9 + $0x78] sm:$0xff]  ;;  %v3497_v55 = vld [vmem:[%s5256_s24] ss:$0 sm:$0xff] }
 0x3a3   : > { %v2291_v14 = vpack.c.bf16 %v2283_v11, %v2282_v10 }
 0x3a9   : > { %3782 = vmatmul.mubr.msk.bf16.gmra.mrb[4].mxu1 %vm993_vm0, %v2287_v45 }
 0x3aa   : > { %3785 = vmatprep.mubr.msk.bf16.mxu1 %vm993_vm0, %v2288_v47 }
 0x3b1   : > { %3786 = vmatmul.mubr.msk.bf16.gmra.mrb[8].mxu1 %vm993_vm0, %v2289_v6 }
 0x3b2   : > { %3789 = vmatprep.mubr.msk.bf16.mxu1 %vm993_vm0, %v2290_v8 }
 0x3b9   : > { %3790 = vmatmul.mubr.msk.bf16.gmra.mrb[12].mxu1 %vm993_vm0, %v2291_v14 }
 0x43c   : > { %v3799_v2 = vpop.f32.mrb[0].mxu0 }
 0x43d   : > { %v2503_v24 = vpop.f32.mrb[1].mxu0 }
 0x43e   : > { %v3800_v27 = vpop.f32.mrb[2].mxu0 }
 0x43f   : > { %v2506_v31 = vpop.f32.mrb[3].mxu0 }
 0x444   : > { %v3803_v37 = vpop.f32.mrb[4].mxu0 }
 0x445   : > { %v2519_v40 = vpop.f32.mrb[5].mxu0 }
 0x446   : > { %v3804_v53 = vpop.f32.mrb[6].mxu0 }
 0x447   : > { %v2522_v58 = vpop.f32.mrb[7].mxu0 }
 0x44c   : > { %v3807_v43 = vpop.f32.mrb[8].mxu0 }
 0x44d   : > { %v2535_v46 = vpop.f32.mrb[9].mxu0 }
 0x44e   : > { %v3808_v18 = vpop.f32.mrb[10].mxu0 }
 0x44f   : > { %v2538_v51 = vpop.f32.mrb[11].mxu0 }
 0x454   : > { %v3811_v8 = vpop.f32.mrb[12].mxu0 }
 0x455   : > { %v2551_v11 = vpop.f32.mrb[13].mxu0 }
 0x456   : > { %v3812_v14 = vpop.f32.mrb[14].mxu0 }
 0x474   : > { %v3779_v20 = vpop.f32.mrb[0].mxu1 }
 0x475   : > { %v2370_v22 = vpop.f32.mrb[1].mxu1  ;;  %v2512_v23 = vadd.f32 %v3799_v2, %v3779_v20 }
 0x476   : > { %v3780_v25 = vpop.f32.mrb[2].mxu1  ;;  %v2504_v26 = vadd.f32 %v2503_v24, %v2370_v22  ;;  %v2554_v22 = vpop.f32.mrb[15].mxu0 }
 0x477   : > { %v2373_v28 = vpop.f32.mrb[3].mxu1  ;;  %v2575_v29 = vadd.f32 %v4965_v21, %v2512_v23  ;;  %v2515_v30 = vadd.f32 %v3800_v27, %v3780_v25 }
 0x478   : > { %v2573_v32 = vadd.f32 %v4965_v21, %v2504_v26  ;;  %v2507_v34 = vadd.f32 %v2506_v31, %v2373_v28 }
 0x479   : > { %2592 = vst.msk [vmem:[%s4765_s12 + $0x10] sm:$0xff] %vm2589_vm3, %v2575_v29  ;;  %v2576_v35 = vadd.f32 %v4965_v21, %v2515_v30 }
 0x47a   : > { %2590 = vst.msk [vmem:[%s4765_s12] sm:$0xff] %vm2589_vm3, %v2573_v32  ;;  %v2574_v1 = vadd.f32 %v4965_v21, %v2507_v34 }
 0x47b   : > { %2593 = vst.msk [vmem:[%s4765_s12 + $0x18] sm:$0xff] %vm2589_vm3, %v2576_v35 }
 0x47c   : > { %v3783_v36 = vpop.f32.mrb[4].mxu1  ;;  %2591 = vst.msk [vmem:[%s4765_s12 + $0x8] sm:$0xff] %vm2589_vm3, %v2574_v1 }
 0x47d   : > { %v2386_v38 = vpop.f32.mrb[5].mxu1  ;;  %v2528_v39 = vadd.f32 %v3803_v37, %v3783_v36 }
 0x47e   : > { %v3784_v41 = vpop.f32.mrb[6].mxu1  ;;  %v2520_v52 = vadd.f32 %v2519_v40, %v2386_v38 }
 0x47f   : > { %v2389_v54 = vpop.f32.mrb[7].mxu1  ;;  %v2579_v56 = vadd.f32 %v4965_v21, %v2528_v39  ;;  %v2531_v57 = vadd.f32 %v3804_v53, %v3784_v41 }
 0x480   : > { %v2577_v59 = vadd.f32 %v4965_v21, %v2520_v52  ;;  %v2523_v60 = vadd.f32 %v2522_v58, %v2389_v54 }
 0x481   : > { %v2610_v61 = vld [vmem:[%s4765_s12] sm:$0xff]  ;;  %2596 = vst.msk [vmem:[%s4765_s12 + $0x30] sm:$0xff] %vm2589_vm3, %v2579_v56  ;;  %v2580_v62 = vadd.f32 %v4965_v21, %v2531_v57 }
 0x482   : > { %v2617_v63 = vadd.f32 %v3497_v55, %v2610_v61   ;;  %2594 = vst.msk [vmem:[%s4765_s12 + $0x20] sm:$0xff] %vm2589_vm3, %v2577_v59  ;;  %v2578_v0 = vadd.f32 %v4965_v21, %v2523_v60 }
 0x483   : > { %2597 = vst.msk [vmem:[%s4765_s12 + $0x38] sm:$0xff] %vm2589_vm3, %v2580_v62 }
 0x484   : > { %v3787_v42 = vpop.f32.mrb[8].mxu1  ;;  %2595 = vst.msk [vmem:[%s4765_s12 + $0x28] sm:$0xff] %vm2589_vm3, %v2578_v0 }
 0x485   : > { %v2402_v44 = vpop.f32.mrb[9].mxu1  ;;  %v2544_v45 = vadd.f32 %v3807_v43, %v3787_v42 }
 0x486   : > { %v3788_v47 = vpop.f32.mrb[10].mxu1  ;;  %v2536_v33 = vadd.f32 %v2535_v46, %v2402_v44 }
 0x487   : > { %v2405_v48 = vpop.f32.mrb[11].mxu1  ;;  %v2583_v49 = vadd.f32 %v4965_v21, %v2544_v45  ;;  %v2547_v50 = vadd.f32 %v3808_v18, %v3788_v47 }
 0x488   : > { %v2581_v3 = vadd.f32 %v4965_v21, %v2536_v33  ;;  %v2539_v4 = vadd.f32 %v2538_v51, %v2405_v48 }
 0x489   : > { %2600 = vst.msk [vmem:[%s4765_s12 + $0x50] sm:$0xff] %vm2589_vm3, %v2583_v49  ;;  %v2584_v5 = vadd.f32 %v4965_v21, %v2547_v50 }
 0x48a   : > { %2598 = vst.msk [vmem:[%s4765_s12 + $0x40] sm:$0xff] %vm2589_vm3, %v2581_v3  ;;  %v2582_v6 = vadd.f32 %v4965_v21, %v2539_v4 }
 0x48b   : > { %2601 = vst.msk [vmem:[%s4765_s12 + $0x58] sm:$0xff] %vm2589_vm3, %v2584_v5 }
 0x48c   : > { %v3791_v7 = vpop.f32.mrb[12].mxu1  ;;  %2599 = vst.msk [vmem:[%s4765_s12 + $0x48] sm:$0xff] %vm2589_vm3, %v2582_v6 }
 0x48d   : > { %v2418_v9 = vpop.f32.mrb[13].mxu1  ;;  %v2560_v10 = vadd.f32 %v3811_v8, %v3791_v7 }
 0x48e   : > { %v3792_v12 = vpop.f32.mrb[14].mxu1  ;;  %v2552_v13 = vadd.f32 %v2551_v11, %v2418_v9 }
 0x48f   : > { %v2421_v15 = vpop.f32.mrb[15].mxu1  ;;  %v2587_v20 = vadd.f32 %v4965_v21, %v2560_v10  ;;  %v2563_v2 = vadd.f32 %v3812_v14, %v3792_v12 }
 0x490   : > { %v2585_v23 = vadd.f32 %v4965_v21, %v2552_v13  ;;  %v2555_v24 = vadd.f32 %v2554_v22, %v2421_v15 }
 0x491   : > { %2604 = vst.msk [vmem:[%s4765_s12 + $0x70] sm:$0xff] %vm2589_vm3, %v2587_v20  ;;  %v2588_v25 = vadd.f32 %v4965_v21, %v2563_v2 }
 0x492   : > { %2602 = vst.msk [vmem:[%s4765_s12 + $0x60] sm:$0xff] %vm2589_vm3, %v2585_v23  ;;  %v2586_v26 = vadd.f32 %v4965_v21, %v2555_v24 }
 0x493   : > { %2605 = vst.msk [vmem:[%s4765_s12 + $0x78] sm:$0xff] %vm2589_vm3, %v2588_v25 }
 0x494   : > { %2603 = vst.msk [vmem:[%s4765_s12 + $0x68] sm:$0xff] %vm2589_vm3, %v2586_v26 }
 0x495 LB: >> { %v5028_v21 = vshrl.u32 %v2607_v16, 7  ;;  %v4121_v27 = vmov 1966171168   ;;  %s3498_s6 = sshll.u32 %s4103_s29, 3  ;;  %v2629_v37 = vcombine.high %v4099_v63, %v4099_v63  ;;  %vm2790_vm4 = vcmask 36864   ;;  %s2623_s29 = sadd.s32 1, %s4103_s29   ;;  %s4103_s29 = sphi %s5021_s29, %s2623_s29   ;;  %v4099_v63 = vphi %v2617_v63, %v5327_v63  }
 0x496   : >> { %v2631_v28 = vunpack.c.l.s4 %v4121_v27  ;;  %s2626_s7 = scalar_lea.vmem %s4765_s12, %s3498_s6 [#allocation12]  ;;  %vm2983_vm6 = vcmask 1041409   ;;  %vm2985_vm7 = vcmask 1042434   ;;  %vm2987_vm10 = vcmask 1043459   ;;  %s2997_s11 = scalar_lea.vmem [#allocation10], %s3498_s6 }
 0x497   : >> { %v5032_v29 = vsub.s32 0, %v5028_v21  ;;  %v2742_v30 = vsub.s32 2, %v5028_v21  ;;  %v2735_v31 = vsub.s32 1, %v5028_v21  ;;  %v2749_v32 = vsub.s32 3, %v5028_v21  ;;  %p2620_p1 = scmp.ge.s32.totalorder %s2623_s29, 16  }
 0x498   : >> { %v2632_v35 = vunpack.c.0.s8 %v2631_v28  ;;  %v2756_v38 = vsub.s32 4, %v5028_v21  ;;  %v2763_v39 = vsub.s32 5, %v5028_v21  ;;  %v2770_v57 = vsub.s32 6, %v5028_v21  ;;  %s5163_s5 = smov (%p2620_p1), 0  }
 0x499   : >> { %v2777_v58 = vsub.s32 7, %v5028_v21  ;;  %vm2989_vm11 = vcmask 1044484   ;;  %vm2991_vm14 = vcmask 1045509   ;;  %vm2993_vm15 = vcmask 1046534  }
 0x49a   : >> { %v2635_v52 = vsub.s32 %v2632_v35, %v5028_v21  ;;  %vm2995_vm2 = vcmask 1047559  }
 0x49b   : >> { %v2627_v34 = vld [vmem:[%s2626_s7] sm:$0xff] }
 0x49c   : >> { %v2729_v1 = vrot.slane %v2627_v34, %v5032_v29  ;;  %v2743_v36 = vrot.slane %v2627_v34, %v2742_v30  ;;  %v2736_v40 = vrot.slane %v2627_v34, %v2735_v31  ;;  %v2750_v41 = vrot.slane %v2627_v34, %v2749_v32 }
 0x49d   : >> { %v2636_v53 = vrot.slane %v4099_v63, %v2635_v52  ;;  %v2643_v54 = vrot.slane %v2629_v37, %v2635_v52  ;;  %v2757_v55 = vrot.slane %v2627_v34, %v2756_v38  ;;  %v2764_v56 = vrot.slane %v2627_v34, %v2763_v39 }
 0x49e   : >> { %2731 = vbcast.lane.b32.xlu0 %v2729_v1, 256  ;;  %2745 = vbcast.lane.b32.xlu1 %v2743_v36, 256  ;;  %v2771_v63 = vrot.slane %v2627_v34, %v2770_v57  ;;  %v2778_v47 = vrot.slane %v2627_v34, %v2777_v58 }
 0x49f   : >> { %v2652_v59 = vrot.slane %v2636_v53, %v2635_v52  ;;  %v2644_v60 = vcombine.high %v2636_v53, %v2636_v53  ;;  %v2659_v61 = vrot.slane %v2643_v54, %v2635_v52  ;;  %v2645_v62 = vcombine.high %v2643_v54, %v2643_v54 }
 0x4a1   : >> { %v2681_v0 = vrot.slane %v2652_v59, %v5032_v29  ;;  %v2674_v42 = vcombine.high %v2652_v59, %v2652_v59  ;;  %v2666_v43 = vrot.slane %v2644_v60, %v2635_v52  ;;  %v2697_v44 = vrot.slane %v2659_v61, %v5032_v29 }
 0x4a2   : >> { %2738 = vbcast.lane.b32.xlu0 %v2736_v40, 256  ;;  %2752 = vbcast.lane.b32.xlu1 %v2750_v41, 256  ;;  %v2673_v45 = vrot.slane %v2645_v62, %v2635_v52  ;;  %v2675_v46 = vcombine.high %v2659_v61, %v2659_v61  ;;  %v5078_v41 = vsub.s32 %v4960_v19, %v5028_v21 }
 0x4a3   : >> { %v2689_v33 = vrot.slane %v2674_v42, %v5032_v29  ;;  %v2685_v18 = vrot.slane %v2666_v43, %v5032_v29  ;;  %v2676_v48 = vcombine.high %v2666_v43, %v2666_v43  ;;  %v2718_v5 = vadd.f32 %v2681_v0, %v4957_v17 }
 0x4a4   : >> { %v2701_v49 = vrot.slane %v2673_v45, %v5032_v29  ;;  %v2705_v50 = vrot.slane %v2675_v46, %v5032_v29  ;;  %v2677_v51 = vcombine.high %v2673_v45, %v2673_v45  ;;  %v2722_v20 = vadd.f32 %v2697_v44, %v4957_v17 }
 0x4a5   : >> { %v2693_v3 = vrot.slane %v2676_v48, %v5032_v29  ;;  %v2720_v6 = vadd.f32 %v2689_v33, %v4957_v17  ;;  %v2719_v11 = vadd.f32 %v2685_v18, %v4957_v17 }
 0x4a6   : >> { %2759 = vbcast.lane.b32.xlu0 %v2757_v55, 256  ;;  %2766 = vbcast.lane.b32.xlu1 %v2764_v56, 256  ;;  %v2709_v4 = vrot.slane %v2677_v51, %v5032_v29  ;;  %v2723_v24 = vadd.f32 %v2701_v49, %v4957_v17  ;;  %v2724_v28 = vadd.f32 %v2705_v50, %v4957_v17 }
 0x4a7   : >> { %v2721_v12 = vadd.f32 %v2693_v3, %v4957_v17 }
 0x4a8   : >> { %v2725_v32 = vadd.f32 %v2709_v4, %v4957_v17 }
 0x4aa   : >> { %2773 = vbcast.lane.b32.xlu0 %v2771_v63, 256  ;;  %2780 = vbcast.lane.b32.xlu1 %v2778_v47, 256 }
 0x510   : >> { %v2732_v7 = vpop.permute.xlu0 %2731  ;;  %v2746_v8 = vpop.permute.xlu1 %2745 }
 0x511   : >> { %v2782_v9 = vadd.f32 %v2732_v7, %v2718_v5  ;;  %v2784_v10 = vadd.f32 %v2746_v8, %v2720_v6 }
 0x513   : >> { %v2791_v13 = vsel %vm2790_vm4, %v2782_v9, -inf  ;;  %v2797_v23 = vsel %vm2790_vm4, %v2784_v10, -inf }
 0x514   : >> { %v2739_v14 = vpop.permute.xlu0 %2738  ;;  %2792 = vmax.xlane.f32.xlu0 %v2791_v13  ;;  %v2753_v15 = vpop.permute.xlu1 %2752 }
 0x515   : >> { %v2783_v2 = vadd.f32 %v2739_v14, %v2719_v11  ;;  %v2785_v22 = vadd.f32 %v2753_v15, %v2721_v12 }
 0x517   : >> { %v2794_v25 = vsel %vm2790_vm4, %v2783_v2, -inf  ;;  %v2800_v31 = vsel %vm2790_vm4, %v2785_v22, -inf }
 0x518   : >> { %v2760_v26 = vpop.permute.xlu0 %2759  ;;  %2798 = vmax.xlane.f32.xlu0 %v2797_v23  ;;  %2795 = vmax.xlane.f32.xlu1 %v2794_v25  ;;  %v2767_v27 = vpop.permute.xlu1 %2766 }
 0x519   : >> { %v2786_v29 = vadd.f32 %v2760_v26, %v2722_v20  ;;  %v5064_v30 = vadd.f32 %v2767_v27, %v2723_v24 }
 0x51b   : >> { %v2803_v34 = vsel %vm2790_vm4, %v2786_v29, -inf  ;;  %v2806_v38 = vsel %vm2790_vm4, %v5064_v30, -inf }
 0x51c   : >> { %v2774_v35 = vpop.permute.xlu0 %2773  ;;  %2801 = vmax.xlane.f32.xlu0 %v2800_v31  ;;  %2804 = vmax.xlane.f32.xlu1 %v2803_v34  ;;  %v2781_v1 = vpop.permute.xlu1 %2780 }
 0x51d   : >> { %v2788_v36 = vadd.f32 %v2774_v35, %v2724_v28  ;;  %v5069_v37 = vadd.f32 %v2781_v1, %v2725_v32 }
 0x51f   : >> { %v2809_v39 = vsel %vm2790_vm4, %v2788_v36, -inf  ;;  %v2812_v40 = vsel %vm2790_vm4, %v5069_v37, -inf }
 0x520   : >> { %2810 = vmax.xlane.f32.xlu1 %v2809_v39  ;;  %2807 = vmax.xlane.f32.xlu0 %v2806_v38 }
 0x524   : >> { %2813 = vmax.xlane.f32.xlu0 %v2812_v40 }
 0x5a1   : >> { %v2793_v52 = vpop.xlane.xlu0 %2792 }
 0x5a2   : >> { %vm2815_vm5 = vcmp.eq.f32.partialorder %v2782_v9, %v2793_v52  ;;  %v3010_v53 = vrot.slane %v2793_v52, %v5078_v41 }
 0x5a3   : >> { %v2823_v54 = vsel %vm2815_vm5, %v4960_v19, 5 }
 0x5a4   : >> { %v5083_v55 = vsel %vm2790_vm4, %v2823_v54, 2147483647 }
 0x5a5   : >> { %v2799_v56 = vpop.xlane.xlu0 %2798  ;;  %v2796_v57 = vpop.xlane.xlu1 %2795  ;;  %v2833_v58 = vshra.s32 %v5083_v55, 16 }
 0x5a6   : >> { %vm2817_vm8 = vcmp.eq.f32.partialorder %v2784_v10, %v2799_v56  ;;  %v3018_v59 = vrot.slane %v2799_v56, %v5078_v41  ;;  %vm2816_vm9 = vcmp.eq.f32.partialorder %v2783_v2, %v2796_v57  ;;  %v3014_v21 = vrot.slane %v2796_v57, %v5078_v41 }
 0x5a7   : >> { %v2825_v60 = vsel %vm2817_vm8, %v4960_v19, 5  ;;  %v2824_v61 = vsel %vm2816_vm9, %v4960_v19, 5  ;;  %v5090_v62 = vcvt.s32.f32 %v2833_v58 }
 0x5a8   : >> { %v3039_v0 = vsel %vm2983_vm6, %v3014_v21, %v3010_v53  ;;  %v5094_v42 = vsel %vm2790_vm4, %v2825_v60, 2147483647  ;;  %v5097_v43 = vsel %vm2790_vm4, %v2824_v61, 2147483647 }
 0x5a9   : >> { %v3040_v44 = vsel %vm2985_vm7, %v3018_v59, %v3039_v0  ;;  %v2802_v63 = vpop.xlane.xlu0 %2801  ;;  %v2805_v45 = vpop.xlane.xlu1 %2804  ;;  %2836 = vmin.xlane.f32.xlu1 %v5090_v62  ;;  %v2863_v46 = vshra.s32 %v5094_v42, 16  ;;  %v2848_v47 = vshra.s32 %v5097_v43, 16  ;;  %v2862_v39 = vand.u32 65535, %v5094_v42 }
 0x5aa   : >> { %vm2818_vm12 = vcmp.eq.f32.partialorder %v2785_v22, %v2802_v63  ;;  %v3022_v33 = vrot.slane %v2802_v63, %v5078_v41  ;;  %vm2819_vm13 = vcmp.eq.f32.partialorder %v2786_v29, %v2805_v45  ;;  %v3026_v18 = vrot.slane %v2805_v45, %v5078_v41 }
 0x5ab   : >> { %v2826_v48 = vsel %vm2818_vm12, %v4960_v19, 5  ;;  %v2827_v49 = vsel %vm2819_vm13, %v4960_v19, 5  ;;  %v2865_v50 = vcvt.s32.f32 %v2863_v46  ;;  %v2850_v51 = vcvt.s32.f32 %v2848_v47 }
 0x5ac   : >> { %v3041_v3 = vsel %vm2987_vm10, %v3022_v33, %v3040_v44  ;;  %v2891_v4 = vsel %vm2790_vm4, %v2827_v49, 2147483647  ;;  %v2876_v5 = vsel %vm2790_vm4, %v2826_v48, 2147483647  ;;  %v2847_v40 = vand.u32 65535, %v5097_v43 }
 0x5ad   : >> { %v3042_v6 = vsel %vm2989_vm11, %v3026_v18, %v3041_v3  ;;  %2866 = vmin.xlane.f32.xlu1 %v2865_v50  ;;  %v2811_v7 = vpop.xlane.xlu1 %2810  ;;  %v2808_v8 = vpop.xlane.xlu0 %2807  ;;  %2851 = vmin.xlane.f32.xlu0 %v2850_v51  ;;  %v2893_v9 = vshra.s32 %v2891_v4, 16  ;;  %v2878_v10 = vshra.s32 %v2876_v5, 16  ;;  %v2864_v56 = vcvt.s32.f32 %v2862_v39 }
 0x5ae   : >> { %vm2821_vm0 = vcmp.eq.f32.partialorder %v2788_v36, %v2811_v7  ;;  %v3034_v11 = vrot.slane %v2811_v7, %v5078_v41  ;;  %vm2820_vm1 = vcmp.eq.f32.partialorder %v5064_v30, %v2808_v8  ;;  %v3030_v12 = vrot.slane %v2808_v8, %v5078_v41 }
 0x5af   : >> { %v2829_v13 = vsel %vm2821_vm0, %v4960_v19, 5  ;;  %v2828_v14 = vsel %vm2820_vm1, %v4960_v19, 5  ;;  %v2895_v15 = vcvt.s32.f32 %v2893_v9  ;;  %v2880_v20 = vcvt.s32.f32 %v2878_v10 }
 0x5b0   : >> { %v3043_v2 = vsel %vm2991_vm14, %v3030_v12, %v3042_v6  ;;  %v2921_v22 = vsel %vm2790_vm4, %v2829_v13, 2147483647  ;;  %v2906_v23 = vsel %vm2790_vm4, %v2828_v14, 2147483647  ;;  %v2832_v36 = vand.u32 65535, %v5083_v55 }
 0x5b1   : >> { %2896 = vmin.xlane.f32.xlu1 %v2895_v15  ;;  %2881 = vmin.xlane.f32.xlu0 %v2880_v20  ;;  %v3044_v24 = vsel %vm2993_vm15, %v3034_v11, %v3043_v2  ;;  %v2814_v25 = vpop.xlane.xlu0 %2813  ;;  %v2923_v26 = vshra.s32 %v2921_v22, 16  ;;  %v2908_v27 = vshra.s32 %v2906_v23, 16  ;;  %v2849_v57 = vcvt.s32.f32 %v2847_v40 }
 0x5b2   : >> { %vm2822_vm5 = vcmp.eq.f32.partialorder %v5069_v37, %v2814_v25  ;;  %v3038_v28 = vrot.slane %v2814_v25, %v5078_v41  ;;  %v2834_v37 = vcvt.s32.f32 %v2832_v36  ;;  %v2892_v58 = vand.u32 65535, %v2891_v4 }
 0x5b3   : >> { %v2830_v29 = vsel %vm2822_vm5, %v4960_v19, 5  ;;  %v2925_v30 = vcvt.s32.f32 %v2923_v26  ;;  %v2910_v31 = vcvt.s32.f32 %v2908_v27  ;;  %v2877_v59 = vand.u32 65535, %v2876_v5 }
 0x5b4   : >> { %v5124_v63 = vsel %vm2995_vm2, %v3038_v28, %v3044_v24   ;;  %v2936_v34 = vsel %vm2790_vm4, %v2830_v29, 2147483647  ;;  %v2894_v0 = vcvt.s32.f32 %v2892_v58  ;;  %v2922_v43 = vand.u32 65535, %v2921_v22 }
 0x5b5   : >> { %v5326_v32 = vmov %v5124_v63  ;;  %2926 = vmin.xlane.f32.xlu1 %v2925_v30  ;;  %2911 = vmin.xlane.f32.xlu0 %v2910_v31  ;;  %v2938_v35 = vshra.s32 %v2936_v34, 16  ;;  %v2879_v42 = vcvt.s32.f32 %v2877_v59  ;;  %v2937_v18 = vand.u32 65535, %v2936_v34 }
 0x5b6   : >> { %v2924_v47 = vcvt.s32.f32 %v2922_v43 }
 0x5b7   : >> { %v2940_v1 = vcvt.s32.f32 %v2938_v35 }
 0x5b9   : >> { %2941 = vmin.xlane.f32.xlu0 %v2940_v1 }
 0x636   : >> { %v2837_v38 = vpop.xlane.xlu1 %2836 }
 0x637   : >> { %vm2838_vm8 = vcmp.eq.f32.partialorder %v5090_v62, %v2837_v38  ;;  %v2907_v62 = vand.u32 65535, %v2906_v23  ;;  %v2843_v4 = vcvt.f32.s32 %v2837_v38 }
 0x638   : >> { %v2839_v52 = vsel %vm2838_vm8, %v2834_v37, inf }
 0x639   : >> { %2840 = vmin.xlane.f32.xlu1 %v2839_v52  ;;  %v2909_v33 = vcvt.s32.f32 %v2907_v62  ;;  %v2844_v7 = vshll.u32 %v2843_v4, 16 }
 0x63a   : >> { %v2867_v53 = vpop.xlane.xlu1 %2866  ;;  %v2852_v54 = vpop.xlane.xlu0 %2851 }
 0x63b   : >> { %vm2868_vm4 = vcmp.eq.f32.partialorder %v2865_v50, %v2867_v53  ;;  %vm2853_vm9 = vcmp.eq.f32.partialorder %v2850_v51, %v2852_v54  ;;  %v2939_v51 = vcvt.s32.f32 %v2937_v18  ;;  %v2873_v5 = vcvt.f32.s32 %v2867_v53 }
 0x63c   : >> { %v2869_v21 = vsel %vm2868_vm4, %v2864_v56, inf  ;;  %v2854_v55 = vsel %vm2853_vm9, %v2849_v57, inf  ;;  %v2858_v8 = vcvt.f32.s32 %v2852_v54 }
 0x63d   : >> { %2870 = vmin.xlane.f32.xlu1 %v2869_v21  ;;  %2855 = vmin.xlane.f32.xlu0 %v2854_v55  ;;  %v2874_v11 = vshll.u32 %v2873_v5, 16 }
 0x63e   : >> { %v2897_v60 = vpop.xlane.xlu1 %2896  ;;  %v2882_v61 = vpop.xlane.xlu0 %2881 }
 0x63f   : >> { %vm2898_vm12 = vcmp.eq.f32.partialorder %v2895_v15, %v2897_v60  ;;  %vm2883_vm13 = vcmp.eq.f32.partialorder %v2880_v20, %v2882_v61  ;;  %v2903_v12 = vcvt.f32.s32 %v2897_v60  ;;  %v2888_v13 = vcvt.f32.s32 %v2882_v61 }
 0x640   : >> { %v2899_v44 = vsel %vm2898_vm12, %v2894_v0, inf  ;;  %v2884_v63 = vsel %vm2883_vm13, %v2879_v42, inf  ;;  %v2859_v20 = vshll.u32 %v2858_v8, 16 }
 0x641   : >> { %2900 = vmin.xlane.f32.xlu1 %v2899_v44  ;;  %2885 = vmin.xlane.f32.xlu0 %v2884_v63  ;;  %v2904_v26 = vshll.u32 %v2903_v12, 16  ;;  %v2889_v27 = vshll.u32 %v2888_v13, 16 }
 0x642   : >> { %v2927_v45 = vpop.xlane.xlu1 %2926  ;;  %v2912_v46 = vpop.xlane.xlu0 %2911 }
 0x643   : >> { %vm2928_vm0 = vcmp.eq.f32.partialorder %v2925_v30, %v2927_v45  ;;  %vm2913_vm1 = vcmp.eq.f32.partialorder %v2910_v31, %v2912_v46  ;;  %v2933_v28 = vcvt.f32.s32 %v2927_v45  ;;  %v2918_v29 = vcvt.f32.s32 %v2912_v46 }
 0x644   : >> { %v2929_v48 = vsel %vm2928_vm0, %v2924_v47, inf  ;;  %v2914_v49 = vsel %vm2913_vm1, %v2909_v33, inf }
 0x645   : >> { %2930 = vmin.xlane.f32.xlu1 %v2929_v48  ;;  %2915 = vmin.xlane.f32.xlu0 %v2914_v49  ;;  %v2934_v40 = vshll.u32 %v2933_v28, 16  ;;  %v2919_v52 = vshll.u32 %v2918_v29, 16  ;;  %v3499_v49 = vld [vmem:[%s5257_s25] ss:$0 sm:$0xff] (%p2620_p1) }
 0x646   : >> { %v2942_v50 = vpop.xlane.xlu0 %2941 }
 0x647   : >> { %vm2943_vm5 = vcmp.eq.f32.partialorder %v2940_v1, %v2942_v50  ;;  %v2948_v53 = vcvt.f32.s32 %v2942_v50 }
 0x648   : >> { %v2944_v3 = vsel %vm2943_vm5, %v2939_v51, inf }
 0x649   : >> { %2945 = vmin.xlane.f32.xlu0 %v2944_v3  ;;  %v2949_v62 = vshll.u32 %v2948_v53, 16 }
 0x6c6   : >> { %v2841_v6 = vpop.xlane.xlu1 %2840 }
 0x6c7   : >> { %v2842_v9 = vcvt.f32.s32 %v2841_v6 }
 0x6c9   : >> { %v2845_v10 = vadd.s32 %v2844_v7, %v2842_v9 }
 0x6ca   : >> { %v2871_v14 = vpop.xlane.xlu1 %2870  ;;  %v2856_v15 = vpop.xlane.xlu0 %2855 }
 0x6cb   : >> { %v2954_v2 = vrot.slane %v2845_v10, %v5078_v41  ;;  %v2872_v22 = vcvt.f32.s32 %v2871_v14  ;;  %v2857_v23 = vcvt.f32.s32 %v2856_v15 }
 0x6cd   : >> { %v2875_v24 = vadd.s32 %v2874_v11, %v2872_v22  ;;  %v2860_v25 = vadd.s32 %v2859_v20, %v2857_v23 }
 0x6ce   : >> { %v2901_v30 = vpop.xlane.xlu1 %2900  ;;  %v2886_v31 = vpop.xlane.xlu0 %2885 }
 0x6cf   : >> { %v2962_v34 = vrot.slane %v2875_v24, %v5078_v41  ;;  %v2958_v35 = vrot.slane %v2860_v25, %v5078_v41  ;;  %v2902_v1 = vcvt.f32.s32 %v2901_v30  ;;  %v2887_v36 = vcvt.f32.s32 %v2886_v31 }
 0x6d1   : >> { %v2984_v38 = vsel %vm2983_vm6, %v2958_v35, %v2954_v2  ;;  %v2905_v37 = vadd.s32 %v2904_v26, %v2902_v1  ;;  %v2890_v39 = vadd.s32 %v2889_v27, %v2887_v36 }
 0x6d2   : >> { %v2986_v54 = vsel %vm2985_vm7, %v2962_v34, %v2984_v38  ;;  %v2931_v56 = vpop.xlane.xlu1 %2930  ;;  %v2916_v57 = vpop.xlane.xlu0 %2915 }
 0x6d3   : >> { %v2970_v58 = vrot.slane %v2905_v37, %v5078_v41  ;;  %v2966_v59 = vrot.slane %v2890_v39, %v5078_v41  ;;  %v2932_v21 = vcvt.f32.s32 %v2931_v56  ;;  %v2917_v55 = vcvt.f32.s32 %v2916_v57 }
 0x6d5   : >> { %v2988_v60 = vsel %vm2987_vm10, %v2966_v59, %v2986_v54  ;;  %v2935_v61 = vadd.s32 %v2934_v40, %v2932_v21  ;;  %v2920_v0 = vadd.s32 %v2919_v52, %v2917_v55  ;;  %vm3075_vm10 = vcmp.eq.s32.totalorder (%p2620_p1), %v4960_v19, 15 }
 0x6d6   : >> { %v2990_v42 = vsel %vm2989_vm11, %v2970_v58, %v2988_v60  ;;  %v2946_v43 = vpop.xlane.xlu0 %2945 }
 0x6d7   : >> { %v2978_v44 = vrot.slane %v2935_v61, %v5078_v41  ;;  %v2974_v63 = vrot.slane %v2920_v0, %v5078_v41  ;;  %v2947_v45 = vcvt.f32.s32 %v2946_v43 }
 0x6d8   : > { %2622 = sbr.rel (!%p2620_p1) target bundleno = 1173 (0x495), region = 317 }
 0x6d9   : >> { %v2992_v46 = vsel %vm2991_vm14, %v2974_v63, %v2990_v42  ;;  %v2950_v47 = vadd.s32 %v2949_v62, %v2947_v45  ;;  %v5327_v63 = vmov %v5326_v32 }
 0x6da   : >> { %v2994_v33 = vsel %vm2993_vm15, %v2978_v44, %v2992_v46 }
 0x6db   : >> { %v2982_v18 = vrot.slane %v2950_v47, %v5078_v41  ;;  %v3054_v41 = vadd.f32 (%p2620_p1), %v3499_v49, %v5326_v32 }
 0x6dd   : >> { %v2996_v48 = vsel %vm2995_vm2, %v2982_v18, %v2994_v33  ;;  %v3055_v50 = vsel (%p2620_p1), %vm2589_vm3, %v3054_v41, -inf }
 0x6de   : >> { %2998 = vst.msk [vmem:[%s2997_s11] sm:$0xff] %vm2589_vm3, %v2996_v48  ;;  %3056 = vmax.xlane.f32.xlu0 (%p2620_p1), %v3055_v50 }
 0x76b   : > { %v3057_v51 = vpop.xlane.xlu0 %3056 }
 0x76c   : > { %vm3058_vm6 = vcmp.eq.f32.partialorder %v3054_v41, %v3057_v51 }
 0x76d   : > { %v3059_v3 = vsel %vm3058_vm6, %v4960_v19, 5 }
 0x76e   : > { %v3060_v4 = vsel %vm2589_vm3, %v3059_v3, 2147483647 }
 0x76f   : > { %v3062_v5 = vshra.s32 %v3060_v4, 16  ;;  %v3061_v7 = vand.u32 65535, %v3060_v4 }
 0x771   : > { %v3064_v6 = vcvt.s32.f32 %v3062_v5  ;;  %v3063_v16 = vcvt.s32.f32 %v3061_v7 }
 0x773   : > { %3065 = vmin.xlane.f32.xlu0 %v3064_v6 }
 0x800   : > { %v3066_v8 = vpop.xlane.xlu0 %3065 }
 0x801   : > { %vm3067_vm7 = vcmp.eq.f32.partialorder %v3064_v6, %v3066_v8  ;;  %v3072_v9 = vcvt.f32.s32 %v3066_v8 }
 0x802   : > { %v3068_v17 = vsel %vm3067_vm7, %v3063_v16, inf }
 0x803   : > { %3069 = vmin.xlane.f32.xlu1 %v3068_v17  ;;  %v3073_v10 = vshll.u32 %v3072_v9, 16 }
 0x890   : > { %v3070_v32 = vpop.xlane.xlu1 %3069 }
 0x891   : > { %v3071_v11 = vcvt.f32.s32 %v3070_v32 }
 0x893   : > { %v3074_v12 = vadd.s32 %v3073_v10, %v3071_v11  }
 0x895   : > { %v3076_v13 = vsel %vm3075_vm10, %v3074_v12, 0   ;;  %v4109_v15 = vmov %v3074_v12  }
 0x896   : > { %v4105_v14 = vmov %v3076_v13  }
 0x897 LB: >> { %s3086_s9 = ssub.s32 15, %s4115_s5  ;;  %vm3090_vm11 = vcmp.eq.s32.totalorder %v4960_v19, %v4111_v15  ;;  %s3085_s29 = ssub.s32 14, %s4115_s5  ;;  %s4115_s5 = sphi %s5163_s5, %s3082_s5   ;;  %v4111_v15 = vphi %v4109_v15, %v3104_v15   ;;  %v4107_v14 = vphi %v4105_v14, %v4106_v14  }
 0x898   : >> { %s3500_s10 = sshll.u32 %s3086_s9, 3  ;;  %v3105_v29 = vstv %s3085_s29  ;;  %s3082_s5 = sadd.s32 1, %s4115_s5  }
 0x899   : >> { %s3088_s1 = scalar_lea.vmem [#allocation10], %s3500_s10  ;;  %vm3106_vm14 = vcmp.eq.s32.totalorder %v4960_v19, %v3105_v29  ;;  %p3079_p2 = scmp.ge.s32.totalorder %s3082_s5, 15  }
 0x89a   : >> { %v3089_v20 = vld [vmem:[%s3088_s1] sm:$0xff]  ;;  %vm3108_vm15 = vcmask (%p3079_p2), 130048   ;;  %s3115_s6 = scalar_lea.sflag (%p3079_p2), [#allocation14], %s4347_s4 }
 0x89b   : >> { %v3091_v2 = vsel %vm3090_vm11, %v3089_v20, 0 }
 0x89c   : >> { %v3092_v22 = vsel %vm2589_vm3, %v3091_v2, 0 }
 0x89d   : >> { %v3094_v23 = vshrl.u32 %v3092_v22, 16  ;;  %v3093_v24 = vand.u32 65535, %v3092_v22 }
 0x89f   : >> { %v3096_v25 = vcvt.s32.f32 %v3094_v23  ;;  %v3095_v26 = vcvt.s32.f32 %v3093_v24 }
 0x8a1   : >> { %3099 = vadd.xlane.f32.xlu0 %v3096_v25 }
 0x8a5   : >> { %3097 = vadd.xlane.f32.xlu0 %v3095_v26 }
 0x92e   : >> { %v3100_v27 = vpop.xlane.xlu0 %3099 }
 0x92f   : >> { %v3102_v28 = vcvt.f32.s32 %v3100_v27 }
 0x931   : >> { %v3103_v31 = vshll.u32 %v3102_v28, 16 }
 0x932   : >> { %v3098_v30 = vpop.xlane.xlu0 %3097  ;;  %3081 = sbr.rel (!%p3079_p2) target bundleno = 2199 (0x897), region = 328 }
 0x933   : >> { %v3101_v34 = vcvt.f32.s32 %v3098_v30 }
 0x935   : >> { %v3104_v15 = vadd.s32 %v3103_v31, %v3101_v34  }
 0x937   : >> { %v3107_v35 = vsel %vm3106_vm14, %v3104_v15, %v4107_v14  }
 0x938   : >> { %v4106_v14 = vmov %v3107_v35   ;;  %3109 = vst.msk [vmem:[%s4769_s8] sm:$0xff] (%p3079_p2), %vm3108_vm15, %v3107_v35 }
 0x939   : > { %3121 = sbr.rel (!%p4307_p6) target bundleno = 2371 (0x943), region = 198  ;;  %s3503_s7 = sshll.u32 (%p4307_p6), %s4289_s3, 3  ;;  %v3181_v1 = vld [vmem:[%s4765_s12] sm:$0xff] (%p4307_p6)  ;;  %v3183_v19 = vld [vmem:[%s4765_s12 + $0x8] sm:$0xff] (%p4307_p6)  ;;  %v3185_v36 = vld [vmem:[%s4765_s12 + $0x10] sm:$0xff] (%p4307_p6) }
 0x93a   : > { %s3123_s0 = scalar_lea.vmem (%p4307_p6), %s5259_s27, %s3503_s7  ;;  %v3187_v38 = vld [vmem:[%s4765_s12 + $0x18] sm:$0xff] (%p4307_p6)  ;;  %v3189_v37 = vld [vmem:[%s4765_s12 + $0x20] sm:$0xff] (%p4307_p6)  ;;  %v3191_v39 = vld [vmem:[%s4765_s12 + $0x28] sm:$0xff] (%p4307_p6) }
 0x93b   : > { %3182 = vst [vmem:[%s3123_s0] sm:$0xff] (%p4307_p6), %v3181_v1  ;;  %3184 = vst [vmem:[%s3123_s0 + $0x10] sm:$0xff] (%p4307_p6), %v3183_v19  ;;  %v3193_v40 = vld [vmem:[%s4765_s12 + $0x30] sm:$0xff] (%p4307_p6)  ;;  %v3195_v52 = vld [vmem:[%s4765_s12 + $0x38] sm:$0xff] (%p4307_p6) }
 0x93c   : > { %3186 = vst [vmem:[%s3123_s0 + $0x20] sm:$0xff] (%p4307_p6), %v3185_v36  ;;  %3188 = vst [vmem:[%s3123_s0 + $0x30] sm:$0xff] (%p4307_p6), %v3187_v38  ;;  %v3197_v53 = vld [vmem:[%s4765_s12 + $0x40] sm:$0xff] (%p4307_p6)  ;;  %v3199_v54 = vld [vmem:[%s4765_s12 + $0x48] sm:$0xff] (%p4307_p6) }
 0x93d   : > { %3190 = vst [vmem:[%s3123_s0 + $0x40] sm:$0xff] (%p4307_p6), %v3189_v37  ;;  %3192 = vst [vmem:[%s3123_s0 + $0x50] sm:$0xff] (%p4307_p6), %v3191_v39  ;;  %v3201_v56 = vld [vmem:[%s4765_s12 + $0x50] sm:$0xff] (%p4307_p6)  ;;  %v3203_v57 = vld [vmem:[%s4765_s12 + $0x58] sm:$0xff] (%p4307_p6) }
 0x93e   : > { %3194 = vst [vmem:[%s3123_s0 + $0x60] sm:$0xff] (%p4307_p6), %v3193_v40  ;;  %3196 = vst [vmem:[%s3123_s0 + $0x70] sm:$0xff] (%p4307_p6), %v3195_v52  ;;  %v3205_v58 = vld [vmem:[%s4765_s12 + $0x60] sm:$0xff] (%p4307_p6)  ;;  %v3207_v59 = vld [vmem:[%s4765_s12 + $0x68] sm:$0xff] (%p4307_p6) }
 0x93f   : > { %3198 = vst [vmem:[%s3123_s0 + $0x80] sm:$0xff] (%p4307_p6), %v3197_v53  ;;  %3200 = vst [vmem:[%s3123_s0 + $0x90] sm:$0xff] (%p4307_p6), %v3199_v54  ;;  %v3209_v21 = vld [vmem:[%s4765_s12 + $0x70] sm:$0xff] (%p4307_p6)  ;;  %v3211_v55 = vld [vmem:[%s4765_s12 + $0x78] sm:$0xff] (%p4307_p6) }
 0x940   : > { %3202 = vst [vmem:[%s3123_s0 + $0xa0] sm:$0xff] %v3201_v56  ;;  %3204 = vst [vmem:[%s3123_s0 + $0xb0] sm:$0xff] %v3203_v57 }
 0x941   : > { %3206 = vst [vmem:[%s3123_s0 + $0xc0] sm:$0xff] %v3205_v58  ;;  %3208 = vst [vmem:[%s3123_s0 + $0xd0] sm:$0xff] %v3207_v59 }
 0x942   : > { %3210 = vst [vmem:[%s3123_s0 + $0xe0] sm:$0xff] %v3209_v21  ;;  %3212 = vst [vmem:[%s3123_s0 + $0xf0] sm:$0xff] %v3211_v55 }
 0x943 PF: > { %s3504_s5 = sshll.u32 %s4289_s3, 7  ;;  %s3225_s9 = sshll.u32 %s4769_s8, 4  ;;  %s3226_s9 = int_to_ptr.vmem [resolvable:$true] %s3225_s9 }
 0x944   : > { %s3223_s29 = scalar_lea.hbm %s5260_s28, %s3504_s5  ;;  %s3981_s7 = scalar_lea.vmem %s3226_s9, 128 }
 0x945   : > { %p3982_p3 = scmp.ne.s32.totalorder %s3226_s9, %s3981_s7  ;;  %s4122_s11 = smov [#allocation13]  }
 0x946   : > { %s3985_s30 = sshll.u32 %s4122_s11, 4  ;;  %s3986_s30 = int_to_ptr.vmem [resolvable:$false] %s3985_s30 }
 0x947   : > { %p3983_p4 = pnand %p3982_p3, %p4307_p6  ;;  %s3987_s12 = scalar_lea.vmem %s3986_s30, 256 }
 0x948   : > { %p3988_p7 = scmp.lt.s32.totalorder %s3226_s9, %s3986_s30  ;;  %p3989_p10 = scmp.lt.s32.totalorder %s3987_s12, %s3981_s7 }
 0x949   : > { %p3984_p5 = pneg %p3983_p4 }
 0x94a   : > { %p3990_p11 = por %p3989_p10, %p3988_p7 }
 0x94c   : > { %p3991_p12 = pnand %p3990_p11, %p3984_p5 }
 0x94e   : > { %3994 = shalt.err (!%p3991_p12)
}
 0x94f   : > { %s3995_s3 = scalar_lea.hbm %s3223_s29, 128  ;;  %s3999_s5 = scalar_lea.hbm %s5260_s28, 256 }
 0x950   : > { %p3996_p13 = scmp.ne.s32.totalorder %s3223_s29, %s3995_s3  ;;  %p4000_p2 = scmp.lt.u32.totalorder %s3223_s29, %s5260_s28 }
 0x951   : > { %p4001_p3 = scmp.lt.u32.totalorder %s3999_s5, %s3995_s3  ;;  %p4003_p9 = scmp.lt.u32.totalorder %s3995_s3, %s3223_s29 }
 0x952   : > { %p3997_p0 = pnand %p3996_p13, %p4307_p6 }
 0x953   : > { %p4002_p4 = por %p4001_p3, %p4000_p2 }
 0x954   : > { %p3998_p1 = pneg %p3997_p0 }
 0x955   : > { %p4004_p7 = por %p4003_p9, %p4002_p4 }
 0x957   : > { %p4005_p5 = pnand %p4004_p7, %p3998_p1 }
 0x959   : > { %4008 = shalt.err (!%p4005_p5)
}
 0x95a   : > { %3829 = dma.vmem_to_hbm [thread:$0]  (%p4307_p6), %s3226_s9, 128, %s3223_s29, %s3115_s6  }
 0x95b PF: > { %s5328_s7 = sld [smem:[#allocation16_spill]]  ;;  %s5330_s30 = sld [smem:[#allocation19_spill]] }
 0x961   : > { %s3244_s12 = sand.u32 1, %s5328_s7   ;;  %p5331_p10 = scmp.ge.s32.totalorder %s5330_s30, 2 }
 0x962   : > { %s3245_s8 = scalar_lea.sflag [#allocation14], %s3244_s12 }
 0x963   : > { %p3832_p11 = pnand %p5331_p10, %p4311_p8 }
 0x965   : > { %4062 = dma.done.wait (!%p3832_p11), %s3245_s8, 128  }
 0x966   : > { %4064 = vsyncadd (!%p3832_p11), %s3245_s8, 4294967168  ;;  %s5332_s30 = sld [smem:[#allocation20_spill]]  ;;  %s5333_s8 = sld [smem:[#allocation17_spill]] }
 0x967   : > { %s5334_s5 = sld [smem:[#allocation18_spill]]  ;;  %s5335_s9 = sld [smem:[#allocation21_spill]] }
 0x96c   : > { %p39_p9 = scmp.ge.s32.totalorder %s5332_s30, 4  }
 0x96e   :  { %41 = sbr.rel (!%p39_p9) target bundleno = 18 (0x12), region = 339 }
 0x975   :  { %3250 = vsyncpa [#allocation14], 1 }
 0x976   :  { %3252 = vsyncpa [#allocation14 + $0x1], 1 }

</bundles_post_ra>
